<compile_context>
chip_gen: v7x
topology: tpu7x:2x2x1
jax: 0.10.0
libtpu: 0.0.40
codegen_flags: <defaults>
</compile_context>

<pallas_src>
import functools
import numpy as np
import jax
import jax.numpy as jnp
from jax import lax
from jax.experimental import pallas as pl
from jax.experimental.pallas import tpu as pltpu


def _round_up(x, m):
    return ((x + m - 1) // m) * m


def _vmem_limit():
    # v7x: 64 MiB physical VMEM per TensorCore -> request only 48 MiB (headroom for
    # compiler scratch / double buffers).  v5e/v6e (128 MiB) keep the proven 64 MiB cap.
    try:
        kind = jax.devices()[0].device_kind.lower()
    except Exception:
        kind = ""
    if ("v5" in kind) or ("v6" in kind):
        return 64 * 1024 * 1024
    return 48 * 1024 * 1024


VMEM_LIMIT = _vmem_limit()
BUDGET = int(VMEM_LIMIT * 0.45)   # tile-selection budget; leaves slack for Mosaic temps


# ------------------------------------------------------------------
# Fused GEMM:  out = maybe_relu((A @ B) * scale + shift)
# A, B streamed as bf16 (MXU native); accumulate + epilogue in f32.
# Used for conv1_1 (Cin=1), fc6 (7x7), fc7 / score convs (1x1).
# ------------------------------------------------------------------
def _gemm_single_kernel(a_ref, b_ref, scale_ref, shift_ref, o_ref, *, relu):
    # Whole K fits in one block: no accumulator scratch, direct epilogue + store.
    y = jnp.dot(a_ref[...], b_ref[...], preferred_element_type=jnp.float32)
    y = y * scale_ref[...] + shift_ref[...]
    if relu:
        y = jnp.maximum(y, 0.0)
    o_ref[...] = y.astype(o_ref.dtype)


def _gemm_acc_kernel(a_ref, b_ref, scale_ref, shift_ref, o_ref, acc_ref, *, relu):
    @pl.when(pl.program_id(2) == 0)
    def _():
        acc_ref[...] = jnp.zeros_like(acc_ref)

    acc_ref[...] += jnp.dot(a_ref[...], b_ref[...],
                            preferred_element_type=jnp.float32)

    @pl.when(pl.program_id(2) == pl.num_programs(2) - 1)
    def _():
        y = acc_ref[...] * scale_ref[...] + shift_ref[...]
        if relu:
            y = jnp.maximum(y, 0.0)
        o_ref[...] = y.astype(o_ref.dtype)


def _pick_tk(K):
    if K <= 4096:
        return K
    for cand in range(4096, 127, -128):
        if K % cand == 0:
            return cand
    return None  # caller pads K


def _pick_tm(M, tk, tn, budget):
    # A (2 bufs, bf16) + f32 acc/epilogue temps + out (2 bufs, bf16) per M row.
    per_row = 4 * tk + 12 * tn
    tm = int(max(budget, per_row * 8) // per_row)
    tm = min(tm, 4096, _round_up(M, 8))
    return max(8, (tm // 8) * 8)


def fused_matmul(a, b, scale, shift, relu, out_dtype=jnp.bfloat16):
    """(A @ B) * scale + shift (+ReLU).  A:(M,K)  B:(K,N)  scale/shift:(N,)."""
    M, K = a.shape
    K2, N = b.shape
    assert K == K2
    a = a.astype(jnp.bfloat16)
    b = b.astype(jnp.bfloat16)

    tk = _pick_tk(K)
    if tk is None:                      # latent-footgun guard: pad K instead of blowing VMEM
        Kp = _round_up(K, 2048)
        a = jnp.pad(a, ((0, 0), (0, Kp - K)))
        b = jnp.pad(b, ((0, Kp - K), (0, 0)))
        K, tk = Kp, 2048

    tn = 512 if N % 512 == 0 else N
    budget = max(BUDGET - 4 * tk * tn, 2 * 1024 * 1024)
    tm = _pick_tm(M, tk, tn, budget)
    steps = pl.cdiv(M, tm)
    tm = _round_up(-(-M // steps), 8)   # balance the M tiles (minimal pad waste)
    Mp = steps * tm
    if Mp != M:
        # TODO(synk): verify in HLO that this pad and the final [:M] slice fuse with the
        # neighbouring ops; only conv1_1 has a large M on this path.
        a = jnp.pad(a, ((0, Mp - M), (0, 0)))

    scale = scale.astype(jnp.float32).reshape(1, N)
    shift = shift.astype(jnp.float32).reshape(1, N)
    nk = K // tk

    if nk == 1:
        out = pl.pallas_call(
            functools.partial(_gemm_single_kernel, relu=relu),
            out_shape=jax.ShapeDtypeStruct((Mp, N), out_dtype),
            grid_spec=pltpu.PrefetchScalarGridSpec(
                num_scalar_prefetch=0,
                grid=(Mp // tm, N // tn),
                in_specs=[
                    pl.BlockSpec((tm, tk), lambda i, j: (i, 0)),
                    pl.BlockSpec((tk, tn), lambda i, j: (0, j)),
                    pl.BlockSpec((1, tn), lambda i, j: (0, j)),
                    pl.BlockSpec((1, tn), lambda i, j: (0, j)),
                ],
                out_specs=pl.BlockSpec((tm, tn), lambda i, j: (i, j))),
            compiler_params=pltpu.CompilerParams(
                dimension_semantics=("parallel", "parallel"),
                vmem_limit_bytes=VMEM_LIMIT),
        )(a, b, scale, shift)
    else:
        out = pl.pallas_call(
            functools.partial(_gemm_acc_kernel, relu=relu),
            out_shape=jax.ShapeDtypeStruct((Mp, N), out_dtype),
            grid_spec=pltpu.PrefetchScalarGridSpec(
                num_scalar_prefetch=0,
                grid=(Mp // tm, N // tn, nk),
                in_specs=[
                    pl.BlockSpec((tm, tk), lambda i, j, k: (i, k)),
                    pl.BlockSpec((tk, tn), lambda i, j, k: (k, j)),
                    pl.BlockSpec((1, tn), lambda i, j, k: (0, j)),
                    pl.BlockSpec((1, tn), lambda i, j, k: (0, j)),
                ],
                out_specs=pl.BlockSpec((tm, tn), lambda i, j, k: (i, j)),
                scratch_shapes=[pltpu.VMEM((tm, tn), jnp.float32)]),
            compiler_params=pltpu.CompilerParams(
                dimension_semantics=("parallel", "parallel", "arbitrary"),
                vmem_limit_bytes=VMEM_LIMIT),
        )(a, b, scale, shift)

    return out[:M] if Mp != M else out


# ------------------------------------------------------------------
# BN folding: BN(conv + bias) = conv * scale + shift
# ------------------------------------------------------------------
def _fold_bn(bias, bn, cout, eps=1e-5):
    if bn is None:
        scale = jnp.ones((cout,), jnp.float32)
        shift = bias.astype(jnp.float32)
    else:
        gamma, beta, mean, var = bn
        scale = gamma / jnp.sqrt(var + eps)
        shift = (bias - mean) * scale + beta
    return scale, shift


# ------------------------------------------------------------------
# Generic conv via im2col + fused GEMM (1x1 convs, conv1_1 (Cin=1), fc6 7x7)
# ------------------------------------------------------------------
def conv2d_gemm(x, w, bias, padding, bn=None, relu=False, out_dtype=jnp.bfloat16):
    N, H, W, Cin = x.shape
    Cout, Cin2, kh, kw = w.shape
    assert Cin == Cin2
    xb = x.astype(jnp.bfloat16)
    if padding:
        xb = jnp.pad(xb, ((0, 0), (padding, padding), (padding, padding), (0, 0)))
    Hp, Wp = H + 2 * padding, W + 2 * padding
    Ho, Wo = Hp - kh + 1, Wp - kw + 1
    if kh == 1 and kw == 1:
        A = xb.reshape(N * Ho * Wo, Cin)
    else:
        # Only conv1_1 (Cin=1) and fc6 (tiny spatial) take this branch: the im2col copy is
        # negligible relative to the layer's output / weight traffic.
        cols = [xb[:, dy:dy + Ho, dx:dx + Wo, :]
                for dy in range(kh) for dx in range(kw)]
        A = jnp.concatenate(cols, axis=-1).reshape(N * Ho * Wo, kh * kw * Cin)
    B = jnp.transpose(w, (2, 3, 1, 0)).reshape(kh * kw * Cin, Cout)
    scale, shift = _fold_bn(bias, bn, Cout)
    out = fused_matmul(A, B, scale, shift, relu, out_dtype=out_dtype)
    return out.reshape(N, Ho, Wo, Cout)


# ------------------------------------------------------------------
# 3x3 stride-1 conv as a fused band kernel (no HBM im2col).
# The kernel sees the padded band flattened to (rows*wp, Cin); tap (dy,dx) is a shifted
# contiguous window of that flat matrix, so the conv is 9 shifted MXU matmuls.
# ------------------------------------------------------------------
def _conv_band_kernel(x_ref, w_ref, scale_ref, shift_ref, o_ref, *, kh, kw, wp, tm, relu):
    acc = None
    for dy in range(kh):
        for dx in range(kw):
            a = x_ref[0, 0, pl.ds(dy * wp + dx, tm), :]          # (tm, Cin) bf16
            p = jnp.dot(a, w_ref[dy * kw + dx],
                        preferred_element_type=jnp.float32)       # (tm, Cout) f32
            acc = p if acc is None else acc + p
    y = acc * scale_ref[...] + shift_ref[...]
    if relu:
        y = jnp.maximum(y, 0.0)
    o_ref[0, 0] = y.astype(o_ref.dtype)


def _pick_band_rows(wp, cin, cout, ho, kh, kw):
    per_row = (4 * wp * cin        # input band, bf16, double buffered
               + 4 * wp * cout     # output block, bf16, double buffered
               + 2 * wp * cin      # per-tap A temp (bf16)
               + 8 * wp * cout)    # dot result + accumulator (f32)
    fixed = 4 * kh * kw * cin * cout + 4 * kh * wp * cin + (1 << 20)
    th = int((BUDGET - fixed) // per_row)
    return max(1, min(ho, max(4, th)))


def conv3x3_band(x, w, bias, padding, bn=None, relu=True,
                 out_dtype=jnp.bfloat16, max_rows=None):
    N, H, W, Cin = x.shape
    Cout, Cin2, kh, kw = w.shape
    assert Cin == Cin2 and kh == 3 and kw == 3
    Ho = H + 2 * padding - kh + 1
    Wo = W + 2 * padding - kw + 1
    wp = _round_up(W + 2 * padding, 8)            # padded width (zero cols on the right)

    th = _pick_band_rows(wp, Cin, Cout, Ho, kh, kw)
    if max_rows is not None:
        th = max(1, min(th, max_rows))
    nb = pl.cdiv(Ho, th)
    th = pl.cdiv(Ho, nb)                          # balance bands (minimal padded rows)
    ho_pad = nb * th
    tm = th * wp

    xb = x.astype(jnp.bfloat16)
    xb = jnp.pad(xb, ((0, 0),
                      (padding, ho_pad + kh - H - padding),
                      (padding, wp - W - padding),
                      (0, 0)))
    if nb == 1:
        bands = xb[:, None]                       # free
    else:
        # ~ (1 + kh/th) x copy of the activation; replaces the old 9x im2col.
        bands = jnp.stack([xb[:, i * th: i * th + th + kh] for i in range(nb)], axis=1)
    bands = bands.reshape(N, nb, (th + kh) * wp, Cin)

    wmat = jnp.transpose(w, (2, 3, 1, 0)).reshape(kh * kw, Cin, Cout).astype(jnp.bfloat16)
    scale, shift = _fold_bn(bias, bn, Cout)
    scale = scale.reshape(1, Cout).astype(jnp.float32)
    shift = shift.reshape(1, Cout).astype(jnp.float32)

    out = pl.pallas_call(
        functools.partial(_conv_band_kernel, kh=kh, kw=kw, wp=wp, tm=tm, relu=relu),
        out_shape=jax.ShapeDtypeStruct((N, nb, tm, Cout), out_dtype),
        grid_spec=pltpu.PrefetchScalarGridSpec(
            num_scalar_prefetch=0,
            grid=(N, nb),
            in_specs=[
                pl.BlockSpec((1, 1, (th + kh) * wp, Cin), lambda n, i: (n, i, 0, 0)),
                pl.BlockSpec((kh * kw, Cin, Cout), lambda n, i: (0, 0, 0)),
                pl.BlockSpec((1, Cout), lambda n, i: (0, 0)),
                pl.BlockSpec((1, Cout), lambda n, i: (0, 0)),
            ],
            out_specs=pl.BlockSpec((1, 1, tm, Cout), lambda n, i: (n, i, 0, 0))),
        compiler_params=pltpu.CompilerParams(
            dimension_semantics=("parallel", "parallel"),
            vmem_limit_bytes=VMEM_LIMIT),
    )(bands, wmat, scale, shift)

    out = out.reshape(N, ho_pad, wp, Cout)
    return out[:, :Ho, :Wo, :]


# ------------------------------------------------------------------
# MaxPool 2x2 stride 2, ceil_mode=True.
# Free metadata reshape (N, 2Ho, 2Wo, C) -> (N, Ho, 2, Wo, 2C); one kernel does the
# row-pair and column-pair maxes.  Zero pad (only when H/W odd) is exact because every
# pooled tensor in this network is post-ReLU (>= 0).
# ------------------------------------------------------------------
def _pool_kernel(x_ref, o_ref, *, c):
    a = x_ref[0, :, 0]                       # (th, Wo, 2C)
    b = x_ref[0, :, 1]
    m = jnp.maximum(a, b)
    o_ref[0] = jnp.maximum(m[..., :c], m[..., c:])


def _pick_pool_rows(wo, c, ho):
    per_row = 28 * wo * c
    if per_row * ho <= int(0.6 * VMEM_LIMIT):
        return ho
    return max(4, min(ho, BUDGET // per_row))


def maxpool2x2_ceil(x):
    N, H, W, C = x.shape
    Ho, Wo = -(-H // 2), -(-W // 2)
    if (2 * Ho != H) or (2 * Wo != W):
        x = jnp.pad(x, ((0, 0), (0, 2 * Ho - H), (0, 2 * Wo - W), (0, 0)))
    x5 = x.reshape(N, Ho, 2, Wo, 2 * C)
    th = _pick_pool_rows(Wo, C, Ho)
    nb = pl.cdiv(Ho, th)
    th = pl.cdiv(Ho, nb)
    out = pl.pallas_call(
        functools.partial(_pool_kernel, c=C),
        out_shape=jax.ShapeDtypeStruct((N, Ho, Wo, C), x.dtype),
        grid_spec=pltpu.PrefetchScalarGridSpec(
            num_scalar_prefetch=0,
            grid=(N, nb),
            in_specs=[pl.BlockSpec((1, th, 2, Wo, 2 * C), lambda n, i: (n, i, 0, 0, 0))],
            out_specs=pl.BlockSpec((1, th, Wo, C), lambda n, i: (n, i, 0, 0))),
        compiler_params=pltpu.CompilerParams(
            dimension_semantics=("parallel", "arbitrary"),
            vmem_limit_bytes=VMEM_LIMIT),
    )(x5)
    return out


# ------------------------------------------------------------------
# Frozen bilinear ConvTranspose2d(n_class, n_class, k, stride=s, bias=False).
# Diagonal per-channel weight => depthwise bilinear upsampling, done with a sub-pixel
# (phase) decomposition in plain XLA.
# TODO(synk): tiny (<1 MB) tensors; a dedicated Pallas kernel adds risk for no gain.
# ------------------------------------------------------------------
def _bilinear_filter(k):
    factor = (k + 1) // 2
    center = factor - 1 if k % 2 == 1 else factor - 0.5
    og = np.ogrid[:k, :k]
    filt = (1 - abs(og[0] - center) / factor) * (1 - abs(og[1] - center) / factor)
    return filt.astype(np.float32)


def bilinear_upsample(x, k, s):
    assert k == 2 * s
    N, H, W, C = x.shape
    filt = _bilinear_filter(k)
    Q, R = H + 1, W + 1
    xp = jnp.pad(x.astype(jnp.float32), ((0, 0), (1, 1), (1, 1), (0, 0)))
    blocks = jnp.zeros((N, Q, R, s, s, C), jnp.float32)
    for my in (0, 1):
        for mx in (0, 1):
            v = xp[:, 1 - my:1 - my + Q, 1 - mx:1 - mx + R, :]
            fsub = jnp.asarray(filt[my * s:(my + 1) * s, mx * s:(mx + 1) * s])
            blocks = blocks + v[:, :, :, None, None, :] * fsub[None, None, None, :, :, None]
    return blocks.transpose(0, 1, 3, 2, 4, 5).reshape(N, Q * s, R * s, C)


# ------------------------------------------------------------------
# Model definition / parameters
# ------------------------------------------------------------------
N_CLASS = 32

CONV_CFG = [
    ("conv1_1", 1, 64, 3, 100),
    ("conv1_2", 64, 64, 3, 1),
    ("conv2_1", 64, 128, 3, 1),
    ("conv2_2", 128, 128, 3, 1),
    ("conv3_1", 128, 256, 3, 1),
    ("conv3_2", 256, 256, 3, 1),
    ("conv3_3", 256, 256, 3, 1),
    ("conv4_1", 256, 512, 3, 1),
    ("conv4_2", 512, 512, 3, 1),
    ("conv4_3", 512, 512, 3, 1),
    ("conv5_1", 512, 512, 3, 1),
    ("conv5_2", 512, 512, 3, 1),
    ("conv5_3", 512, 512, 3, 1),
    ("fc6", 512, 4096, 7, 0),
    ("fc7", 4096, 4096, 1, 0),
]
PAD = {name: pad for name, _, _, _, pad in CONV_CFG}
SCORE_CFG = [("score_fr", 4096), ("score_pool3", 256), ("score_pool4", 512)]


def init_params(key, n_class=N_CLASS):
    params = {}

    def nk():
        nonlocal key
        key, sub = jax.random.split(key)
        return sub

    for name, cin, cout, k, _pad in CONV_CFG:
        fan_in = cin * k * k
        params[name] = {
            "w": jax.random.normal(nk(), (cout, cin, k, k), jnp.float32)
                 * np.sqrt(2.0 / fan_in),
            "b": 0.01 * jax.random.normal(nk(), (cout,), jnp.float32),
            "gamma": 1.0 + 0.1 * jax.random.normal(nk(), (cout,), jnp.float32),
            "beta": 0.05 * jax.random.normal(nk(), (cout,), jnp.float32),
            "mean": 0.05 * jax.random.normal(nk(), (cout,), jnp.float32),
            "var": 0.9 + 0.2 * jax.random.uniform(nk(), (cout,), jnp.float32),
        }
    for name, cin in SCORE_CFG:
        params[name] = {
            "w": jax.random.normal(nk(), (n_class, cin, 1, 1), jnp.float32)
                 * np.sqrt(1.0 / cin),
            "b": 0.01 * jax.random.normal(nk(), (n_class,), jnp.float32),
        }
    return params


def _conv_bn_relu(params, h, name):
    p = params[name]
    bn = (p["gamma"], p["beta"], p["mean"], p["var"])
    kh = p["w"].shape[2]
    cin = p["w"].shape[1]
    if kh == 3 and cin > 1:
        return conv3x3_band(h, p["w"], p["b"], PAD[name], bn=bn, relu=True)
    return conv2d_gemm(h, p["w"], p["b"], PAD[name], bn=bn, relu=True)


def _score(params, h, name):
    p = params[name]
    return conv2d_gemm(h, p["w"], p["b"], 0, bn=None, relu=False,
                       out_dtype=jnp.float32)


def fcn8s_forward(params, x_nchw):
    H, W = x_nchw.shape[2], x_nchw.shape[3]
    h = jnp.transpose(x_nchw, (0, 2, 3, 1))  # NCHW -> NHWC

    h = _conv_bn_relu(params, h, "conv1_1")
    h = _conv_bn_relu(params, h, "conv1_2")
    h = maxpool2x2_ceil(h)
    h = _conv_bn_relu(params, h, "conv2_1")
    h = _conv_bn_relu(params, h, "conv2_2")
    h = maxpool2x2_ceil(h)
    h = _conv_bn_relu(params, h, "conv3_1")
    h = _conv_bn_relu(params, h, "conv3_2")
    h = _conv_bn_relu(params, h, "conv3_3")
    h = maxpool2x2_ceil(h)
    pool3 = h
    h = _conv_bn_relu(params, h, "conv4_1")
    h = _conv_bn_relu(params, h, "conv4_2")
    h = _conv_bn_relu(params, h, "conv4_3")
    h = maxpool2x2_ceil(h)
    pool4 = h
    h = _conv_bn_relu(params, h, "conv5_1")
    h = _conv_bn_relu(params, h, "conv5_2")
    h = _conv_bn_relu(params, h, "conv5_3")
    h = maxpool2x2_ceil(h)
    h = _conv_bn_relu(params, h, "fc6")   # drop6: identity (eval)
    h = _conv_bn_relu(params, h, "fc7")   # drop7: identity (eval)

    # ---- FCN-8s skip head ----
    h = _score(params, h, "score_fr")
    upscore2 = bilinear_upsample(h, 4, 2)
    sp4 = _score(params, pool4, "score_pool4")
    sp4c = sp4[:, 5:5 + upscore2.shape[1], 5:5 + upscore2.shape[2], :]
    h = upscore2 + sp4c
    upscore_pool4 = bilinear_upsample(h, 4, 2)
    sp3 = _score(params, pool3, "score_pool3")
    sp3c = sp3[:, 9:9 + upscore_pool4.shape[1], 9:9 + upscore_pool4.shape[2], :]
    h = upscore_pool4 + sp3c
    h = bilinear_upsample(h, 16, 8)
    h = h[:, 31:31 + H, 31:31 + W, :]
    return jnp.transpose(h, (0, 3, 1, 2))  # -> NCHW


if __name__ == "__main__":
    # --- spot-check the new band-conv kernel against an XLA reference (loose bf16 tol) ---
    kx, kwk, kb = jax.random.split(jax.random.PRNGKey(42), 3)
    xc = jnp.maximum(jax.random.normal(kx, (2, 24, 20, 64), jnp.float32), 0.0)
    wc = 0.1 * jax.random.normal(kwk, (128, 64, 3, 3), jnp.float32)
    bc = 0.1 * jax.random.normal(kb, (128,), jnp.float32)
    ref = lax.conv_general_dilated(
        xc.astype(jnp.bfloat16).astype(jnp.float32),
        jnp.transpose(wc, (2, 3, 1, 0)).astype(jnp.bfloat16).astype(jnp.float32),
        (1, 1), ((1, 1), (1, 1)),
        dimension_numbers=("NHWC", "HWIO", "NHWC")) + bc
    for mr in (None, 7):   # single-band and multi-band paths
        got = conv3x3_band(xc, wc, bc, 1, bn=None, relu=False, max_rows=mr)
        got = got.astype(jnp.float32)
        assert bool(jnp.allclose(got, ref, atol=1e-1, rtol=1e-1)), \
            float(jnp.max(jnp.abs(got - ref)))

    # --- spot-check the pooling kernel (odd H/W, ceil_mode) ---
    xpl = jnp.maximum(jax.random.normal(jax.random.PRNGKey(7), (2, 13, 11, 128),
                                        jnp.float32), 0.0).astype(jnp.bfloat16)
    pref = lax.reduce_window(xpl, jnp.array(-jnp.inf, xpl.dtype), lax.max,
                             (1, 2, 2, 1), (1, 2, 2, 1),
                             ((0, 0), (0, 1), (0, 1), (0, 0)))
    assert bool(jnp.array_equal(maxpool2x2_ceil(xpl), pref))

    # --- full forward ---
    root = jax.random.PRNGKey(0)
    pkey, xkey = jax.random.split(root)
    params = init_params(pkey)
    x = jax.random.normal(xkey, (2, 1, 16, 16), jnp.float32)  # 1 input channel (conv1_1)
    fwd = jax.jit(fcn8s_forward)
    out = fwd(params, x)
    jax.block_until_ready(out)
    assert out.shape == (2, N_CLASS, 16, 16), out.shape
    assert bool(jnp.all(jnp.isfinite(out)))
    print("KERNEL_OK")
</pallas_src>

<mosaic_0001>
module attributes {stable_mosaic.version = 11 : i64} {
  func.func @_conv_band_kernel(%arg0: i32, %arg1: i32, %arg2: memref<1x1x648x64xbf16, #tpu.memory_space<vmem>>, %arg3: memref<9x64x128xbf16, #tpu.memory_space<vmem>>, %arg4: memref<1x128xf32, #tpu.memory_space<vmem>>, %arg5: memref<1x128xf32, #tpu.memory_space<vmem>>, %arg6: memref<1x1x576x128xbf16, #tpu.memory_space<vmem>>) attributes {dimension_semantics = [#tpu.dimension_semantics<parallel>, #tpu.dimension_semantics<parallel>], iteration_bounds = array<i64: 2, 1>, scalar_prefetch = 0 : i64, scratch_operands = 0 : i64, tpu.core_type = #tpu.core_type<tc>, window_params = [{transform_indices = @transform_0, window_bounds = array<i64: 1, 1, 648, 64>}, {pipeline_mode = #tpu.pipeline_mode<synchronous>, transform_indices = @transform_1, window_bounds = array<i64: 9, 64, 128>}, {pipeline_mode = #tpu.pipeline_mode<synchronous>, transform_indices = @transform_2, window_bounds = array<i64: 1, 128>}, {pipeline_mode = #tpu.pipeline_mode<synchronous>, transform_indices = @transform_3, window_bounds = array<i64: 1, 128>}, {transform_indices = @transform_4, window_bounds = array<i64: 1, 1, 576, 128>}]} {
    %c0 = arith.constant 0 : index
    %c0_0 = arith.constant 0 : index
    %c0_1 = arith.constant 0 : index
    %c0_2 = arith.constant 0 : index
    %0 = vector.load %arg2[%c0, %c0_0, %c0_1, %c0_2] : memref<1x1x648x64xbf16, #tpu.memory_space<vmem>>, vector<1x1x576x64xbf16>
    %1 = vector.shape_cast %0 : vector<1x1x576x64xbf16> to vector<576x64xbf16>
    %c0_3 = arith.constant 0 : index
    %c0_4 = arith.constant 0 : index
    %c0_5 = arith.constant 0 : index
    %2 = vector.load %arg3[%c0_3, %c0_4, %c0_5] : memref<9x64x128xbf16, #tpu.memory_space<vmem>>, vector<1x64x128xbf16>
    %3 = vector.shape_cast %2 : vector<1x64x128xbf16> to vector<64x128xbf16>
    %cst = arith.constant dense<0.000000e+00> : vector<576x128xf32>
    %4 = tpu.matmul %1, %3, %cst {dimension_numbers = #tpu.dot_dimension_numbers<[1], [0], [0], [1], [0, 0, 1, 1], [], []>} : vector<576x64xbf16>, vector<64x128xbf16>, vector<576x128xf32> -> vector<576x128xf32>
    %c0_6 = arith.constant 0 : index
    %c0_7 = arith.constant 0 : index
    %c1 = arith.constant 1 : index
    %c0_8 = arith.constant 0 : index
    %5 = vector.load %arg2[%c0_6, %c0_7, %c1, %c0_8] : memref<1x1x648x64xbf16, #tpu.memory_space<vmem>>, vector<1x1x576x64xbf16>
    %6 = vector.shape_cast %5 : vector<1x1x576x64xbf16> to vector<576x64xbf16>
    %c1_9 = arith.constant 1 : index
    %c0_10 = arith.constant 0 : index
    %c0_11 = arith.constant 0 : index
    %7 = vector.load %arg3[%c1_9, %c0_10, %c0_11] : memref<9x64x128xbf16, #tpu.memory_space<vmem>>, vector<1x64x128xbf16>
    %8 = vector.shape_cast %7 : vector<1x64x128xbf16> to vector<64x128xbf16>
    %cst_12 = arith.constant dense<0.000000e+00> : vector<576x128xf32>
    %9 = tpu.matmul %6, %8, %cst_12 {dimension_numbers = #tpu.dot_dimension_numbers<[1], [0], [0], [1], [0, 0, 1, 1], [], []>} : vector<576x64xbf16>, vector<64x128xbf16>, vector<576x128xf32> -> vector<576x128xf32>
    %10 = arith.addf %4, %9 : vector<576x128xf32>
    %c0_13 = arith.constant 0 : index
    %c0_14 = arith.constant 0 : index
    %c2 = arith.constant 2 : index
    %c0_15 = arith.constant 0 : index
    %11 = vector.load %arg2[%c0_13, %c0_14, %c2, %c0_15] : memref<1x1x648x64xbf16, #tpu.memory_space<vmem>>, vector<1x1x576x64xbf16>
    %12 = vector.shape_cast %11 : vector<1x1x576x64xbf16> to vector<576x64xbf16>
    %c2_16 = arith.constant 2 : index
    %c0_17 = arith.constant 0 : index
    %c0_18 = arith.constant 0 : index
    %13 = vector.load %arg3[%c2_16, %c0_17, %c0_18] : memref<9x64x128xbf16, #tpu.memory_space<vmem>>, vector<1x64x128xbf16>
    %14 = vector.shape_cast %13 : vector<1x64x128xbf16> to vector<64x128xbf16>
    %cst_19 = arith.constant dense<0.000000e+00> : vector<576x128xf32>
    %15 = tpu.matmul %12, %14, %cst_19 {dimension_numbers = #tpu.dot_dimension_numbers<[1], [0], [0], [1], [0, 0, 1, 1], [], []>} : vector<576x64xbf16>, vector<64x128xbf16>, vector<576x128xf32> -> vector<576x128xf32>
    %16 = arith.addf %10, %15 : vector<576x128xf32>
    %c0_20 = arith.constant 0 : index
    %c0_21 = arith.constant 0 : index
    %c24 = arith.constant 24 : index
    %c0_22 = arith.constant 0 : index
    %17 = vector.load %arg2[%c0_20, %c0_21, %c24, %c0_22] : memref<1x1x648x64xbf16, #tpu.memory_space<vmem>>, vector<1x1x576x64xbf16>
    %18 = vector.shape_cast %17 : vector<1x1x576x64xbf16> to vector<576x64xbf16>
    %c3 = arith.constant 3 : index
    %c0_23 = arith.constant 0 : index
    %c0_24 = arith.constant 0 : index
    %19 = vector.load %arg3[%c3, %c0_23, %c0_24] : memref<9x64x128xbf16, #tpu.memory_space<vmem>>, vector<1x64x128xbf16>
    %20 = vector.shape_cast %19 : vector<1x64x128xbf16> to vector<64x128xbf16>
    %cst_25 = arith.constant dense<0.000000e+00> : vector<576x128xf32>
    %21 = tpu.matmul %18, %20, %cst_25 {dimension_numbers = #tpu.dot_dimension_numbers<[1], [0], [0], [1], [0, 0, 1, 1], [], []>} : vector<576x64xbf16>, vector<64x128xbf16>, vector<576x128xf32> -> vector<576x128xf32>
    %22 = arith.addf %16, %21 : vector<576x128xf32>
    %c0_26 = arith.constant 0 : index
    %c0_27 = arith.constant 0 : index
    %c25 = arith.constant 25 : index
    %c0_28 = arith.constant 0 : index
    %23 = vector.load %arg2[%c0_26, %c0_27, %c25, %c0_28] : memref<1x1x648x64xbf16, #tpu.memory_space<vmem>>, vector<1x1x576x64xbf16>
    %24 = vector.shape_cast %23 : vector<1x1x576x64xbf16> to vector<576x64xbf16>
    %c4 = arith.constant 4 : index
    %c0_29 = arith.constant 0 : index
    %c0_30 = arith.constant 0 : index
    %25 = vector.load %arg3[%c4, %c0_29, %c0_30] : memref<9x64x128xbf16, #tpu.memory_space<vmem>>, vector<1x64x128xbf16>
    %26 = vector.shape_cast %25 : vector<1x64x128xbf16> to vector<64x128xbf16>
    %cst_31 = arith.constant dense<0.000000e+00> : vector<576x128xf32>
    %27 = tpu.matmul %24, %26, %cst_31 {dimension_numbers = #tpu.dot_dimension_numbers<[1], [0], [0], [1], [0, 0, 1, 1], [], []>} : vector<576x64xbf16>, vector<64x128xbf16>, vector<576x128xf32> -> vector<576x128xf32>
    %28 = arith.addf %22, %27 : vector<576x128xf32>
    %c0_32 = arith.constant 0 : index
    %c0_33 = arith.constant 0 : index
    %c26 = arith.constant 26 : index
    %c0_34 = arith.constant 0 : index
    %29 = vector.load %arg2[%c0_32, %c0_33, %c26, %c0_34] : memref<1x1x648x64xbf16, #tpu.memory_space<vmem>>, vector<1x1x576x64xbf16>
    %30 = vector.shape_cast %29 : vector<1x1x576x64xbf16> to vector<576x64xbf16>
    %c5 = arith.constant 5 : index
    %c0_35 = arith.constant 0 : index
    %c0_36 = arith.constant 0 : index
    %31 = vector.load %arg3[%c5, %c0_35, %c0_36] : memref<9x64x128xbf16, #tpu.memory_space<vmem>>, vector<1x64x128xbf16>
    %32 = vector.shape_cast %31 : vector<1x64x128xbf16> to vector<64x128xbf16>
    %cst_37 = arith.constant dense<0.000000e+00> : vector<576x128xf32>
    %33 = tpu.matmul %30, %32, %cst_37 {dimension_numbers = #tpu.dot_dimension_numbers<[1], [0], [0], [1], [0, 0, 1, 1], [], []>} : vector<576x64xbf16>, vector<64x128xbf16>, vector<576x128xf32> -> vector<576x128xf32>
    %34 = arith.addf %28, %33 : vector<576x128xf32>
    %c0_38 = arith.constant 0 : index
    %c0_39 = arith.constant 0 : index
    %c48 = arith.constant 48 : index
    %c0_40 = arith.constant 0 : index
    %35 = vector.load %arg2[%c0_38, %c0_39, %c48, %c0_40] : memref<1x1x648x64xbf16, #tpu.memory_space<vmem>>, vector<1x1x576x64xbf16>
    %36 = vector.shape_cast %35 : vector<1x1x576x64xbf16> to vector<576x64xbf16>
    %c6 = arith.constant 6 : index
    %c0_41 = arith.constant 0 : index
    %c0_42 = arith.constant 0 : index
    %37 = vector.load %arg3[%c6, %c0_41, %c0_42] : memref<9x64x128xbf16, #tpu.memory_space<vmem>>, vector<1x64x128xbf16>
    %38 = vector.shape_cast %37 : vector<1x64x128xbf16> to vector<64x128xbf16>
    %cst_43 = arith.constant dense<0.000000e+00> : vector<576x128xf32>
    %39 = tpu.matmul %36, %38, %cst_43 {dimension_numbers = #tpu.dot_dimension_numbers<[1], [0], [0], [1], [0, 0, 1, 1], [], []>} : vector<576x64xbf16>, vector<64x128xbf16>, vector<576x128xf32> -> vector<576x128xf32>
    %40 = arith.addf %34, %39 : vector<576x128xf32>
    %c0_44 = arith.constant 0 : index
    %c0_45 = arith.constant 0 : index
    %c49 = arith.constant 49 : index
    %c0_46 = arith.constant 0 : index
    %41 = vector.load %arg2[%c0_44, %c0_45, %c49, %c0_46] : memref<1x1x648x64xbf16, #tpu.memory_space<vmem>>, vector<1x1x576x64xbf16>
    %42 = vector.shape_cast %41 : vector<1x1x576x64xbf16> to vector<576x64xbf16>
    %c7 = arith.constant 7 : index
    %c0_47 = arith.constant 0 : index
    %c0_48 = arith.constant 0 : index
    %43 = vector.load %arg3[%c7, %c0_47, %c0_48] : memref<9x64x128xbf16, #tpu.memory_space<vmem>>, vector<1x64x128xbf16>
    %44 = vector.shape_cast %43 : vector<1x64x128xbf16> to vector<64x128xbf16>
    %cst_49 = arith.constant dense<0.000000e+00> : vector<576x128xf32>
    %45 = tpu.matmul %42, %44, %cst_49 {dimension_numbers = #tpu.dot_dimension_numbers<[1], [0], [0], [1], [0, 0, 1, 1], [], []>} : vector<576x64xbf16>, vector<64x128xbf16>, vector<576x128xf32> -> vector<576x128xf32>
    %46 = arith.addf %40, %45 : vector<576x128xf32>
    %c0_50 = arith.constant 0 : index
    %c0_51 = arith.constant 0 : index
    %c50 = arith.constant 50 : index
    %c0_52 = arith.constant 0 : index
    %47 = vector.load %arg2[%c0_50, %c0_51, %c50, %c0_52] : memref<1x1x648x64xbf16, #tpu.memory_space<vmem>>, vector<1x1x576x64xbf16>
    %48 = vector.shape_cast %47 : vector<1x1x576x64xbf16> to vector<576x64xbf16>
    %c8 = arith.constant 8 : index
    %c0_53 = arith.constant 0 : index
    %c0_54 = arith.constant 0 : index
    %49 = vector.load %arg3[%c8, %c0_53, %c0_54] : memref<9x64x128xbf16, #tpu.memory_space<vmem>>, vector<1x64x128xbf16>
    %50 = vector.shape_cast %49 : vector<1x64x128xbf16> to vector<64x128xbf16>
    %cst_55 = arith.constant dense<0.000000e+00> : vector<576x128xf32>
    %51 = tpu.matmul %48, %50, %cst_55 {dimension_numbers = #tpu.dot_dimension_numbers<[1], [0], [0], [1], [0, 0, 1, 1], [], []>} : vector<576x64xbf16>, vector<64x128xbf16>, vector<576x128xf32> -> vector<576x128xf32>
    %52 = arith.addf %46, %51 : vector<576x128xf32>
    %c0_56 = arith.constant 0 : index
    %c0_57 = arith.constant 0 : index
    %53 = vector.load %arg4[%c0_56, %c0_57] : memref<1x128xf32, #tpu.memory_space<vmem>>, vector<1x128xf32>
    %54 = vector.broadcast %53 : vector<1x128xf32> to vector<576x128xf32>
    %55 = arith.mulf %52, %54 : vector<576x128xf32>
    %c0_58 = arith.constant 0 : index
    %c0_59 = arith.constant 0 : index
    %56 = vector.load %arg5[%c0_58, %c0_59] : memref<1x128xf32, #tpu.memory_space<vmem>>, vector<1x128xf32>
    %57 = vector.broadcast %56 : vector<1x128xf32> to vector<576x128xf32>
    %58 = arith.addf %55, %57 : vector<576x128xf32>
    %59 = arith.truncf %58 : vector<576x128xf32> to vector<576x128xbf16>
    %c0_60 = arith.constant 0 : index
    %c0_61 = arith.constant 0 : index
    %c0_62 = arith.constant 0 : index
    %c0_63 = arith.constant 0 : index
    %60 = vector.load %arg6[%c0_60, %c0_61, %c0_62, %c0_63] : memref<1x1x576x128xbf16, #tpu.memory_space<vmem>>, vector<1x1x576x128xbf16>
    %61 = vector.shape_cast %60 : vector<1x1x576x128xbf16> to vector<576x128xbf16>
    %62 = vector.shape_cast %59 : vector<576x128xbf16> to vector<1x1x576x128xbf16>
    tpu.vector_store %arg6[%c0_60, %c0_61, %c0_62, %c0_63], %62 {strides = array<i32>} : memref<1x1x576x128xbf16, #tpu.memory_space<vmem>>, vector<1x1x576x128xbf16>,
    return
  }
  func.func @transform_0(%arg0: i32, %arg1: i32) -> (i32, i32, i32, i32) {
    %c0_i32 = arith.constant 0 : i32
    %c0_i32_0 = arith.constant 0 : i32
    %c0_i32_1 = arith.constant 0 : i32
    return %arg0, %arg1, %c0_i32, %c0_i32_0 : i32, i32, i32, i32
  }
  func.func @transform_1(%arg0: i32, %arg1: i32) -> (i32, i32, i32) {
    %c0_i32 = arith.constant 0 : i32
    %c0_i32_0 = arith.constant 0 : i32
    %c0_i32_1 = arith.constant 0 : i32
    %c0_i32_2 = arith.constant 0 : i32
    return %c0_i32, %c0_i32_0, %c0_i32_1 : i32, i32, i32
  }
  func.func @transform_2(%arg0: i32, %arg1: i32) -> (i32, i32) {
    %c0_i32 = arith.constant 0 : i32
    %c0_i32_0 = arith.constant 0 : i32
    %c0_i32_1 = arith.constant 0 : i32
    return %c0_i32, %c0_i32_0 : i32, i32
  }
  func.func @transform_3(%arg0: i32, %arg1: i32) -> (i32, i32) {
    %c0_i32 = arith.constant 0 : i32
    %c0_i32_0 = arith.constant 0 : i32
    %c0_i32_1 = arith.constant 0 : i32
    return %c0_i32, %c0_i32_0 : i32, i32
  }
  func.func @transform_4(%arg0: i32, %arg1: i32) -> (i32, i32, i32, i32) {
    %c0_i32 = arith.constant 0 : i32
    %c0_i32_0 = arith.constant 0 : i32
    %c0_i32_1 = arith.constant 0 : i32
    return %arg0, %arg1, %c0_i32, %c0_i32_0 : i32, i32, i32, i32
  }
}

</mosaic_0001>

<bundles_post_ra>
// kernel: tpu_custom_call.1
= control target key start
LH: loop header
LB: loop body
LE: loop exit
PB: predicated region body
PF: predicated region fallthrough
CT: control target
= control target key end

     0   :  { %9 = vsyncpa [#allocation3], 0  ;;  %s12764_s0 = inlined_call_operand.vmem [shape: bf16[2,1,648,64], index: 0, kind: input, shape index: {}]   ;;  %s12765_s1 = inlined_call_operand.vmem [shape: bf16[9,64,128], index: 1, kind: input, shape index: {}]   ;;  %s12766_s2 = inlined_call_operand.vmem [shape: f32[1,128], index: 2, kind: input, shape index: {}]   ;;  %s12767_s3 = inlined_call_operand.vmem [shape: f32[1,128], index: 3, kind: input, shape index: {}]   ;;  %s12768_s4 = inlined_call_operand.hbm [shape: bf16[2,1,576,128], index: 4, kind: output, shape index: {}]  }
   0x1   :  { %11 = vsyncpa [#allocation3 + $0x1], 0  ;;  %s10942_s15 = smov 0   ;;  %s10944_s16 = smov 0  }
   0x2   :  { %s10946_s17 = smov 0   ;;  %s10948_s18 = smov 0  }
   0x3   :  { %s10950_s19 = smov 0   ;;  %s10952_s20 = smov 0  }
   0x4 LB: > { %s7848_s21 = sadd.s32 4294967295, %s10912_s20   ;;  %s7849_s22 = sadd.s32 4294967294, %s10912_s20   ;;  %s10912_s20 = sphi %s10952_s20, %s17_s20   ;;  %s10908_s19 = sphi %s10950_s19, %s12775_s19   ;;  %s10904_s18 = sphi %s10948_s18, %s12774_s18   ;;  %s10900_s17 = sphi %s10946_s17, %s12773_s17   ;;  %s10896_s16 = sphi %s10944_s16, %s12772_s16   ;;  %s10892_s15 = sphi %s10942_s15, %s12771_s15  }
   0x5   : > { %s29_s23 = sadd.s32 1, %s10908_s19  ;;  %s129_s24 = sadd.s32 1, %s10900_s17 }
   0x6   : > { %p31_p0 = scmp.ge.s32.totalorder %s29_s23, 2  ;;  %p139_p1 = scmp.ne.s32.totalorder %s10900_s17, %s10896_s16 }
   0x7   : > { %p140_p2 = scmp.eq.s32.totalorder %s7848_s21, 1  ;;  %p145_p3 = scmp.ne.s32.totalorder %s10896_s16, %s10892_s15 }
   0x8   : > { %s12777_s23 = smov (%p31_p0, %s29_s23), 0  ;;  %p146_p5 = scmp.eq.s32.totalorder %s7849_s22, 1 }
   0x9   : > { %p10982_p4 = por %p140_p2, %p139_p1  ;;  %s124_s26 = ssub.s32 %s10908_s19, %s12777_s23 }
   0xa   : > { %p7852_p6 = scmp.ge.s32.totalorder %s10912_s20, 1  ;;  %p127_p7 = scmp.eq.s32.totalorder %s124_s26, 0 }
   0xb   : > { %p10989_p8 = por %p146_p5, %p145_p3  ;;  %p185_p9 = scmp.lt.s32.totalorder %s10912_s20, 3 }
   0xc   : > { %s10995_s28 = scalar_select %p127_p7, %s10900_s17, %s129_s24  }
   0xd   : > { %p186_p10 = pnand %p7852_p6, %p185_p9 }
   0xe   : > { %v10552_v0 = vld [vmem:[%s12765_s1 + $0x20] sm:$0xff] (!%p186_p10)   ;;  %p215_p11 = scmp.lt.s32.totalorder (!%p186_p10), %s10904_s18, 1  ;;  %v10554_v2 = vld [vmem:[%s12765_s1 + $0x28] sm:$0xff] (!%p186_p10)   ;;  %v10556_v4 = vld [vmem:[%s12765_s1 + $0x30] sm:$0xff] (!%p186_p10)   ;;  %vm815_vm0 = vcmask (!%p186_p10), 523264   ;;  %vm1675_vm2 = vcmask (!%p186_p10), 1046528  }
   0xf   : > { %189 = sbr.rel (%p186_p10) target bundleno = 918 (0x396), region = 36  ;;  %v10553_v1 = vld [vmem:[%s12765_s1 + $0x80] sm:$0xff] (!%p186_p10)   ;;  %9188 = vmatprep.subr.bf16.mxu1 (!%p186_p10), %v10552_v0  ;;  %v10555_v3 = vld [vmem:[%s12765_s1 + $0x88] sm:$0xff] (!%p186_p10)   ;;  %v10557_v5 = vld [vmem:[%s12765_s1 + $0x90] sm:$0xff] (!%p186_p10)   ;;  %vm498_vm1 = vsmask.f32 (!%p186_p10), 7424 }
  0x10   : > { %9508 = vmatprep.subr.bf16.mxu0 (!%p186_p10), %v10553_v1  ;;  %9189 = vmatpush3.bf16.msra.mxu1 (!%p186_p10), %v10552_v0  ;;  %v10558_v6 = vld [vmem:[%s12765_s1 + $0x38] sm:$0xff] (!%p186_p10)   ;;  %v10565_v25 = vld [vmem:[%s12765_s1] sm:$0xff] (!%p186_p10)   ;;  %s212_s13 = sand.u32 (!%p186_p10), 1, %s10896_s16   ;;  %s10494_s26 = smul.u32 (!%p186_p10), 4608, %s10904_s18 }
  0x11   : > { %9509 = vmatpush3.bf16.msra.mxu0 (!%p186_p10), %v10553_v1  ;;  %9190 = vmatprep.subr.bf16.mxu1 (!%p186_p10), %v10554_v2  ;;  %v10559_v7 = vld [vmem:[%s12765_s1 + $0x98] sm:$0xff] (!%p186_p10)   ;;  %v10567_v33 = vld [vmem:[%s12765_s1 + $0xa0] sm:$0xff] (!%p186_p10)   ;;  %s10492_s22 = smul.u32 (!%p186_p10), 288, %s212_s13 }
  0x12   : > { %9510 = vmatprep.subr.bf16.mxu0 (!%p186_p10), %v10555_v3  ;;  %s12710_s7 = scalar_lea.hbm (!%p186_p10), %s12768_s4, %s10494_s26 }
  0x13   : > { %s12504_s24 = scalar_lea.vmem (!%p186_p10), [#allocation2], %s10492_s22 }
  0x14   : > { %9191 = vmatpush3.bf16.msra.mxu1 (!%p186_p10), %v10554_v2  ;;  %s7766_s29 = sshll.u32 (!%p186_p10), %s12504_s24, 4  ;;  %s12712_s29 = int_to_ptr.vmem [resolvable:$true] %s7766_s29 }
  0x15   : > { %9511 = vmatpush3.bf16.msra.mxu0 (!%p186_p10), %v10555_v3  ;;  %9192 = vmatprep.subr.bf16.mxu1 (!%p186_p10), %v10556_v4  ;;  %s10834_s8 = scalar_lea.vmem (!%p186_p10), %s12712_s29, 4608 }
  0x16   : > { %s216_s9 = scalar_select %p215_p11, %s10904_s18, 1  ;;  %9512 = vmatprep.subr.bf16.mxu0 %v10557_v5 }
  0x17   : > { %s12718_s18 = scalar_lea.sflag [#allocation3], %s212_s13  ;;  %p10835_p12 = scmp.ne.s32.totalorder %s12712_s29, %s10834_s8 }
  0x18   : > { %s10493_s14 = smul.u32 324, %s216_s9  ;;  %9193 = vmatpush3.bf16.msra.mxu1 %v10556_v4  ;;  %s10914_s9 = smov [#allocation2]  }
  0x19   : > { %9513 = vmatpush3.bf16.msra.mxu0 %v10557_v5  ;;  %9194 = vmatprep.subr.bf16.mxu1 %v10558_v6  ;;  %p10836_p13 = pnand %p10835_p12, %p10982_p4  ;;  %s10838_s10 = sshll.u32 %s10914_s9, 4  ;;  %s10839_s10 = int_to_ptr.vmem [resolvable:$false] %s10838_s10 }
  0x1a   : > { %s11023_s5 = scalar_lea.vmem %s12764_s0, %s10493_s14  ;;  %9514 = vmatprep.subr.bf16.mxu0 %v10559_v7  ;;  %s10840_s11 = scalar_lea.vmem %s10839_s10, 9216 }
  0x1b   : > { %v225_v8 = vld [vmem:[%s11023_s5] sm:$0xf]  ;;  %v226_v9 = vld [vmem:[%s11023_s5 + $0x4] sm:$0xf]  ;;  %v10561_v11 = vld [vmem:[%s11023_s5 + $0x8] sm:$0xff]   ;;  %p10837_p0 = pneg %p10836_p13  ;;  %p10841_p1 = scmp.lt.s32.totalorder %s12712_s29, %s10839_s10 }
  0x1c   : > { %v11030_v10 = vcombine.low %v225_v8, %v226_v9  ;;  %v11034_v12 = vld [vmem:[%s11023_s5 + $0x14] sm:$0xff]   ;;  %v3060_v13 = vld [vmem:[%s11023_s5 + $0xc] sm:$0xf]  ;;  %v11038_v14 = vld [vmem:[%s11023_s5 + $0x10] sm:$0xf]  ;;  %v507_v17 = vshll.u32 %v10561_v11, 16  ;;  %9195 = vmatpush3.bf16.msra.mxu1 %v10558_v6  ;;  %p10842_p2 = scmp.lt.s32.totalorder %s10840_s11, %s10834_s8 }
  0x1d   : > { %v511_v18 = vshrl.u32 %v10561_v11, 16  ;;  %v8120_v19 = vcombine.low %v3060_v13, %v11038_v14  ;;  %v3333_v20 = vshll.u32 %v11034_v12, 16  ;;  %v3337_v21 = vshrl.u32 %v11034_v12, 16  ;;  %v10564_v24 = vld [vmem:[%s11023_s5 + $0x10] sm:$0xff]   ;;  %v11050_v29 = vld [vmem:[%s11023_s5 + $0x1c] sm:$0xff]   ;;  %9515 = vmatpush3.bf16.msra.mxu0 %v10559_v7  ;;  %9268 = vmatprep.subr.bf16.mxu1 %v10565_v25  ;;  %v11061_v45 = vld [vmem:[%s11023_s5 + $0x24] sm:$0xff]  }
  0x1e   : > { %v500_v15 = vshrl.u32 %v11030_v10, 16  ;;  %v502_v16 = vshll.u32 %v11030_v10, 16  ;;  %v509_v23 = vrot.slane %v507_v17, 1  ;;  %v515_v32 = vshll.u32 %v10564_v24, 16  ;;  %9588 = vmatprep.subr.bf16.mxu0 %v10567_v33  ;;  %v10568_v39 = vld [vmem:[%s11023_s5 + $0x18] sm:$0xff]   ;;  %v10570_v47 = vld [vmem:[%s11023_s5 + $0x20] sm:$0xff]   ;;  %p10843_p3 = por %p10842_p2, %p10841_p1 }
  0x1f   : > { %v3326_v26 = vshrl.u32 %v8120_v19, 16  ;;  %v3328_v27 = vshll.u32 %v8120_v19, 16  ;;  %v3335_v28 = vrot.slane %v3333_v20, 1  ;;  %v3341_v36 = vshll.u32 %v11050_v29, 16  ;;  %v11069_v52 = vld [vmem:[%s11023_s5 + $0x2c] sm:$0xff]   ;;  %v11080_v3 = vld [vmem:[%s11023_s5 + $0x34] sm:$0xff]  }
  0x20   : > { %v504_v22 = vrot.slane %v502_v16, 1  ;;  %v513_v31 = vor.u32 %v511_v18, %v509_v23  ;;  %v517_v38 = vrot.slane %v515_v32, 1  ;;  %v519_v42 = vshrl.u32 %v10564_v24, 16  ;;  %v10572_v57 = vld [vmem:[%s11023_s5 + $0x28] sm:$0xff]   ;;  %v10574_v5 = vld [vmem:[%s11023_s5 + $0x30] sm:$0xff]   ;;  %v11087_v11 = vld [vmem:[%s11023_s5 + $0x3c] sm:$0xff]   ;;  %p10844_p5 = pnand %p10843_p3, %p10837_p0 }
  0x21   : > { %v3330_v34 = vrot.slane %v3328_v27, 1  ;;  %v3339_v35 = vor.u32 %v3337_v21, %v3335_v28  ;;  %v3343_v41 = vrot.slane %v3341_v36, 1  ;;  %v523_v44 = vshll.u32 %v10568_v39, 16 }
  0x22   : > { %v505_v30 = vor.u32 %v504_v22, %v500_v15  ;;  %v518_v43 = vsel %vm498_vm1, %v513_v31, %v517_v38  ;;  %v3345_v46 = vshrl.u32 %v11050_v29, 16  ;;  %v521_v50 = vor.u32 %v519_v42, %v517_v38  ;;  %v10576_v22 = vld [vmem:[%s12765_s1 + $0xa8] sm:$0xff]   ;;  %v10579_v38 = vld [vmem:[%s11023_s5 + $0x40] sm:$0xff]  }
  0x23   : > { %v3331_v40 = vor.u32 %v3330_v34, %v3326_v26  ;;  %v3344_v49 = vsel %vm498_vm1, %v3339_v35, %v3343_v41  ;;  %v527_v51 = vshrl.u32 %v10568_v39, 16  ;;  %v525_v53 = vrot.slane %v523_v44, 1  ;;  %v11102_v31 = vld [vmem:[%s11023_s5 + $0x44] sm:$0xff]  }
  0x24   : > { %v510_v37 = vsel %vm498_vm1, %v505_v30, %v509_v23  ;;  %v3347_v54 = vor.u32 %v3345_v46, %v3343_v41  ;;  %v3349_v55 = vshll.u32 %v11061_v45, 16  ;;  %v531_v56 = vshll.u32 %v10570_v47, 16  ;;  %v11112_v46 = vld [vmem:[%s11023_s5 + $0x4c] sm:$0xff]  }
  0x25   : > { %9196 = vmatprep.mubr.msk.bf16.mxu1 %vm815_vm0, %v510_v37  ;;  %v3336_v48 = vsel %vm498_vm1, %v3331_v40, %v3335_v28  ;;  %v3353_v58 = vshrl.u32 %v11061_v45, 16  ;;  %v3357_v59 = vshll.u32 %v11069_v52, 16  ;;  %v526_v60 = vsel %vm498_vm1, %v521_v50, %v525_v53 }
  0x26   : > { %9197 = vmatmul.mubr.msk.bf16.vlgmr.msra.gmra.mrb[0].mxu1 %vm815_vm0, %v518_v43  ;;  %9516 = vmatprep.mubr.msk.bf16.mxu0 %vm815_vm0, %v3336_v48  ;;  %v3351_v61 = vrot.slane %v3349_v55, 1  ;;  %v529_v62 = vor.u32 %v527_v51, %v525_v53  ;;  %v533_v63 = vrot.slane %v531_v56, 1  ;;  %v535_v1 = vshrl.u32 %v10570_v47, 16  ;;  %v11120_v55 = vld [vmem:[%s11023_s5 + $0x54] sm:$0xff]  }
  0x27   : > { %9269 = vmatpush3.bf16.msra.mxu1 %v10565_v25  ;;  %9517 = vmatmul.mubr.msk.bf16.vlgmr.msra.gmra.mrb[0].mxu0 %vm815_vm0, %v3344_v49  ;;  %v3359_v0 = vrot.slane %v3357_v59, 1  ;;  %v539_v2 = vshll.u32 %v10572_v57, 16  ;;  %v3361_v4 = vshrl.u32 %v11069_v52, 16  ;;  %v543_v9 = vshrl.u32 %v10572_v57, 16  ;;  %v10577_v25 = vld [vmem:[%s11023_s5 + $0x38] sm:$0xff]   ;;  %v10581_v49 = vld [vmem:[%s11023_s5 + $0x48] sm:$0xff]  }
  0x28   : > { %9589 = vmatpush3.bf16.msra.mxu0 %v10567_v33  ;;  %9200 = vmatprep.mubr.msk.bf16.mxu1 %vm815_vm0, %v526_v60  ;;  %v3352_v6 = vsel %vm498_vm1, %v3347_v54, %v3351_v61  ;;  %v534_v7 = vsel %vm498_vm1, %v529_v62, %v533_v63  ;;  %v3355_v8 = vor.u32 %v3353_v58, %v3351_v61  ;;  %v3365_v17 = vshll.u32 %v11080_v3, 16  ;;  %v10583_v56 = vld [vmem:[%s11023_s5 + $0x50] sm:$0xff]  }
  0x29   : > { %9520 = vmatprep.mubr.msk.bf16.mxu0 %vm815_vm0, %v3352_v6  ;;  %v537_v13 = vor.u32 %v535_v1, %v533_v63  ;;  %v541_v15 = vrot.slane %v539_v2, 1  ;;  %v3363_v16 = vor.u32 %v3361_v4, %v3359_v0  ;;  %v547_v19 = vshll.u32 %v10574_v5, 16  ;;  %9590 = vmatprep.subr.bf16.mxu0 %v10576_v22  ;;  %v11130_v1 = vld [vmem:[%s11023_s5 + $0x5c] sm:$0xff]   ;;  %v10585_v2 = vld [vmem:[%s12765_s1 + $0x8] sm:$0xff]   ;;  %v10586_v6 = vld [vmem:[%s12765_s1 + $0xb0] sm:$0xff]  }
  0x2a   : > { %v3360_v18 = vsel %vm498_vm1, %v3355_v8, %v3359_v0  ;;  %v3369_v20 = vshrl.u32 %v11080_v3, 16  ;;  %v3373_v21 = vshll.u32 %v11087_v11, 16  ;;  %v3367_v24 = vrot.slane %v3365_v17, 1  ;;  %9270 = vmatprep.subr.bf16.mxu1 %v10585_v2 }
  0x2b   : > { %v542_v23 = vsel %vm498_vm1, %v537_v13, %v541_v15  ;;  %v545_v26 = vor.u32 %v543_v9, %v541_v15  ;;  %v549_v27 = vrot.slane %v547_v19, 1  ;;  %v551_v30 = vshrl.u32 %v10574_v5, 16  ;;  %9271 = vmatpush3.bf16.msra.mxu1 %v10585_v2  ;;  %v11144_v19 = vld [vmem:[%s11023_s5 + $0x64] sm:$0xff]  }
  0x2c   : > { %v3375_v28 = vrot.slane %v3373_v21, 1  ;;  %v3368_v32 = vsel %vm498_vm1, %v3363_v16, %v3367_v24  ;;  %v555_v33 = vshll.u32 %v10577_v25, 16  ;;  %v3377_v34 = vshrl.u32 %v11087_v11, 16  ;;  %9591 = vmatpush3.bf16.msra.mxu0 %v10576_v22  ;;  %v10587_v16 = vld [vmem:[%s11023_s5 + $0x58] sm:$0xff]  }
  0x2d   : > { %v3371_v35 = vor.u32 %v3369_v20, %v3367_v24  ;;  %v553_v36 = vor.u32 %v551_v30, %v549_v27  ;;  %v3381_v37 = vshll.u32 %v11102_v31, 16  ;;  %v559_v41 = vshrl.u32 %v10577_v25, 16  ;;  %9592 = vmatprep.subr.bf16.mxu0 %v10586_v6  ;;  %v11155_v30 = vld [vmem:[%s11023_s5 + $0x6c] sm:$0xff]  }
  0x2e   : > { %9201 = vmatmul.mubr.msk.bf16.gmra.mrb[4].mxu1 %vm815_vm0, %v534_v7  ;;  %v557_v39 = vrot.slane %v555_v33, 1  ;;  %v3379_v40 = vor.u32 %v3377_v34, %v3375_v28  ;;  %v550_v42 = vsel %vm498_vm1, %v545_v26, %v549_v27  ;;  %v563_v44 = vshll.u32 %v10579_v38, 16  ;;  %v10589_v27 = vld [vmem:[%s11023_s5 + $0x60] sm:$0xff]  }
  0x2f   : > { %9204 = vmatprep.mubr.msk.bf16.mxu1 %vm815_vm0, %v542_v23  ;;  %9521 = vmatmul.mubr.msk.bf16.gmra.mrb[4].mxu0 %vm815_vm0, %v3360_v18  ;;  %v3383_v43 = vrot.slane %v3381_v37, 1  ;;  %v3385_v47 = vshrl.u32 %v11102_v31, 16  ;;  %v567_v50 = vshrl.u32 %v10579_v38, 16  ;;  %v3376_v51 = vsel %vm498_vm1, %v3371_v35, %v3375_v28  ;;  %v10591_v35 = vld [vmem:[%s11023_s5 + $0x68] sm:$0xff]  }
  0x30   : > { %9524 = vmatprep.mubr.msk.bf16.mxu0 %vm815_vm0, %v3368_v32  ;;  %v558_v48 = vsel %vm498_vm1, %v553_v36, %v557_v39  ;;  %v565_v53 = vrot.slane %v563_v44, 1  ;;  %v3389_v54 = vshll.u32 %v11112_v46, 16  ;;  %v571_v58 = vshll.u32 %v10581_v49, 16  ;;  %9593 = vmatpush3.bf16.msra.mxu0 %v10586_v6 }
  0x31   : > { %v3384_v57 = vsel %vm498_vm1, %v3379_v40, %v3383_v43  ;;  %v3393_v59 = vshrl.u32 %v11112_v46, 16  ;;  %v561_v60 = vor.u32 %v559_v41, %v557_v39  ;;  %v3397_v61 = vshll.u32 %v11120_v55, 16  ;;  %v11161_v40 = vld [vmem:[%s11023_s5 + $0x74] sm:$0xff]  }
  0x32   : > { %v3391_v62 = vrot.slane %v3389_v54, 1  ;;  %v569_v63 = vor.u32 %v567_v50, %v565_v53  ;;  %v573_v0 = vrot.slane %v571_v58, 1  ;;  %v3387_v4 = vor.u32 %v3385_v47, %v3383_v43  ;;  %v10593_v54 = vld [vmem:[%s11023_s5 + $0x70] sm:$0xff]  }
  0x33   : > { %v575_v5 = vshrl.u32 %v10581_v49, 16  ;;  %v3399_v8 = vrot.slane %v3397_v61, 1  ;;  %v579_v9 = vshll.u32 %v10583_v56, 16  ;;  %v566_v13 = vsel %vm498_vm1, %v561_v60, %v565_v53  ;;  %v10595_v49 = vld [vmem:[%s12765_s1 + $0xb8] sm:$0xff]  }
  0x34   : > { %v3395_v7 = vor.u32 %v3393_v59, %v3391_v62  ;;  %v3405_v15 = vshll.u32 %v11130_v1, 16  ;;  %v574_v17 = vsel %vm498_vm1, %v569_v63, %v573_v0  ;;  %v583_v18 = vshrl.u32 %v10583_v56, 16  ;;  %9594 = vmatprep.subr.bf16.mxu0 %v10595_v49  ;;  %v11178_v60 = vld [vmem:[%s11023_s5 + $0x7c] sm:$0xff]  }
  0x35   : > { %v3392_v20 = vsel %vm498_vm1, %v3387_v4, %v3391_v62  ;;  %v3401_v21 = vshrl.u32 %v11120_v55, 16  ;;  %v587_v22 = vshll.u32 %v10587_v16, 16  ;;  %v581_v24 = vrot.slane %v579_v9, 1  ;;  %9595 = vmatpush3.bf16.msra.mxu0 %v10595_v49 }
  0x36   : > { %9205 = vmatmul.mubr.msk.bf16.gmra.mrb[8].mxu1 %vm815_vm0, %v550_v42  ;;  %v3400_v23 = vsel %vm498_vm1, %v3395_v7, %v3399_v8  ;;  %v3409_v25 = vshrl.u32 %v11130_v1, 16  ;;  %v3413_v26 = vshll.u32 %v11144_v19, 16  ;;  %v577_v28 = vor.u32 %v575_v5, %v573_v0  ;;  %v10596_v0 = vld [vmem:[%s11023_s5 + $0x78] sm:$0xff]   ;;  %v11184_v5 = vld [vmem:[%s11023_s5 + $0x84] sm:$0xff]  }
  0x37   : > { %9208 = vmatprep.mubr.msk.bf16.mxu1 %vm815_vm0, %v558_v48  ;;  %9525 = vmatmul.mubr.msk.bf16.gmra.mrb[8].mxu0 %vm815_vm0, %v3376_v51  ;;  %v3407_v32 = vrot.slane %v3405_v15, 1  ;;  %v585_v33 = vor.u32 %v583_v18, %v581_v24  ;;  %v589_v34 = vrot.slane %v587_v22, 1  ;;  %v3403_v36 = vor.u32 %v3401_v21, %v3399_v8  ;;  %v10598_v8 = vld [vmem:[%s11023_s5 + $0x80] sm:$0xff]  }
  0x38   : > { %9528 = vmatprep.mubr.msk.bf16.mxu0 %vm815_vm0, %v3384_v57  ;;  %v595_v37 = vshll.u32 %v10589_v27, 16  ;;  %v3415_v39 = vrot.slane %v3413_v26, 1  ;;  %v582_v41 = vsel %vm498_vm1, %v577_v28, %v581_v24  ;;  %v591_v42 = vshrl.u32 %v10587_v16, 16 }
  0x39   : > { %v3411_v38 = vor.u32 %v3409_v25, %v3407_v32  ;;  %v3421_v43 = vshll.u32 %v11155_v30, 16  ;;  %v599_v44 = vshrl.u32 %v10589_v27, 16  ;;  %v590_v47 = vsel %vm498_vm1, %v585_v33, %v589_v34 }
  0x3a   : > { %v603_v48 = vshll.u32 %v10591_v35, 16  ;;  %v3408_v50 = vsel %vm498_vm1, %v3403_v36, %v3407_v32  ;;  %v597_v51 = vrot.slane %v595_v37, 1  ;;  %v3417_v53 = vshrl.u32 %v11144_v19, 16  ;;  %v11198_v32 = vld [vmem:[%s11023_s5 + $0x8c] sm:$0xff]  }
  0x3b   : > { %v3416_v56 = vsel %vm498_vm1, %v3411_v38, %v3415_v39  ;;  %v3425_v57 = vshrl.u32 %v11155_v30, 16  ;;  %v3429_v58 = vshll.u32 %v11161_v40, 16  ;;  %v593_v59 = vor.u32 %v591_v42, %v589_v34 }
  0x3c   : > { %v3423_v61 = vrot.slane %v3421_v43, 1  ;;  %v601_v62 = vor.u32 %v599_v44, %v597_v51  ;;  %v605_v63 = vrot.slane %v603_v48, 1  ;;  %v3419_v2 = vor.u32 %v3417_v53, %v3415_v39  ;;  %v11206_v39 = vld [vmem:[%s11023_s5 + $0x94] sm:$0xff]  }
  0x3d   : > { %v611_v4 = vshll.u32 %v10593_v54, 16  ;;  %v3431_v7 = vrot.slane %v3429_v58, 1  ;;  %v598_v9 = vsel %vm498_vm1, %v593_v59, %v597_v51  ;;  %v3437_v15 = vshll.u32 %v11178_v60, 16  ;;  %v10607_v51 = vld [vmem:[%s12765_s1 + $0x10] sm:$0xff]  }
  0x3e   : > { %9209 = vmatmul.mubr.msk.bf16.gmra.mrb[12].mxu1 %vm815_vm0, %v566_v13  ;;  %v3427_v6 = vor.u32 %v3425_v57, %v3423_v61  ;;  %v607_v13 = vshrl.u32 %v10591_v35, 16  ;;  %v606_v16 = vsel %vm498_vm1, %v601_v62, %v605_v63  ;;  %v619_v18 = vshll.u32 %v10596_v0, 16  ;;  %v11202_v35 = vld [vmem:[%s11023_s5 + $0x88] sm:$0xff]   ;;  %9272 = vmatprep.subr.bf16.mxu1 %v10607_v51 }
  0x3f   : > { %9212 = vmatprep.mubr.msk.bf16.mxu1 %vm815_vm0, %v574_v17  ;;  %9529 = vmatmul.mubr.msk.bf16.gmra.mrb[12].mxu0 %vm815_vm0, %v3392_v20  ;;  %v615_v17 = vshrl.u32 %v10593_v54, 16  ;;  %v3424_v20 = vsel %vm498_vm1, %v3419_v2, %v3423_v61  ;;  %v613_v21 = vrot.slane %v611_v4, 1  ;;  %v3433_v22 = vshrl.u32 %v11161_v40, 16  ;;  %v10602_v61 = vld [vmem:[%s11023_s5 + $0x90] sm:$0xff]  }
  0x40   : > { %9532 = vmatprep.mubr.msk.bf16.mxu0 %vm815_vm0, %v3400_v23  ;;  %v3441_v23 = vshrl.u32 %v11178_v60, 16  ;;  %v3432_v24 = vsel %vm498_vm1, %v3427_v6, %v3431_v7  ;;  %v3445_v25 = vshll.u32 %v11184_v5, 16  ;;  %v627_v26 = vshll.u32 %v10598_v8, 16  ;;  %9273 = vmatpush3.bf16.msra.mxu1 %v10607_v51 }
  0x41   : > { %v609_v27 = vor.u32 %v607_v13, %v605_v63  ;;  %v3439_v28 = vrot.slane %v3437_v15, 1  ;;  %v617_v33 = vor.u32 %v615_v17, %v613_v21  ;;  %v621_v34 = vrot.slane %v619_v18, 1  ;;  %v11245_v17 = vld [vmem:[%s11023_s5 + $0x9c] sm:$0xff]  }
  0x42   : > { %v3435_v36 = vor.u32 %v3433_v22, %v3431_v7  ;;  %v623_v38 = vshrl.u32 %v10596_v0, 16  ;;  %v3447_v42 = vrot.slane %v3445_v25, 1  ;;  %v629_v43 = vrot.slane %v627_v26, 1 }
  0x43   : > { %v3443_v37 = vor.u32 %v3441_v23, %v3439_v28  ;;  %v3449_v44 = vshrl.u32 %v11184_v5, 16  ;;  %v614_v48 = vsel %vm498_vm1, %v609_v27, %v613_v21  ;;  %v3453_v49 = vshll.u32 %v11198_v32, 16 }
  0x44   : > { %v622_v53 = vsel %vm498_vm1, %v617_v33, %v621_v34  ;;  %v635_v54 = vshll.u32 %v11202_v35, 16  ;;  %v3440_v57 = vsel %vm498_vm1, %v3435_v36, %v3439_v28  ;;  %v3457_v58 = vshrl.u32 %v11198_v32, 16 }
  0x45   : > { %v3461_v59 = vshll.u32 %v11206_v39, 16  ;;  %v4158_v63 = vrot.slane %v11050_v29, 1  ;;  %v625_v0 = vor.u32 %v623_v38, %v621_v34  ;;  %v3455_v2 = vrot.slane %v3453_v49, 1 }
  0x46   : > { %9213 = vmatmul.mubr.msk.bf16.gmra.mrb[16].mxu1 %vm815_vm0, %v582_v41  ;;  %v4142_v41 = vld [vmem:[%s11023_s5 + $0xc] sm:$0xe]  ;;  %v637_v7 = vrot.slane %v635_v54, 1  ;;  %v4162_v13 = vrot.slane %v11069_v52, 1  ;;  %v3451_v15 = vor.u32 %v3449_v44, %v3447_v42  ;;  %v4164_v18 = vrot.slane %v11080_v3, 1 }
  0x47   : > { %9216 = vmatprep.mubr.msk.bf16.mxu1 %vm815_vm0, %v590_v47  ;;  %9533 = vmatmul.mubr.msk.bf16.gmra.mrb[16].mxu0 %vm815_vm0, %v3408_v50  ;;  %v631_v47 = vshrl.u32 %v10598_v8, 16  ;;  %v8205_v50 = vcombine.low %v4142_v41, %v11038_v14  ;;  %v3448_v14 = vsel %vm498_vm1, %v3443_v37, %v3447_v42  ;;  %v10604_v8 = vld [vmem:[%s11023_s5 + $0x98] sm:$0xff]   ;;  %v3463_v21 = vrot.slane %v3461_v59, 1  ;;  %v10606_v37 = vld [vmem:[%s11023_s5 + $0xa0] sm:$0xff]   ;;  %v10609_v44 = vld [vmem:[%s11023_s5 + $0xa8] sm:$0xff]  }
  0x48   : > { %9536 = vmatprep.mubr.msk.bf16.mxu0 %vm815_vm0, %v3416_v56  ;;  %v4156_v56 = vrot.slane %v11034_v12, 1  ;;  %v11229_v12 = vld [vmem:[%s12765_s1 + $0xc0] sm:$0xff]   ;;  %v639_v52 = vshrl.u32 %v11202_v35, 16  ;;  %v647_v26 = vshrl.u32 %v10602_v61, 16  ;;  %v651_v3 = vshll.u32 %v10604_v8, 16 }
  0x49   : > { %v4155_v62 = vrot.slane %v8205_v50, 1  ;;  %v633_v4 = vor.u32 %v631_v47, %v629_v43  ;;  %9668 = vmatprep.subr.bf16.mxu0 %v11229_v12  ;;  %v4166_v27 = vrot.slane %v11087_v11, 1  ;;  %v3456_v28 = vsel %vm498_vm1, %v3451_v15, %v3455_v2  ;;  %v10617_v47 = vld [vmem:[%s12765_s1 + $0x18] sm:$0xff]  }
  0x4a   : > { %v11238_v29 = vsel %vm1675_vm2, %v4156_v56, %v4158_v63  ;;  %v3465_v33 = vshrl.u32 %v11206_v39, 16  ;;  %v3469_v34 = vshll.u32 %v11245_v17, 16  ;;  %v641_v41 = vor.u32 %v639_v52, %v637_v7  ;;  %9274 = vmatprep.subr.bf16.mxu1 %v10617_v47 }
  0x4b   : > { %v11233_v6 = vsel %vm1675_vm2, %v4155_v62, %v4156_v56  ;;  %v638_v25 = vsel %vm498_vm1, %v633_v4, %v637_v7  ;;  %v11268_v38 = vsel %vm1675_vm2, %v4164_v18, %v4166_v27  ;;  %v4168_v11 = vrot.slane %v11102_v31, 1  ;;  %9275 = vmatpush3.bf16.msra.mxu1 %v10617_v47 }
  0x4c   : > { %v11278_v49 = vrot.slane %v3469_v34, 1  ;;  %v4170_v51 = vrot.slane %v11112_v46, 1  ;;  %v659_v31 = vshll.u32 %v10606_v37, 16  ;;  %v655_v54 = vshrl.u32 %v10604_v8, 16 }
  0x4d   : > { %v11281_v50 = vsel %vm1675_vm2, %v4166_v27, %v4168_v11  ;;  %v663_v59 = vshrl.u32 %v10606_v37, 16  ;;  %v4174_v62 = vrot.slane %v11130_v1, 1  ;;  %v10618_v27 = vld [vmem:[%s12765_s1 + $0xc8] sm:$0xff]   ;;  %v4186_v34 = vrot.slane %v11198_v32, 1 }
  0x4e   : > { %9217 = vmatmul.mubr.msk.bf16.gmra.mrb[20].mxu1 %vm815_vm0, %v598_v9  ;;  %v4160_v9 = vrot.slane %v11061_v45, 1  ;;  %v630_v45 = vsel %vm498_vm1, %v625_v0, %v629_v43  ;;  %v653_v43 = vrot.slane %v651_v3, 1  ;;  %v11286_v56 = vsel %vm1675_vm2, %v4168_v11, %v4170_v51  ;;  %v10612_v3 = vld [vmem:[%s11023_s5 + $0xc0] sm:$0xff]   ;;  %v10630_v11 = vld [vmem:[%s12765_s1 + $0xd0] sm:$0xff]  }
  0x4f   : > { %9220 = vmatprep.mubr.msk.bf16.mxu1 %vm815_vm0, %v606_v16  ;;  %9537 = vmatmul.mubr.msk.bf16.gmra.mrb[20].mxu0 %vm815_vm0, %v3424_v20  ;;  %v643_v16 = vshll.u32 %v10602_v61, 16  ;;  %v3459_v20 = vor.u32 %v3457_v58, %v3455_v2  ;;  %v667_v61 = vshll.u32 %v10609_v44, 16  ;;  %v661_v0 = vrot.slane %v659_v31, 1 }
  0x50   : > { %9540 = vmatprep.mubr.msk.bf16.mxu0 %vm815_vm0, %v3432_v24  ;;  %v11249_v22 = vsel %vm1675_vm2, %v4158_v63, %v4160_v9  ;;  %v11252_v23 = vsel %vm1675_vm2, %v4160_v9, %v4162_v13  ;;  %v11257_v24 = vsel %vm1675_vm2, %v4162_v13, %v4164_v18  ;;  %v4176_v63 = vrot.slane %v11144_v19, 1  ;;  %v10611_v9 = vld [vmem:[%s11023_s5 + $0xb8] sm:$0xff]  }
  0x51   : > { %v3464_v35 = vsel %vm498_vm1, %v3459_v20, %v3463_v21  ;;  %v645_v36 = vrot.slane %v643_v16, 1  ;;  %v657_v4 = vor.u32 %v655_v54, %v653_v43  ;;  %v665_v7 = vor.u32 %v663_v59, %v661_v0  ;;  %v10615_v54 = vld [vmem:[%s11023_s5 + $0xd8] sm:$0xff]  }
  0x52   : > { %v11304_v1 = vsel %vm1675_vm2, %v4174_v62, %v4176_v63  ;;  %v669_v8 = vrot.slane %v667_v61, 1  ;;  %v4178_v19 = vrot.slane %v11155_v30, 1  ;;  %v4180_v13 = vrot.slane %v11161_v40, 1 }
  0x53   : > { %v649_v42 = vor.u32 %v647_v26, %v645_v36  ;;  %v662_v18 = vsel %vm498_vm1, %v657_v4, %v661_v0  ;;  %v671_v20 = vshrl.u32 %v10609_v44, 16  ;;  %v4184_v40 = vrot.slane %v11184_v5, 1  ;;  %v11376_v0 = vld [vmem:[%s11023_s5 + $0xe0] sm:$0xff]  }
  0x54   : > { %v11313_v16 = vsel %vm1675_vm2, %v4176_v63, %v4178_v19  ;;  %v670_v30 = vsel %vm498_vm1, %v665_v7, %v669_v8  ;;  %v687_v37 = vshrl.u32 %v10611_v9, 16  ;;  %v4188_v32 = vrot.slane %v11206_v39, 1  ;;  %v11382_v7 = vld [vmem:[%s11023_s5 + $0xe8] sm:$0xff]  }
  0x55   : > { %v654_v58 = vsel %vm498_vm1, %v649_v42, %v653_v43  ;;  %v695_v42 = vshrl.u32 %v10612_v3, 16  ;;  %v10639_v39 = vld [vmem:[%s12765_s1 + $0x48] sm:$0xff]  }
  0x56   : > { %9221 = vmatmul.mubr.msk.bf16.gmra.mrb[24].mxu1 %vm815_vm0, %v614_v48  ;;  %v3467_v48 = vor.u32 %v3465_v33, %v3463_v21  ;;  %v11317_v21 = vsel %vm1675_vm2, %v4178_v19, %v4180_v13  ;;  %v11358_v43 = vsel %vm1675_vm2, %v4186_v34, %v4188_v32  ;;  %v719_v19 = vshrl.u32 %v10615_v54, 16 }
  0x57   : > { %9224 = vmatprep.mubr.msk.bf16.mxu1 %vm815_vm0, %v622_v53  ;;  %9541 = vmatmul.mubr.msk.bf16.gmra.mrb[24].mxu0 %vm815_vm0, %v3440_v57  ;;  %v646_v53 = vsel %vm498_vm1, %v641_v41, %v645_v36  ;;  %v4172_v57 = vrot.slane %v11120_v55, 1  ;;  %v10610_v55 = vld [vmem:[%s11023_s5 + $0xb0] sm:$0xff]   ;;  %v11341_v36 = vld [vmem:[%s12765_s1 + $0x40] sm:$0xff]   ;;  %v11347_v41 = vsel %vm1675_vm2, %v4184_v40, %v4186_v34 }
  0x58   : > { %9544 = vmatprep.mubr.msk.bf16.mxu0 %vm815_vm0, %v3448_v14  ;;  %v3472_v46 = vsel %vm498_vm1, %v3467_v48, %v11278_v49  ;;  %v675_v15 = vshll.u32 %v10610_v55, 16  ;;  %v679_v52 = vshrl.u32 %v10610_v55, 16  ;;  %9348 = vmatprep.subr.bf16.mxu1 %v11341_v36  ;;  %v10614_v48 = vld [vmem:[%s11023_s5 + $0xd0] sm:$0xff]  }
  0x59   : > { %v11294_v14 = vsel %vm1675_vm2, %v4170_v51, %v4172_v57  ;;  %v11300_v2 = vsel %vm1675_vm2, %v4172_v57, %v4174_v62  ;;  %v707_v57 = vshll.u32 %v10614_v48, 16  ;;  %v711_v62 = vshrl.u32 %v10614_v48, 16  ;;  %v11435_v48 = vld [vmem:[%s11023_s5 + $0x118] sm:$0xff]  }
  0x5a   : > { %v677_v26 = vrot.slane %v675_v15, 1 }
  0x5b   : > { %v709_v63 = vrot.slane %v707_v57, 1 }
  0x5c   : > { %v681_v5 = vor.u32 %v679_v52, %v677_v26 }
  0x5d   : > { %v713_v55 = vor.u32 %v711_v62, %v709_v63 }
  0x5e   : > { %9225 = vmatmul.mubr.msk.bf16.gmra.mrb[28].mxu1 %vm815_vm0, %v630_v45  ;;  %v4182_v45 = vrot.slane %v11178_v60, 1  ;;  %v673_v60 = vor.u32 %v671_v20, %v669_v8  ;;  %v723_v8 = vshll.u32 %v11376_v0, 16  ;;  %v11395_v20 = vld [vmem:[%s11023_s5 + $0xf8] sm:$0xff]  }
  0x5f   : > { %9228 = vmatprep.mubr.msk.bf16.mxu1 %vm815_vm0, %v638_v25  ;;  %9545 = vmatmul.mubr.msk.bf16.gmra.mrb[28].mxu0 %vm815_vm0, %v3456_v28  ;;  %v683_v25 = vshll.u32 %v10611_v9, 16  ;;  %v10613_v28 = vld [vmem:[%s11023_s5 + $0xc8] sm:$0xff]  }
  0x60   : > { %9548 = vmatprep.mubr.msk.bf16.mxu0 %vm815_vm0, %v3464_v35  ;;  %v11333_v33 = vsel %vm1675_vm2, %v4182_v45, %v4184_v40  ;;  %v703_v59 = vshrl.u32 %v10613_v28, 16 }
  0x61   : > { %v685_v35 = vrot.slane %v683_v25, 1 }
  0x63   : > { %v686_v44 = vsel %vm498_vm1, %v681_v5, %v685_v35  ;;  %v689_v51 = vor.u32 %v687_v37, %v685_v35  ;;  %v751_v35 = vshrl.u32 %v11395_v20, 16 }
  0x66   : > { %9229 = vmatmul.mubr.msk.bf16.gmra.mrb[32].mxu1 %vm815_vm0, %v646_v53 }
  0x67   : > { %9232 = vmatprep.mubr.msk.bf16.mxu1 %vm815_vm0, %v654_v58  ;;  %9549 = vmatmul.mubr.msk.bf16.gmra.mrb[32].mxu0 %vm815_vm0, %v3472_v46  ;;  %v715_v46 = vshll.u32 %v10615_v54, 16 }
  0x68   : > { %9596 = vmatprep.mubr.msk.bf16.mxu0 %vm815_vm0, %v11233_v6  ;;  %v11322_v6 = vsel %vm1675_vm2, %v4180_v13, %v4182_v45  ;;  %v11389_v13 = vld [vmem:[%s11023_s5 + $0xf0] sm:$0xff]   ;;  %v11399_v45 = vld [vmem:[%s11023_s5 + $0x100] sm:$0xff]  }
  0x69   : > { %v717_v4 = vrot.slane %v715_v46, 1  ;;  %v739_v52 = vshll.u32 %v11389_v13, 16  ;;  %v743_v5 = vshrl.u32 %v11389_v13, 16 }
  0x6b   : > { %v718_v15 = vsel %vm498_vm1, %v713_v55, %v717_v4  ;;  %v741_v34 = vrot.slane %v739_v52, 1  ;;  %v10627_v55 = vld [vmem:[%s11023_s5 + $0xa4] sm:$0xff]  }
  0x6c   : > { %v10633_v52 = vld [vmem:[%s11023_s5 + $0xc4] sm:$0xff]  }
  0x6e   : > { %9233 = vmatmul.mubr.msk.bf16.gmra.mrb[36].mxu1 %vm815_vm0, %v662_v18  ;;  %v731_v18 = vshll.u32 %v11382_v7, 16 }
  0x6f   : > { %9236 = vmatprep.mubr.msk.bf16.mxu1 %vm815_vm0, %v670_v30  ;;  %9597 = vmatmul.mubr.msk.bf16.vlgmr.msra.gmra.mrb[0].mxu0 %vm815_vm0, %v11238_v29  ;;  %v691_v29 = vshll.u32 %v10612_v3, 16  ;;  %v721_v30 = vor.u32 %v719_v19, %v717_v4  ;;  %v735_v3 = vshrl.u32 %v11382_v7, 16  ;;  %v4190_v19 = vrot.slane %v11245_v17, 1 }
  0x70   : > { %9669 = vmatpush3.bf16.msra.mxu0 %v11229_v12  ;;  %9600 = vmatprep.mubr.msk.bf16.mxu0 %vm815_vm0, %v11249_v22  ;;  %v678_v12 = vsel %vm498_vm1, %v673_v60, %v677_v26  ;;  %v699_v22 = vshll.u32 %v10613_v28, 16  ;;  %v733_v40 = vrot.slane %v731_v18, 1  ;;  %v11406_v26 = vld [vmem:[%s11023_s5 + $0x108] sm:$0xff]   ;;  %v747_v60 = vshll.u32 %v11395_v20, 16 }
  0x71   : > { %9670 = vmatprep.subr.bf16.mxu0 %v10618_v27  ;;  %v693_v47 = vrot.slane %v691_v29, 1  ;;  %v755_v28 = vshll.u32 %v11399_v45, 16  ;;  %v763_v37 = vshll.u32 %v11406_v26, 16 }
  0x72   : > { %v701_v53 = vrot.slane %v699_v22, 1  ;;  %v749_v29 = vrot.slane %v747_v60, 1  ;;  %v759_v22 = vshrl.u32 %v11399_v45, 16  ;;  %v4200_v60 = vrot.slane %v10633_v52, 1 }
  0x73   : > { %v697_v31 = vor.u32 %v695_v42, %v693_v47  ;;  %v694_v58 = vsel %vm498_vm1, %v689_v51, %v693_v47  ;;  %v745_v42 = vor.u32 %v743_v5, %v741_v34  ;;  %v11430_v47 = vld [vmem:[%s11023_s5 + $0x110] sm:$0xff]  }
  0x74   : > { %9671 = vmatpush3.bf16.msra.mxu0 %v10618_v27  ;;  %v11414_v27 = vld [vmem:[%s12765_s1 + $0xe0] sm:$0xff]   ;;  %v753_v54 = vor.u32 %v751_v35, %v749_v29 }
  0x75   : > { %9672 = vmatprep.subr.bf16.mxu0 %v10630_v11  ;;  %v702_v61 = vsel %vm498_vm1, %v697_v31, %v701_v53  ;;  %v750_v31 = vsel %vm498_vm1, %v745_v42, %v749_v29  ;;  %v10637_v42 = vld [vmem:[%s11023_s5 + $0xe4] sm:$0xff]  }
  0x76   : > { %9237 = vmatmul.mubr.msk.bf16.gmra.mrb[40].mxu1 %vm815_vm0, %v678_v12  ;;  %v737_v12 = vor.u32 %v735_v3, %v733_v40  ;;  %v11495_v3 = vld [vmem:[%s11023_s5 + $0x10] sm:$0xff]  }
  0x77   : > { %9240 = vmatprep.mubr.msk.bf16.mxu1 %vm815_vm0, %v686_v44  ;;  %9601 = vmatmul.mubr.msk.bf16.gmra.mrb[4].mxu0 %vm815_vm0, %v11252_v23  ;;  %v10640_v23 = vld [vmem:[%s12765_s1 + $0xd8] sm:$0xff]   ;;  %v765_v44 = vrot.slane %v763_v37, 1  ;;  %v11517_v37 = vld [vmem:[%s11023_s5 + $0x20] sm:$0xff]  }
  0x78   : > { %9604 = vmatprep.mubr.msk.bf16.mxu0 %vm815_vm0, %v11257_v24  ;;  %9673 = vmatpush3.bf16.msra.mxu0 %v10630_v11  ;;  %v705_v24 = vor.u32 %v703_v59, %v701_v53  ;;  %v757_v11 = vrot.slane %v755_v28, 1  ;;  %v742_v51 = vsel %vm498_vm1, %v737_v12, %v741_v34  ;;  %v771_v53 = vshll.u32 %v11430_v47, 16  ;;  %v10626_v59 = vld [vmem:[%s11023_s5 + $0x120] ss:$0 sps:$4 sm:$0x11]   ;;  %v10650_v28 = vld [vmem:[%s12765_s1 + $0x50] sm:$0xff]  }
  0x79   : > { %9674 = vmatprep.subr.bf16.mxu0 %v10640_v23  ;;  %v10635_v34 = vld [vmem:[%s11023_s5 + $0xd4] sm:$0xff]   ;;  %v10636_v12 = vld [vmem:[%s11023_s5 + $0xdc] sm:$0xff]  }
  0x7a   : > { %v710_v9 = vsel %vm498_vm1, %v705_v24, %v709_v63  ;;  %v761_v57 = vor.u32 %v759_v22, %v757_v11  ;;  %v773_v46 = vrot.slane %v771_v53, 1  ;;  %v787_v24 = vshll.u32 %v10626_v59, 16  ;;  %v11549_v59 = vld [vmem:[%s11023_s5 + $0x38] sm:$0xff]  }
  0x7b   : > { %v4206_v53 = vrot.slane %v10636_v12, 1  ;;  %v11632_v12 = vld [vmem:[%s11023_s5 + $0x90] sm:$0xff]  }
  0x7c   : > { %9675 = vmatpush3.bf16.msra.mxu0 %v10640_v23  ;;  %v766_v62 = vsel %vm498_vm1, %v761_v57, %v765_v44  ;;  %v10638_v57 = vld [vmem:[%s11023_s5 + $0xec] sm:$0xff]  }
  0x7d   : > { %9748 = vmatprep.subr.bf16.mxu0 %v11414_v27 }
  0x7e   : > { %9241 = vmatmul.mubr.msk.bf16.gmra.mrb[44].mxu1 %vm815_vm0, %v694_v58  ;;  %v779_v58 = vshll.u32 %v11435_v48, 16 }
  0x7f   : > { %9244 = vmatprep.mubr.msk.bf16.mxu1 %vm815_vm0, %v702_v61  ;;  %9605 = vmatmul.mubr.msk.bf16.gmra.mrb[8].mxu0 %vm815_vm0, %v11268_v38  ;;  %v727_v38 = vshrl.u32 %v11376_v0, 16  ;;  %v758_v61 = vsel %vm498_vm1, %v753_v54, %v757_v11  ;;  %v4204_v11 = vrot.slane %v10635_v34, 1  ;;  %v4208_v54 = vrot.slane %v10637_v42, 1  ;;  %v11618_v34 = vld [vmem:[%s11023_s5 + $0x80] sm:$0xff]  }
  0x80   : > { %9608 = vmatprep.mubr.msk.bf16.mxu0 %vm815_vm0, %v11281_v50  ;;  %v725_v50 = vrot.slane %v723_v8, 1  ;;  %v781_v63 = vrot.slane %v779_v58, 1  ;;  %v10651_v42 = vld [vmem:[%s11023_s5 + $0x20] sm:$0xff]  }
  0x81   : > { %v4207_v58 = vsel %vm1675_vm2, %v4204_v11, %v4206_v53 }
  0x82   : > { %v729_v25 = vor.u32 %v727_v38, %v725_v50  ;;  %v10631_v38 = vld [vmem:[%s11023_s5 + $0xb4] sm:$0xff]  }
  0x83   : > { %v4196_v17 = vrot.slane %v10631_v38, 1 }
  0x86   : > { %9245 = vmatmul.mubr.msk.bf16.gmra.mrb[48].mxu1 %vm815_vm0, %v710_v9  ;;  %v789_v9 = vrot.slane %v787_v24, 1  ;;  %v11565_v24 = vld [vmem:[%s11023_s5 + $0x48] sm:$0xff]  }
  0x87   : > { %9248 = vmatprep.mubr.msk.bf16.mxu1 %vm815_vm0, %v718_v15  ;;  %9609 = vmatmul.mubr.msk.bf16.gmra.mrb[12].mxu0 %vm815_vm0, %v11286_v56  ;;  %v726_v56 = vsel %vm498_vm1, %v721_v30, %v725_v50  ;;  %v4192_v15 = vrot.slane %v10627_v55, 1  ;;  %v4191_v50 = vsel %vm1675_vm2, %v4188_v32, %v4190_v19 }
  0x88   : > { %9612 = vmatprep.mubr.msk.bf16.mxu0 %vm815_vm0, %v11294_v14  ;;  %v734_v14 = vsel %vm498_vm1, %v729_v25, %v733_v40  ;;  %v11488_v25 = vld [vmem:[%s11023_s5 + $0x8] sm:$0xff]  }
  0x8e   : > { %9249 = vmatmul.mubr.msk.bf16.gmra.mrb[52].mxu1 %vm815_vm0, %v726_v56  ;;  %v10634_v56 = vld [vmem:[%s11023_s5 + $0xcc] sm:$0xff]  }
  0x8f   : > { %9252 = vmatprep.mubr.msk.bf16.mxu1 %vm815_vm0, %v734_v14  ;;  %9613 = vmatmul.mubr.msk.bf16.gmra.mrb[16].mxu0 %vm815_vm0, %v11300_v2  ;;  %v767_v2 = vshrl.u32 %v11406_v26, 16  ;;  %v11511_v14 = vld [vmem:[%s11023_s5 + $0x18] sm:$0xff]   ;;  %v4202_v29 = vrot.slane %v10634_v56, 1 }
  0x90   : > { %9616 = vmatprep.mubr.msk.bf16.mxu0 %vm815_vm0, %v11304_v1  ;;  %v775_v1 = vshrl.u32 %v11430_v47, 16 }
  0x91   : > { %v4203_v22 = vsel %vm1675_vm2, %v4200_v60, %v4202_v29 }
  0x92   : > { %v777_v23 = vor.u32 %v775_v1, %v773_v46  ;;  %v10641_v1 = vld [vmem:[%s11023_s5 + $0xf4] sm:$0xff]  }
  0x94   : > { %v782_v8 = vsel %vm498_vm1, %v777_v23, %v781_v63  ;;  %v10642_v23 = vld [vmem:[%s11023_s5 + $0xfc] sm:$0xff]  }
  0x96   : > { %9253 = vmatmul.mubr.msk.bf16.gmra.mrb[56].mxu1 %vm815_vm0, %v742_v51  ;;  %v4205_v51 = vsel %vm1675_vm2, %v4202_v29, %v4204_v11  ;;  %v10649_v29 = vld [vmem:[%s11023_s5 + $0x18] sm:$0xff]   ;;  %v11627_v11 = vld [vmem:[%s11023_s5 + $0x88] sm:$0xff]  }
  0x97   : > { %9256 = vmatprep.mubr.msk.bf16.mxu1 %vm815_vm0, %v750_v31  ;;  %9617 = vmatmul.mubr.msk.bf16.gmra.mrb[20].mxu0 %vm815_vm0, %v11313_v16  ;;  %v769_v16 = vor.u32 %v767_v2, %v765_v44  ;;  %v11527_v44 = vld [vmem:[%s11023_s5 + $0x28] sm:$0xff]   ;;  %v11535_v31 = vld [vmem:[%s12765_s1 + $0x60] sm:$0xff]   ;;  %v11538_v2 = vld [vmem:[%s11023_s5 + $0x30] sm:$0xff]  }
  0x98   : > { %9620 = vmatprep.mubr.msk.bf16.mxu0 %vm815_vm0, %v11317_v21  ;;  %v783_v21 = vshrl.u32 %v11435_v48, 16 }
  0x99   : > { %v774_v4 = vsel %vm498_vm1, %v769_v16, %v773_v46  ;;  %v4210_v46 = vrot.slane %v10638_v57, 1  ;;  %v4212_v16 = vrot.slane %v10641_v1, 1  ;;  %v10675_v57 = vld [vmem:[%s12765_s1 + $0xf0] sm:$0xff]  }
  0x9a   : > { %v10654_v1 = vld [vmem:[%s11023_s5 + $0x30] sm:$0xff]  }
  0x9b   : > { %v4213_v55 = vsel %vm1675_vm2, %v4210_v46, %v4212_v16 }
  0x9e   : > { %9257 = vmatmul.mubr.msk.bf16.gmra.mrb[60].mxu1 %vm815_vm0, %v758_v61  ;;  %v4209_v61 = vsel %vm1675_vm2, %v4206_v53, %v4208_v54  ;;  %v10662_v53 = vld [vmem:[%s12765_s1 + $0xe8] sm:$0xff]  }
  0x9f   : > { %9260 = vmatprep.mubr.msk.bf16.mxu1 %vm815_vm0, %v766_v62  ;;  %9621 = vmatmul.mubr.msk.bf16.gmra.mrb[24].mxu0 %vm815_vm0, %v11322_v6  ;;  %v785_v6 = vor.u32 %v783_v21, %v781_v63  ;;  %v11555_v62 = vld [vmem:[%s11023_s5 + $0x40] sm:$0xff]   ;;  %v4211_v21 = vsel %vm1675_vm2, %v4208_v54, %v4210_v46  ;;  %v11670_v46 = vld [vmem:[%s11023_s5 + $0xb0] sm:$0xff]  }
  0xa0   : > { %9624 = vmatprep.mubr.msk.bf16.mxu0 %vm815_vm0, %v11333_v33  ;;  %v10629_v33 = vld [vmem:[%s11023_s5 + $0xac] sm:$0xff]   ;;  %v10643_v63 = vld [vmem:[%s11023_s5 + $0x104] sm:$0xff]  }
  0xa1   : > { %v790_v18 = vsel %vm498_vm1, %v785_v6, %v789_v9  ;;  %v4194_v30 = vrot.slane %v10629_v33, 1  ;;  %v4216_v9 = vrot.slane %v10643_v63, 1  ;;  %v10644_v6 = vld [vmem:[%s11023_s5 + $0x10c] sm:$0xff]   ;;  %v11581_v33 = vld [vmem:[%s11023_s5 + $0x58] sm:$0xff]   ;;  %v11649_v54 = vld [vmem:[%s11023_s5 + $0xa0] sm:$0xff]  }
  0xa2   : > { %v11679_v63 = vld [vmem:[%s11023_s5 + $0xb8] sm:$0xff]  }
  0xa3   : > { %v4195_v32 = vsel %vm1675_vm2, %v4192_v15, %v4194_v30 }
  0xa6   : > { %9261 = vmatmul.mubr.msk.bf16.gmra.mrb[64].mxu1 %vm815_vm0, %v774_v4  ;;  %v11571_v4 = vld [vmem:[%s11023_s5 + $0x50] sm:$0xff]  }
  0xa7   : > { %9264 = vmatprep.mubr.msk.bf16.mxu1 %vm815_vm0, %v782_v8  ;;  %9625 = vmatmul.mubr.msk.bf16.gmra.mrb[28].mxu0 %vm815_vm0, %v11347_v41  ;;  %v4193_v41 = vsel %vm1675_vm2, %v4190_v19, %v4192_v15  ;;  %v4214_v8 = vrot.slane %v10642_v23, 1  ;;  %v10645_v19 = vld [vmem:[%s11023_s5 + $0x114] sm:$0xff]   ;;  %v10657_v23 = vld [vmem:[%s11023_s5 + $0x48] sm:$0xff]  }
  0xa8   : > { %9628 = vmatprep.mubr.msk.bf16.mxu0 %vm815_vm0, %v11358_v43  ;;  %v10632_v43 = vld [vmem:[%s11023_s5 + $0xbc] sm:$0xff]  }
  0xa9   : > { %v4198_v40 = vrot.slane %v10632_v43, 1  ;;  %v4215_v15 = vsel %vm1675_vm2, %v4212_v16, %v4214_v8  ;;  %v4217_v38 = vsel %vm1675_vm2, %v4214_v8, %v4216_v9  ;;  %v11596_v43 = vld [vmem:[%s11023_s5 + $0x68] sm:$0xff]   ;;  %v10656_v16 = vld [vmem:[%s11023_s5 + $0x40] sm:$0xff]   ;;  %v10658_v8 = vld [vmem:[%s11023_s5 + $0x50] sm:$0xff]  }
  0xab   : > { %v4199_v5 = vsel %vm1675_vm2, %v4196_v17, %v4198_v40  ;;  %v4201_v35 = vsel %vm1675_vm2, %v4198_v40, %v4200_v60 }
  0xae   : > { %9265 = vmatmul.mubr.msk.bf16.gmra.mrb[68].mxu1 %vm815_vm0, %v790_v18  ;;  %v11587_v18 = vld [vmem:[%s11023_s5 + $0x60] sm:$0xff]  }
  0xaf   : > { %9276 = vmatprep.mubr.msk.bf16.mxu1 %vm815_vm0, %v11030_v10  ;;  %9629 = vmatmul.mubr.msk.bf16.gmra.mrb[32].mxu0 %vm815_vm0, %v4191_v50  ;;  %v4197_v10 = vsel %vm1675_vm2, %v4194_v30, %v4196_v17  ;;  %v4218_v50 = vrot.slane %v10644_v6, 1  ;;  %v10646_v17 = vld [vmem:[%s11023_s5 + $0x11c] sm:$0xff]   ;;  %v11699_v6 = vld [vmem:[%s11023_s5 + $0xc8] sm:$0xff]  }
  0xb0   : > { %9632 = vmatprep.mubr.msk.bf16.mxu0 %vm815_vm0, %v4193_v41  ;;  %v4220_v41 = vrot.slane %v10645_v19, 1  ;;  %v11704_v19 = vld [vmem:[%s11023_s5 + $0xd0] sm:$0xff]  }
  0xb1   : > { %v4219_v30 = vsel %vm1675_vm2, %v4216_v9, %v4218_v50  ;;  %v10659_v9 = vld [vmem:[%s11023_s5 + $0x58] sm:$0xff]  }
  0xb2   : > { %v4221_v52 = vsel %vm1675_vm2, %v4218_v50, %v4220_v41  ;;  %v11713_v50 = vld [vmem:[%s11023_s5 + $0xd8] sm:$0xff]  }
  0xb6   : > { %9277 = vmatmul.mubr.msk.bf16.vlgmr.msra.gmra.mrb[0].mxu1 %vm815_vm0, %v11488_v25 }
  0xb7   : > { %9349 = vmatpush3.bf16.msra.mxu1 %v11341_v36  ;;  %9280 = vmatprep.mubr.msk.bf16.mxu1 %vm815_vm0, %v11495_v3  ;;  %v10661_v36 = vld [vmem:[%s12765_s1 + $0x58] sm:$0xff]  }
  0xb8   : > { %9633 = vmatmul.mubr.msk.bf16.gmra.mrb[36].mxu0 %vm815_vm0, %v4195_v32  ;;  %9350 = vmatprep.subr.bf16.mxu1 %v10639_v39  ;;  %v11603_v32 = vld [vmem:[%s11023_s5 + $0x70] sm:$0xff]  }
  0xb9   : > { %9636 = vmatprep.mubr.msk.bf16.mxu0 %vm815_vm0, %v4197_v10  ;;  %v4222_v10 = vrot.slane %v10646_v17, 1  ;;  %v10667_v17 = vld [vmem:[%s11023_s5 + $0x88] sm:$0xff]  }
  0xbb   : > { %9351 = vmatpush3.bf16.msra.mxu1 %v10639_v39  ;;  %v10647_v39 = vld [vmem:[%s11023_s5 + $0x124] sm:$0xff]   ;;  %v4223_v60 = vsel %vm1675_vm2, %v4220_v41, %v4222_v10  ;;  %v10664_v41 = vld [vmem:[%s11023_s5 + $0x70] sm:$0xff]  }
  0xbc   : > { %9352 = vmatprep.subr.bf16.mxu1 %v10650_v28  ;;  %v4224_v40 = vrot.slane %v10647_v39, 1 }
  0xbe   : > { %9281 = vmatmul.mubr.msk.bf16.gmra.mrb[4].mxu1 %vm815_vm0, %v11511_v14  ;;  %v4225_v56 = vsel %vm1675_vm2, %v4222_v10, %v4224_v40  ;;  %v10669_v10 = vld [vmem:[%s11023_s5 + $0x98] sm:$0xff]  }
  0xbf   : > { %9284 = vmatprep.mubr.msk.bf16.mxu1 %vm815_vm0, %v11517_v37  ;;  %9353 = vmatpush3.bf16.msra.mxu1 %v10650_v28  ;;  %v10648_v28 = vld [vmem:[%s11023_s5 + $0x12c] ss:$0 sps:$4 sm:$0x11]  }
  0xc0   : > { %9637 = vmatmul.mubr.msk.bf16.gmra.mrb[40].mxu0 %vm815_vm0, %v4199_v5  ;;  %9354 = vmatprep.subr.bf16.mxu1 %v10661_v36  ;;  %v4226_v5 = vrot.slane %v10648_v28, 1  ;;  %v10672_v28 = vld [vmem:[%s11023_s5 + $0xa8] sm:$0xff]  }
  0xc1   : > { %9640 = vmatprep.mubr.msk.bf16.mxu0 %vm815_vm0, %v4201_v35 }
  0xc2   : > { %v4227_v35 = vsel %vm1675_vm2, %v4224_v40, %v4226_v5  ;;  %v10670_v40 = vld [vmem:[%s11023_s5 + $0xa0] sm:$0xff]  }
  0xc3   : > { %9355 = vmatpush3.bf16.msra.mxu1 %v10661_v36  ;;  %v11612_v36 = vld [vmem:[%s11023_s5 + $0x78] sm:$0xff]  }
  0xc4   : > { %9428 = vmatprep.subr.bf16.mxu1 %v11535_v31 }
  0xc6   : > { %9285 = vmatmul.mubr.msk.bf16.gmra.mrb[8].mxu1 %vm815_vm0, %v11527_v44 }
  0xc7   : > { %9288 = vmatprep.mubr.msk.bf16.mxu1 %vm815_vm0, %v11538_v2 }
  0xc8   : > { %9641 = vmatmul.mubr.msk.bf16.gmra.mrb[44].mxu0 %vm815_vm0, %v4203_v22  ;;  %v10653_v22 = vld [vmem:[%s11023_s5 + $0x28] sm:$0xff]  }
  0xc9   : > { %9644 = vmatprep.mubr.msk.bf16.mxu0 %vm815_vm0, %v4205_v51  ;;  %v11641_v51 = vld [vmem:[%s11023_s5 + $0x98] sm:$0xff]  }
  0xce   : > { %9289 = vmatmul.mubr.msk.bf16.gmra.mrb[12].mxu1 %vm815_vm0, %v11549_v59 }
  0xcf   : > { %9292 = vmatprep.mubr.msk.bf16.mxu1 %vm815_vm0, %v11555_v62 }
  0xd0   : > { %9645 = vmatmul.mubr.msk.bf16.gmra.mrb[48].mxu0 %vm815_vm0, %v4207_v58  ;;  %v10655_v58 = vld [vmem:[%s11023_s5 + $0x38] sm:$0xff]  }
  0xd1   : > { %9648 = vmatprep.mubr.msk.bf16.mxu0 %vm815_vm0, %v4209_v61  ;;  %v11662_v61 = vld [vmem:[%s11023_s5 + $0xa8] sm:$0xff]  }
  0xd6   : > { %9293 = vmatmul.mubr.msk.bf16.gmra.mrb[16].mxu1 %vm815_vm0, %v11565_v24 }
  0xd7   : > { %9296 = vmatprep.mubr.msk.bf16.mxu1 %vm815_vm0, %v11571_v4 }
  0xd8   : > { %9649 = vmatmul.mubr.msk.bf16.gmra.mrb[52].mxu0 %vm815_vm0, %v4211_v21  ;;  %v11684_v21 = vld [vmem:[%s11023_s5 + $0xc0] sm:$0xff]  }
  0xd9   : > { %9652 = vmatprep.mubr.msk.bf16.mxu0 %vm815_vm0, %v4213_v55  ;;  %v11692_v55 = vld [vmem:[%s12765_s1 + $0x100] sm:$0xff]  }
  0xde   : > { %9297 = vmatmul.mubr.msk.bf16.gmra.mrb[20].mxu1 %vm815_vm0, %v11581_v33 }
  0xdf   : > { %9300 = vmatprep.mubr.msk.bf16.mxu1 %vm815_vm0, %v11587_v18 }
  0xe0   : > { %9653 = vmatmul.mubr.msk.bf16.gmra.mrb[56].mxu0 %vm815_vm0, %v4215_v15  ;;  %v10660_v15 = vld [vmem:[%s11023_s5 + $0x60] sm:$0xff]  }
  0xe1   : > { %9656 = vmatprep.mubr.msk.bf16.mxu0 %vm815_vm0, %v4217_v38  ;;  %v10663_v38 = vld [vmem:[%s11023_s5 + $0x68] sm:$0xff]  }
  0xe6   : > { %9301 = vmatmul.mubr.msk.bf16.gmra.mrb[24].mxu1 %vm815_vm0, %v11596_v43 }
  0xe7   : > { %9304 = vmatprep.mubr.msk.bf16.mxu1 %vm815_vm0, %v11603_v32 }
  0xe8   : > { %9657 = vmatmul.mubr.msk.bf16.gmra.mrb[60].mxu0 %vm815_vm0, %v4219_v30  ;;  %v10665_v30 = vld [vmem:[%s11023_s5 + $0x78] sm:$0xff]  }
  0xe9   : > { %9660 = vmatprep.mubr.msk.bf16.mxu0 %vm815_vm0, %v4221_v52  ;;  %v10801_v52 = vld [vmem:[%s11023_s5 + $0x4] sm:$0xf] }
  0xee   : > { %9305 = vmatmul.mubr.msk.bf16.gmra.mrb[28].mxu1 %vm815_vm0, %v11612_v36 }
  0xef   : > { %9308 = vmatprep.mubr.msk.bf16.mxu1 %vm815_vm0, %v11618_v34 }
  0xf0   : > { %9661 = vmatmul.mubr.msk.bf16.gmra.mrb[64].mxu0 %vm815_vm0, %v4223_v60 }
  0xf1   : > { %9664 = vmatprep.mubr.msk.bf16.mxu0 %vm815_vm0, %v4225_v56  ;;  %v10674_v56 = vld [vmem:[%s11023_s5 + $0xb0] sm:$0xff]  }
  0xf6   : > { %9309 = vmatmul.mubr.msk.bf16.gmra.mrb[32].mxu1 %vm815_vm0, %v11627_v11 }
  0xf7   : > { %9312 = vmatprep.mubr.msk.bf16.mxu1 %vm815_vm0, %v11632_v12 }
  0xf8   : > { %9665 = vmatmul.mubr.msk.bf16.gmra.mrb[68].mxu0 %vm815_vm0, %v4227_v35  ;;  %v10676_v35 = vld [vmem:[%s11023_s5 + $0xb8] sm:$0xff]  }
  0xf9   : > { %9676 = vmatprep.mubr.msk.bf16.mxu0 %vm815_vm0, %v10649_v29  ;;  %v10696_v29 = vld [vmem:[%s12765_s1 + $0x70] sm:$0xff]  }
  0xfe   : > { %9313 = vmatmul.mubr.msk.bf16.gmra.mrb[36].mxu1 %vm815_vm0, %v11641_v51 }
  0xff   : > { %9316 = vmatprep.mubr.msk.bf16.mxu1 %vm815_vm0, %v11649_v54 }
 0x100   : > { %9677 = vmatmul.mubr.msk.bf16.vlgmr.msra.gmra.mrb[0].mxu0 %vm815_vm0, %v10651_v42 }
 0x101   : > { %9749 = vmatpush3.bf16.msra.mxu0 %v11414_v27  ;;  %9680 = vmatprep.mubr.msk.bf16.mxu0 %vm815_vm0, %v10653_v22  ;;  %v10685_v27 = vld [vmem:[%s12765_s1 + $0xf8] sm:$0xff]  }
 0x102   : > { %9750 = vmatprep.subr.bf16.mxu0 %v10662_v53 }
 0x105   : > { %9751 = vmatpush3.bf16.msra.mxu0 %v10662_v53  ;;  %v1687_v53 = vrot.slane %v11538_v2, 1  ;;  %v11794_v2 = vld [vmem:[%s12765_s1 + $0x80] sm:$0xff]  }
 0x106   : > { %9317 = vmatmul.mubr.msk.bf16.gmra.mrb[40].mxu1 %vm815_vm0, %v11662_v61  ;;  %9752 = vmatprep.subr.bf16.mxu0 %v10675_v57 }
 0x107   : > { %9320 = vmatprep.mubr.msk.bf16.mxu1 %vm815_vm0, %v11670_v46 }
 0x108   : > { %9681 = vmatmul.mubr.msk.bf16.gmra.mrb[4].mxu0 %vm815_vm0, %v10654_v1 }
 0x109   : > { %9684 = vmatprep.mubr.msk.bf16.mxu0 %vm815_vm0, %v10655_v58  ;;  %9753 = vmatpush3.bf16.msra.mxu0 %v10675_v57  ;;  %v1689_v57 = vrot.slane %v11549_v59, 1  ;;  %v10679_v58 = vld [vmem:[%s11023_s5 + $0xd0] sm:$0xff]   ;;  %v1691_v59 = vrot.slane %v11555_v62, 1  ;;  %v1695_v62 = vrot.slane %v11571_v4, 1  ;;  %v1699_v4 = vrot.slane %v11587_v18, 1 }
 0x10a   : > { %9754 = vmatprep.subr.bf16.mxu0 %v10685_v27  ;;  %v1703_v18 = vrot.slane %v11603_v32, 1 }
 0x10d   : > { %9755 = vmatpush3.bf16.msra.mxu0 %v10685_v27  ;;  %v1690_v27 = vsel %vm1675_vm2, %v1687_v53, %v1689_v57 }
 0x10e   : > { %9321 = vmatmul.mubr.msk.bf16.gmra.mrb[44].mxu1 %vm815_vm0, %v11679_v63  ;;  %9828 = vmatprep.subr.bf16.mxu0 %v11692_v55 }
 0x10f   : > { %9324 = vmatprep.mubr.msk.bf16.mxu1 %vm815_vm0, %v11684_v21 }
 0x110   : > { %9685 = vmatmul.mubr.msk.bf16.gmra.mrb[8].mxu0 %vm815_vm0, %v10656_v16  ;;  %v10680_v16 = vld [vmem:[%s11023_s5 + $0xd8] sm:$0xff]  }
 0x111   : > { %9688 = vmatprep.mubr.msk.bf16.mxu0 %vm815_vm0, %v10657_v23  ;;  %v1693_v23 = vrot.slane %v11565_v24, 1  ;;  %v1697_v24 = vrot.slane %v11581_v33, 1  ;;  %v1701_v33 = vrot.slane %v11596_v43, 1  ;;  %v1705_v43 = vrot.slane %v11612_v36, 1 }
 0x112   : > { %v1707_v36 = vrot.slane %v11618_v34, 1 }
 0x116   : > { %9325 = vmatmul.mubr.msk.bf16.gmra.mrb[48].mxu1 %vm815_vm0, %v11699_v6 }
 0x117   : > { %9328 = vmatprep.mubr.msk.bf16.mxu1 %vm815_vm0, %v11704_v19 }
 0x118   : > { %9689 = vmatmul.mubr.msk.bf16.gmra.mrb[12].mxu0 %vm815_vm0, %v10658_v8  ;;  %v1692_v8 = vsel %vm1675_vm2, %v1689_v57, %v1691_v59 }
 0x119   : > { %9692 = vmatprep.mubr.msk.bf16.mxu0 %vm815_vm0, %v10659_v9  ;;  %v10681_v9 = vld [vmem:[%s11023_s5 + $0xe0] sm:$0xff]  }
 0x11e   : > { %9329 = vmatmul.mubr.msk.bf16.gmra.mrb[52].mxu1 %vm815_vm0, %v11713_v50 }
 0x11f   : > { %9332 = vmatprep.mubr.msk.bf16.mxu1 %vm815_vm0, %v11376_v0  ;;  %v10666_v0 = vld [vmem:[%s11023_s5 + $0x80] sm:$0xff]  }
 0x120   : > { %9693 = vmatmul.mubr.msk.bf16.gmra.mrb[16].mxu0 %vm815_vm0, %v10660_v15  ;;  %v1694_v15 = vsel %vm1675_vm2, %v1691_v59, %v1693_v23 }
 0x121   : > { %9696 = vmatprep.mubr.msk.bf16.mxu0 %vm815_vm0, %v10663_v38  ;;  %v10682_v38 = vld [vmem:[%s11023_s5 + $0xe8] sm:$0xff]  }
 0x126   : > { %9333 = vmatmul.mubr.msk.bf16.gmra.mrb[56].mxu1 %vm815_vm0, %v11382_v7  ;;  %v1662_v7 = vld [vmem:[%s11023_s5] sm:$0xe] }
 0x127   : > { %9336 = vmatprep.mubr.msk.bf16.mxu1 %vm815_vm0, %v11389_v13  ;;  %v10668_v13 = vld [vmem:[%s11023_s5 + $0x90] sm:$0xff]   ;;  %v7987_v39 = vcombine.low %v1662_v7, %v10801_v52  ;;  %v1700_v7 = vsel %vm1675_vm2, %v1697_v24, %v1699_v4  ;;  %v1702_v52 = vsel %vm1675_vm2, %v1699_v4, %v1701_v33 }
 0x128   : > { %9697 = vmatmul.mubr.msk.bf16.gmra.mrb[20].mxu0 %vm815_vm0, %v10664_v41  ;;  %v1696_v41 = vsel %vm1675_vm2, %v1693_v23, %v1695_v62  ;;  %v1717_v23 = vrot.slane %v11662_v61, 1 }
 0x129   : > { %9700 = vmatprep.mubr.msk.bf16.mxu0 %vm815_vm0, %v10665_v30  ;;  %v10683_v30 = vld [vmem:[%s11023_s5 + $0xf0] sm:$0xff]  }
 0x12e   : > { %9337 = vmatmul.mubr.msk.bf16.gmra.mrb[60].mxu1 %vm815_vm0, %v11395_v20  ;;  %v1676_v20 = vrot.slane %v7987_v39, 1  ;;  %v10688_v39 = vld [vmem:[%s11023_s5 + $0x108] sm:$0xff]  }
 0x12f   : > { %9340 = vmatprep.mubr.msk.bf16.mxu1 %vm815_vm0, %v11399_v45  ;;  %v1677_v45 = vrot.slane %v11488_v25, 1 }
 0x130   : > { %9701 = vmatmul.mubr.msk.bf16.gmra.mrb[24].mxu0 %vm815_vm0, %v10666_v0  ;;  %v1698_v0 = vsel %vm1675_vm2, %v1695_v62, %v1697_v24  ;;  %v11887_v62 = vld [vmem:[%s11023_s5 + $0x40] sm:$0xff]  }
 0x131   : > { %9704 = vmatprep.mubr.msk.bf16.mxu0 %vm815_vm0, %v10667_v17  ;;  %v1678_v60 = vsel %vm1675_vm2, %v1676_v20, %v1677_v45  ;;  %v10686_v17 = vld [vmem:[%s11023_s5 + $0xf8] sm:$0xff]   ;;  %v5844_v4 = vshll.u32 %v11887_v62, 16 }
 0x132   : > { %v5539_v20 = vld [vmem:[%s11023_s5 + $0x18] sm:$0xf] }
 0x136   : > { %9341 = vmatmul.mubr.msk.bf16.gmra.mrb[64].mxu1 %vm815_vm0, %v11406_v26  ;;  %v1679_v26 = vrot.slane %v11495_v3, 1  ;;  %v1683_v3 = vrot.slane %v11517_v37, 1  ;;  %v10707_v37 = vld [vmem:[%s12765_s1 + $0x78] sm:$0xff]  }
 0x137   : > { %9344 = vmatprep.mubr.msk.bf16.mxu1 %vm815_vm0, %v11430_v47  ;;  %v1681_v47 = vrot.slane %v11511_v14, 1  ;;  %v1685_v14 = vrot.slane %v11527_v44, 1  ;;  %v10678_v44 = vld [vmem:[%s11023_s5 + $0xc8] sm:$0xff]  }
 0x138   : > { %9705 = vmatmul.mubr.msk.bf16.gmra.mrb[28].mxu0 %vm815_vm0, %v10668_v13  ;;  %v1680_v25 = vsel %vm1675_vm2, %v1677_v45, %v1679_v26  ;;  %v10687_v13 = vld [vmem:[%s11023_s5 + $0x100] sm:$0xff]   ;;  %v11837_v45 = vld [vmem:[%s11023_s5 + $0x1c] sm:$0xf] }
 0x139   : > { %9708 = vmatprep.mubr.msk.bf16.mxu0 %vm815_vm0, %v10669_v10  ;;  %v1682_v5 = vsel %vm1675_vm2, %v1679_v26, %v1681_v47  ;;  %v1684_v42 = vsel %vm1675_vm2, %v1681_v47, %v1683_v3  ;;  %v1686_v22 = vsel %vm1675_vm2, %v1683_v3, %v1685_v14  ;;  %v1688_v1 = vsel %vm1675_vm2, %v1685_v14, %v1687_v53  ;;  %v11850_v47 = vld [vmem:[%s11023_s5 + $0x20] sm:$0xff]   ;;  %v10693_v53 = vld [vmem:[%s11023_s5 + $0x130] sm:$0xff]  }
 0x13a   : > { %v1704_v10 = vsel %vm1675_vm2, %v1701_v33, %v1703_v18  ;;  %v8338_v32 = vcombine.low %v5539_v20, %v11837_v45  ;;  %v1709_v26 = vrot.slane %v11627_v11, 1  ;;  %v5812_v11 = vshll.u32 %v11850_v47, 16  ;;  %v10708_v33 = vld [vmem:[%s12765_s1 + $0x108] sm:$0xff]   ;;  %v11911_v20 = vld [vmem:[%s11023_s5 + $0x50] sm:$0xff]  }
 0x13b   : > { %v1711_v14 = vrot.slane %v11632_v12, 1 }
 0x13c   : > { %v5805_v34 = vshrl.u32 %v8338_v32, 16 }
 0x13e   : > { %9345 = vmatmul.mubr.msk.bf16.gmra.mrb[68].mxu1 %vm815_vm0, %v11435_v48  ;;  %v10684_v48 = vld [vmem:[%s12765_s1 + $0x68] sm:$0xff]  }
 0x13f   : > { %9356 = vmatprep.mubr.msk.bf16.mxu1 %vm815_vm0, %v1678_v60  ;;  %v1706_v60 = vsel %vm1675_vm2, %v1703_v18, %v1705_v43 }
 0x140   : > { %9709 = vmatmul.mubr.msk.bf16.gmra.mrb[32].mxu0 %vm815_vm0, %v10670_v40  ;;  %v10689_v40 = vld [vmem:[%s11023_s5 + $0x110] sm:$0xff]  }
 0x141   : > { %9712 = vmatprep.mubr.msk.bf16.mxu0 %vm815_vm0, %v10672_v28  ;;  %v10690_v28 = vld [vmem:[%s11023_s5 + $0x118] sm:$0xff]  }
 0x146   : > { %9357 = vmatmul.mubr.msk.bf16.vlgmr.msra.gmra.mrb[0].mxu1 %vm815_vm0, %v1680_v25  ;;  %v5807_v25 = vshll.u32 %v8338_v32, 16 }
 0x147   : > { %9429 = vmatpush3.bf16.msra.mxu1 %v11535_v31  ;;  %9360 = vmatprep.mubr.msk.bf16.mxu1 %vm815_vm0, %v1682_v5  ;;  %v10677_v31 = vld [vmem:[%s11023_s5 + $0xc0] sm:$0xff]  }
 0x148   : > { %9713 = vmatmul.mubr.msk.bf16.gmra.mrb[36].mxu0 %vm815_vm0, %v10674_v56  ;;  %9430 = vmatprep.subr.bf16.mxu1 %v10684_v48  ;;  %v1708_v56 = vsel %vm1675_vm2, %v1705_v43, %v1707_v36  ;;  %v10691_v5 = vld [vmem:[%s11023_s5 + $0x120] sm:$0xff]   ;;  %v5809_v3 = vrot.slane %v5807_v25, 1  ;;  %v10738_v25 = vld [vmem:[%s12765_s1 + $0x118] sm:$0xff]  }
 0x149   : > { %9716 = vmatprep.mubr.msk.bf16.mxu0 %vm815_vm0, %v10676_v35  ;;  %v10692_v35 = vld [vmem:[%s11023_s5 + $0x128] sm:$0xff]  }
 0x14b   : > { %9431 = vmatpush3.bf16.msra.mxu1 %v10684_v48  ;;  %v1710_v48 = vsel %vm1675_vm2, %v1707_v36, %v1709_v26 }
 0x14c   : > { %9432 = vmatprep.subr.bf16.mxu1 %v10696_v29 }
 0x14e   : > { %9361 = vmatmul.mubr.msk.bf16.gmra.mrb[4].mxu1 %vm815_vm0, %v1684_v42  ;;  %v11863_v42 = vld [vmem:[%s11023_s5 + $0x28] sm:$0xff]  }
 0x14f   : > { %9364 = vmatprep.mubr.msk.bf16.mxu1 %vm815_vm0, %v1686_v22  ;;  %9433 = vmatpush3.bf16.msra.mxu1 %v10696_v29  ;;  %v1713_v29 = vrot.slane %v11641_v51, 1  ;;  %v5814_v22 = vrot.slane %v5812_v11, 1  ;;  %v5820_v12 = vshll.u32 %v11863_v42, 16 }
 0x150   : > { %9717 = vmatmul.mubr.msk.bf16.gmra.mrb[40].mxu0 %vm815_vm0, %v10677_v31  ;;  %9434 = vmatprep.subr.bf16.mxu1 %v10707_v37  ;;  %v5810_v31 = vor.u32 %v5809_v3, %v5805_v34 }
 0x151   : > { %9720 = vmatprep.mubr.msk.bf16.mxu0 %vm815_vm0, %v10678_v44  ;;  %v1712_v44 = vsel %vm1675_vm2, %v1709_v26, %v1711_v14  ;;  %v1714_v57 = vsel %vm1675_vm2, %v1711_v14, %v1713_v29  ;;  %v5822_v59 = vrot.slane %v5820_v12, 1  ;;  %v5860_v26 = vshll.u32 %v11911_v20, 16  ;;  %v11937_v14 = vld [vmem:[%s11023_s5 + $0x60] sm:$0xff]  }
 0x152   : > { %v5815_v51 = vsel %vm498_vm1, %v5810_v31, %v5814_v22  ;;  %v1727_v12 = vrot.slane %v11704_v19, 1 }
 0x153   : > { %9435 = vmatpush3.bf16.msra.mxu1 %v10707_v37  ;;  %v11867_v37 = vld [vmem:[%s11023_s5 + $0x30] sm:$0xff]   ;;  %v5862_v11 = vrot.slane %v5860_v26, 1 }
 0x154   : > { %9908 = vmatprep.subr.bf16.mxu1 %v11794_v2  ;;  %v5832_v61 = vshrl.u32 %v11867_v37, 16 }
 0x156   : > { %9365 = vmatmul.mubr.msk.bf16.gmra.mrb[8].mxu1 %vm815_vm0, %v1688_v1  ;;  %v5816_v1 = vshrl.u32 %v11850_v47, 16 }
 0x157   : > { %9368 = vmatprep.mubr.msk.bf16.mxu1 %vm815_vm0, %v1690_v27  ;;  %v5828_v27 = vshll.u32 %v11867_v37, 16 }
 0x158   : > { %9721 = vmatmul.mubr.msk.bf16.gmra.mrb[44].mxu0 %vm815_vm0, %v10679_v58  ;;  %v5824_v58 = vshrl.u32 %v11863_v42, 16 }
 0x159   : > { %9724 = vmatprep.mubr.msk.bf16.mxu0 %vm815_vm0, %v10680_v16  ;;  %v1715_v16 = vrot.slane %v11649_v54, 1 }
 0x15b   : > { %v1716_v24 = vsel %vm1675_vm2, %v1713_v29, %v1715_v16 }
 0x15e   : > { %9369 = vmatmul.mubr.msk.bf16.gmra.mrb[12].mxu1 %vm815_vm0, %v1692_v8  ;;  %v11883_v8 = vld [vmem:[%s11023_s5 + $0x38] sm:$0xff]  }
 0x15f   : > { %9372 = vmatprep.mubr.msk.bf16.mxu1 %vm815_vm0, %v1694_v15  ;;  %v5826_v15 = vor.u32 %v5824_v58, %v5822_v59  ;;  %v5836_v54 = vshll.u32 %v11883_v8, 16  ;;  %v11953_v58 = vld [vmem:[%s11023_s5 + $0x68] sm:$0xff]  }
 0x160   : > { %9725 = vmatmul.mubr.msk.bf16.gmra.mrb[48].mxu0 %vm815_vm0, %v10681_v9  ;;  %v5818_v9 = vor.u32 %v5816_v1, %v5814_v22  ;;  %v5864_v22 = vshrl.u32 %v11911_v20, 16 }
 0x161   : > { %9728 = vmatprep.mubr.msk.bf16.mxu0 %vm815_vm0, %v10682_v38  ;;  %v5830_v38 = vrot.slane %v5828_v27, 1 }
 0x162   : > { %v5866_v27 = vor.u32 %v5864_v22, %v5862_v11 }
 0x163   : > { %v5834_v18 = vor.u32 %v5832_v61, %v5830_v38 }
 0x166   : > { %9373 = vmatmul.mubr.msk.bf16.gmra.mrb[16].mxu1 %vm815_vm0, %v1696_v41  ;;  %v1718_v41 = vsel %vm1675_vm2, %v1715_v16, %v1717_v23 }
 0x167   : > { %9376 = vmatprep.mubr.msk.bf16.mxu1 %vm815_vm0, %v1698_v0  ;;  %v5831_v0 = vsel %vm498_vm1, %v5826_v15, %v5830_v38  ;;  %v5884_v15 = vshll.u32 %v11953_v58, 16  ;;  %v5880_v38 = vshrl.u32 %v11937_v14, 16 }
 0x168   : > { %9729 = vmatmul.mubr.msk.bf16.gmra.mrb[52].mxu0 %vm815_vm0, %v10683_v30  ;;  %v5823_v30 = vsel %vm498_vm1, %v5818_v9, %v5822_v59 }
 0x169   : > { %9732 = vmatprep.mubr.msk.bf16.mxu0 %vm815_vm0, %v10686_v17  ;;  %v5840_v17 = vshrl.u32 %v11883_v8, 16 }
 0x16e   : > { %9377 = vmatmul.mubr.msk.bf16.gmra.mrb[20].mxu1 %vm815_vm0, %v1700_v7  ;;  %v1719_v7 = vrot.slane %v11670_v46, 1  ;;  %v10721_v46 = vld [vmem:[%s12765_s1 + $0x110] sm:$0xff]  }
 0x16f   : > { %9380 = vmatprep.mubr.msk.bf16.mxu1 %vm815_vm0, %v1702_v52  ;;  %v1721_v52 = vrot.slane %v11679_v63, 1 }
 0x170   : > { %9733 = vmatmul.mubr.msk.bf16.gmra.mrb[56].mxu0 %vm815_vm0, %v10687_v13  ;;  %v5838_v13 = vrot.slane %v5836_v54, 1 }
 0x171   : > { %9736 = vmatprep.mubr.msk.bf16.mxu0 %vm815_vm0, %v10688_v39  ;;  %v11906_v39 = vld [vmem:[%s11023_s5 + $0x48] sm:$0xff]   ;;  %v1722_v63 = vsel %vm1675_vm2, %v1719_v7, %v1721_v52 }
 0x172   : > { %v5842_v43 = vor.u32 %v5840_v17, %v5838_v13  ;;  %v5856_v36 = vshrl.u32 %v11906_v39, 16  ;;  %v10804_v17 = vld [vmem:[%s11023_s5 + $0xe8] sm:$0xff]  }
 0x176   : > { %9381 = vmatmul.mubr.msk.bf16.gmra.mrb[24].mxu1 %vm815_vm0, %v1704_v10  ;;  %v5846_v10 = vrot.slane %v5844_v4, 1  ;;  %v1733_v4 = vrot.slane %v10804_v17, 1 }
 0x177   : > { %9384 = vmatprep.mubr.msk.bf16.mxu1 %vm815_vm0, %v1706_v60  ;;  %v5852_v60 = vshll.u32 %v11906_v39, 16 }
 0x178   : > { %9737 = vmatmul.mubr.msk.bf16.gmra.mrb[60].mxu0 %vm815_vm0, %v10689_v40  ;;  %v1720_v40 = vsel %vm1675_vm2, %v1717_v23, %v1719_v7  ;;  %v5847_v32 = vsel %vm498_vm1, %v5842_v43, %v5846_v10  ;;  %v11957_v23 = vld [vmem:[%s11023_s5 + $0x70] sm:$0xff]  }
 0x179   : > { %9740 = vmatprep.mubr.msk.bf16.mxu0 %vm815_vm0, %v10690_v28  ;;  %v5848_v28 = vshrl.u32 %v11887_v62, 16  ;;  %v5892_v54 = vshll.u32 %v11957_v23, 16 }
 0x17b   : > { %v5850_v34 = vor.u32 %v5848_v28, %v5846_v10 }
 0x17e   : > { %9385 = vmatmul.mubr.msk.bf16.gmra.mrb[28].mxu1 %vm815_vm0, %v1708_v56  ;;  %v1723_v56 = vrot.slane %v11684_v21, 1 }
 0x17f   : > { %9388 = vmatprep.mubr.msk.bf16.mxu1 %vm815_vm0, %v1710_v48  ;;  %v1725_v48 = vrot.slane %v11699_v6, 1 }
 0x180   : > { %9741 = vmatmul.mubr.msk.bf16.gmra.mrb[64].mxu0 %vm815_vm0, %v10691_v5  ;;  %v5854_v5 = vrot.slane %v5852_v60, 1  ;;  %v1724_v29 = vsel %vm1675_vm2, %v1721_v52, %v1723_v56  ;;  %v5894_v52 = vrot.slane %v5892_v54, 1 }
 0x181   : > { %9744 = vmatprep.mubr.msk.bf16.mxu0 %vm815_vm0, %v10692_v35  ;;  %v11933_v35 = vld [vmem:[%s11023_s5 + $0x58] sm:$0xff]   ;;  %v1726_v21 = vsel %vm1675_vm2, %v1723_v56, %v1725_v48  ;;  %v1728_v9 = vsel %vm1675_vm2, %v1725_v48, %v1727_v12 }
 0x182   : > { %v5858_v3 = vor.u32 %v5856_v36, %v5854_v5  ;;  %v5868_v31 = vshll.u32 %v11933_v35, 16  ;;  %v5855_v6 = vsel %vm498_vm1, %v5850_v34, %v5854_v5  ;;  %v11993_v5 = vld [vmem:[%s11023_s5 + $0x88] sm:$0xff]  }
 0x184   : > { %v5870_v1 = vrot.slane %v5868_v31, 1  ;;  %v5916_v31 = vshll.u32 %v11993_v5, 16 }
 0x186   : > { %9389 = vmatmul.mubr.msk.bf16.gmra.mrb[32].mxu1 %vm815_vm0, %v1712_v44  ;;  %v5863_v44 = vsel %vm498_vm1, %v5858_v3, %v5862_v11  ;;  %v11997_v11 = vld [vmem:[%s11023_s5 + $0x90] sm:$0xff]  }
 0x187   : > { %9392 = vmatprep.mubr.msk.bf16.mxu1 %vm815_vm0, %v1714_v57  ;;  %v5876_v57 = vshll.u32 %v11937_v14, 16 }
 0x188   : > { %9745 = vmatmul.mubr.msk.bf16.gmra.mrb[68].mxu0 %vm815_vm0, %v10693_v53  ;;  %v5872_v53 = vshrl.u32 %v11933_v35, 16 }
 0x189   : > { %9756 = vmatprep.mubr.msk.bf16.mxu0 %vm815_vm0, %v5815_v51  ;;  %v1729_v51 = vrot.slane %v11713_v50, 1  ;;  %v5878_v59 = vrot.slane %v5876_v57, 1  ;;  %v5871_v50 = vsel %vm498_vm1, %v5866_v27, %v5870_v1  ;;  %v5924_v57 = vshll.u32 %v11997_v11, 16  ;;  %v10808_v27 = vld [vmem:[%s11023_s5 + $0x108] sm:$0xff]  }
 0x18a   : > { %v5874_v16 = vor.u32 %v5872_v53, %v5870_v1  ;;  %v5920_v53 = vshrl.u32 %v11993_v5, 16 }
 0x18b   : > { %v1730_v19 = vsel %vm1675_vm2, %v1727_v12, %v1729_v51  ;;  %v5882_v7 = vor.u32 %v5880_v38, %v5878_v59  ;;  %v10807_v12 = vld [vmem:[%s11023_s5 + $0x100] sm:$0xff]  }
 0x18c   : > { %v1739_v1 = vrot.slane %v10807_v12, 1 }
 0x18e   : > { %9393 = vmatmul.mubr.msk.bf16.gmra.mrb[36].mxu1 %vm815_vm0, %v1716_v24  ;;  %v5879_v24 = vsel %vm498_vm1, %v5874_v16, %v5878_v59  ;;  %v1741_v16 = vrot.slane %v10808_v27, 1  ;;  %v12013_v59 = vld [vmem:[%s11023_s5 + $0x98] sm:$0xff]  }
 0x18f   : > { %9396 = vmatprep.mubr.msk.bf16.mxu1 %vm815_vm0, %v1718_v41  ;;  %v5888_v41 = vshrl.u32 %v11953_v58, 16 }
 0x190   : > { %9757 = vmatmul.mubr.msk.bf16.vlgmr.msra.gmra.mrb[0].mxu0 %vm815_vm0, %v5823_v30  ;;  %v10803_v30 = vld [vmem:[%s11023_s5 + $0xe0] sm:$0xff]  }
 0x191   : > { %9829 = vmatpush3.bf16.msra.mxu0 %v11692_v55  ;;  %9760 = vmatprep.mubr.msk.bf16.mxu0 %vm815_vm0, %v5831_v0  ;;  %v5839_v55 = vsel %vm498_vm1, %v5834_v18, %v5838_v13  ;;  %v1731_v61 = vrot.slane %v10803_v30, 1  ;;  %v5886_v0 = vrot.slane %v5884_v15, 1  ;;  %v11977_v18 = vld [vmem:[%s11023_s5 + $0x80] sm:$0xff]   ;;  %v5926_v15 = vrot.slane %v5924_v57, 1  ;;  %v10717_v57 = vld [vmem:[%s11023_s5 + $0xc] sm:$0xff]  }
 0x192   : > { %9830 = vmatprep.subr.bf16.mxu0 %v10708_v33  ;;  %v5908_v28 = vshll.u32 %v11977_v18, 16  ;;  %v5912_v22 = vshrl.u32 %v11977_v18, 16  ;;  %v5928_v30 = vshrl.u32 %v11997_v11, 16 }
 0x193   : > { %v5890_v13 = vor.u32 %v5888_v41, %v5886_v0  ;;  %v1732_v43 = vsel %vm1675_vm2, %v1729_v51, %v1731_v61  ;;  %v1734_v10 = vsel %vm1675_vm2, %v1731_v61, %v1733_v4  ;;  %v5918_v51 = vrot.slane %v5916_v31, 1 }
 0x194   : > { %v5910_v3 = vrot.slane %v5908_v28, 1  ;;  %v5932_v41 = vshll.u32 %v12013_v59, 16 }
 0x195   : > { %9831 = vmatpush3.bf16.msra.mxu0 %v10708_v33  ;;  %v11973_v33 = vld [vmem:[%s11023_s5 + $0x78] sm:$0xff]   ;;  %v5895_v60 = vsel %vm498_vm1, %v5890_v13, %v5894_v52 }
 0x196   : > { %9397 = vmatmul.mubr.msk.bf16.gmra.mrb[40].mxu1 %vm815_vm0, %v1720_v40  ;;  %9832 = vmatprep.subr.bf16.mxu0 %v10721_v46  ;;  %v5887_v40 = vsel %vm498_vm1, %v5882_v7, %v5886_v0  ;;  %v5936_v0 = vshrl.u32 %v12013_v59, 16  ;;  %v5934_v13 = vrot.slane %v5932_v41, 1 }
 0x197   : > { %9400 = vmatprep.mubr.msk.bf16.mxu1 %vm815_vm0, %v1722_v63  ;;  %v5896_v63 = vshrl.u32 %v11957_v23, 16 }
 0x198   : > { %9761 = vmatmul.mubr.msk.bf16.gmra.mrb[4].mxu0 %vm815_vm0, %v5839_v55  ;;  %v5904_v55 = vshrl.u32 %v11973_v33, 16 }
 0x199   : > { %9764 = vmatprep.mubr.msk.bf16.mxu0 %vm815_vm0, %v5847_v32  ;;  %9833 = vmatpush3.bf16.msra.mxu0 %v10721_v46  ;;  %v5900_v46 = vshll.u32 %v11973_v33, 16  ;;  %v10805_v32 = vld [vmem:[%s11023_s5 + $0xf0] sm:$0xff]   ;;  %v5898_v48 = vor.u32 %v5896_v63, %v5894_v52  ;;  %v10810_v52 = vld [vmem:[%s11023_s5 + $0x118] sm:$0xff]  }
 0x19a   : > { %9834 = vmatprep.subr.bf16.mxu0 %v10738_v25  ;;  %v1735_v36 = vrot.slane %v10805_v32, 1 }
 0x19b   : > { %v5902_v26 = vrot.slane %v5900_v46, 1  ;;  %v5930_v46 = vor.u32 %v5928_v30, %v5926_v15  ;;  %v12075_v30 = vld [vmem:[%s11023_s5 + $0xd0] sm:$0xff]  }
 0x19d   : > { %9835 = vmatpush3.bf16.msra.mxu0 %v10738_v25  ;;  %v10806_v25 = vld [vmem:[%s11023_s5 + $0xf8] sm:$0xff]   ;;  %v5906_v34 = vor.u32 %v5904_v55, %v5902_v26 }
 0x19e   : > { %9401 = vmatmul.mubr.msk.bf16.gmra.mrb[44].mxu1 %vm815_vm0, %v1724_v29  ;;  %v1737_v56 = vrot.slane %v10806_v25, 1  ;;  %v1736_v29 = vsel %vm1675_vm2, %v1733_v4, %v1735_v36  ;;  %v10809_v4 = vld [vmem:[%s11023_s5 + $0x110] sm:$0xff]  }
 0x19f   : > { %9404 = vmatprep.mubr.msk.bf16.mxu1 %vm815_vm0, %v1726_v21  ;;  %v1743_v7 = vrot.slane %v10809_v4, 1 }
 0x1a0   : > { %9765 = vmatmul.mubr.msk.bf16.gmra.mrb[8].mxu0 %vm815_vm0, %v5855_v6  ;;  %v1738_v21 = vsel %vm1675_vm2, %v1735_v36, %v1737_v56  ;;  %v5903_v6 = vsel %vm498_vm1, %v5898_v48, %v5902_v26  ;;  %v1740_v38 = vsel %vm1675_vm2, %v1737_v56, %v1739_v1  ;;  %v5935_v36 = vsel %vm498_vm1, %v5930_v46, %v5934_v13  ;;  %v12089_v46 = vld [vmem:[%s11023_s5 + $0xd8] sm:$0xff]  }
 0x1a1   : > { %9768 = vmatprep.mubr.msk.bf16.mxu0 %vm815_vm0, %v5863_v44  ;;  %v5911_v44 = vsel %vm498_vm1, %v5906_v34, %v5910_v3  ;;  %v1744_v55 = vsel %vm1675_vm2, %v1741_v16, %v1743_v7  ;;  %v10811_v34 = vld [vmem:[%s11023_s5 + $0x120] ss:$0 sps:$4 sm:$0x11]  }
 0x1a6   : > { %9405 = vmatmul.mubr.msk.bf16.gmra.mrb[48].mxu1 %vm815_vm0, %v1728_v9  ;;  %v5914_v9 = vor.u32 %v5912_v22, %v5910_v3  ;;  %v1747_v3 = vrot.slane %v10811_v34, 1 }
 0x1a7   : > { %9408 = vmatprep.mubr.msk.bf16.mxu1 %vm815_vm0, %v1730_v19  ;;  %v5922_v19 = vor.u32 %v5920_v53, %v5918_v51 }
 0x1a8   : > { %9769 = vmatmul.mubr.msk.bf16.gmra.mrb[12].mxu0 %vm815_vm0, %v5871_v50  ;;  %v12017_v50 = vld [vmem:[%s11023_s5 + $0xa0] sm:$0xff]   ;;  %v5919_v54 = vsel %vm498_vm1, %v5914_v9, %v5918_v51 }
 0x1a9   : > { %9772 = vmatprep.mubr.msk.bf16.mxu0 %vm815_vm0, %v5879_v24  ;;  %v1742_v24 = vsel %vm1675_vm2, %v1739_v1, %v1741_v16  ;;  %v5927_v61 = vsel %vm498_vm1, %v5922_v19, %v5926_v15  ;;  %v5940_v17 = vshll.u32 %v12017_v50, 16  ;;  %v5944_v26 = vshrl.u32 %v12017_v50, 16  ;;  %v12070_v15 = vld [vmem:[%s11023_s5 + $0xc8] sm:$0xff]  }
 0x1ab   : > { %v5942_v63 = vrot.slane %v5940_v17, 1 }
 0x1ad   : > { %v5946_v31 = vor.u32 %v5944_v26, %v5942_v63  ;;  %v5996_v26 = vshll.u32 %v12089_v46, 16 }
 0x1ae   : > { %9409 = vmatmul.mubr.msk.bf16.gmra.mrb[52].mxu1 %vm815_vm0, %v1732_v43  ;;  %v1745_v43 = vrot.slane %v10810_v52, 1  ;;  %v5988_v52 = vshll.u32 %v12075_v30, 16 }
 0x1af   : > { %9412 = vmatprep.mubr.msk.bf16.mxu1 %vm815_vm0, %v1734_v10  ;;  %v12033_v10 = vld [vmem:[%s11023_s5 + $0xa8] sm:$0xff]  }
 0x1b0   : > { %9773 = vmatmul.mubr.msk.bf16.gmra.mrb[16].mxu0 %vm815_vm0, %v5887_v40  ;;  %v5938_v40 = vor.u32 %v5936_v0, %v5934_v13  ;;  %v1746_v28 = vsel %vm1675_vm2, %v1743_v7, %v1745_v43  ;;  %v5948_v32 = vshll.u32 %v12033_v10, 16  ;;  %v5952_v56 = vshrl.u32 %v12033_v10, 16 }
 0x1b1   : > { %9776 = vmatprep.mubr.msk.bf16.mxu0 %vm815_vm0, %v5895_v60  ;;  %v12037_v60 = vld [vmem:[%s11023_s5 + $0xb0] sm:$0xff]   ;;  %v1748_v53 = vsel %vm1675_vm2, %v1745_v43, %v1747_v3  ;;  %v5980_v0 = vshll.u32 %v12070_v15, 16  ;;  %v5984_v13 = vshrl.u32 %v12070_v15, 16  ;;  %v6000_v3 = vshrl.u32 %v12089_v46, 16 }
 0x1b2   : > { %v5943_v25 = vsel %vm498_vm1, %v5938_v40, %v5942_v63  ;;  %v5956_v48 = vshll.u32 %v12037_v60, 16  ;;  %v5960_v51 = vshrl.u32 %v12037_v60, 16  ;;  %v10812_v40 = vld [vmem:[%s12765_s1 + $0x88] sm:$0xff]  }
 0x1b3   : > { %v5982_v43 = vrot.slane %v5980_v0, 1 }
 0x1b4   : > { %v5958_v22 = vrot.slane %v5956_v48, 1  ;;  %v5992_v48 = vshrl.u32 %v12075_v30, 16 }
 0x1b6   : > { %9413 = vmatmul.mubr.msk.bf16.gmra.mrb[56].mxu1 %vm815_vm0, %v1736_v29  ;;  %v5950_v29 = vrot.slane %v5948_v32, 1  ;;  %v5990_v32 = vrot.slane %v5988_v52, 1  ;;  %v10734_v52 = vld [vmem:[%s11023_s5 + $0x4c] sm:$0xff]  }
 0x1b7   : > { %9416 = vmatprep.mubr.msk.bf16.mxu1 %vm815_vm0, %v1738_v21  ;;  %v12052_v21 = vld [vmem:[%s11023_s5 + $0xb8] sm:$0xff]  }
 0x1b8   : > { %9777 = vmatmul.mubr.msk.bf16.gmra.mrb[20].mxu0 %vm815_vm0, %v5903_v6  ;;  %v5954_v6 = vor.u32 %v5952_v56, %v5950_v29  ;;  %v5964_v12 = vshll.u32 %v12052_v21, 16  ;;  %v5951_v1 = vsel %vm498_vm1, %v5946_v31, %v5950_v29  ;;  %v5968_v16 = vshrl.u32 %v12052_v21, 16 }
 0x1b9   : > { %9780 = vmatprep.mubr.msk.bf16.mxu0 %vm815_vm0, %v5911_v44  ;;  %v12056_v44 = vld [vmem:[%s11023_s5 + $0xc0] sm:$0xff]   ;;  %v5998_v31 = vrot.slane %v5996_v26, 1  ;;  %v12152_v26 = vld [vmem:[%s11023_s5 + $0x108] sm:$0xff]  }
 0x1ba   : > { %v5959_v27 = vsel %vm498_vm1, %v5954_v6, %v5958_v22  ;;  %v5972_v9 = vshll.u32 %v12056_v44, 16  ;;  %v5966_v19 = vrot.slane %v5964_v12, 1  ;;  %v5976_v4 = vshrl.u32 %v12056_v44, 16  ;;  %v12113_v6 = vld [vmem:[%s11023_s5 + $0xe8] sm:$0xff]  }
 0x1bb   : > { %v6002_v12 = vor.u32 %v6000_v3, %v5998_v31  ;;  %v12157_v3 = vld [vmem:[%s11023_s5 + $0x110] sm:$0xff]  }
 0x1bc   : > { %v5970_v41 = vor.u32 %v5968_v16, %v5966_v19  ;;  %v6012_v16 = vshll.u32 %v12113_v6, 16 }
 0x1be   : > { %9417 = vmatmul.mubr.msk.bf16.gmra.mrb[60].mxu1 %vm815_vm0, %v1740_v38  ;;  %v5962_v38 = vor.u32 %v5960_v51, %v5958_v22  ;;  %v10814_v22 = vld [vmem:[%s12765_s1 + $0x98] sm:$0xff]   ;;  %v12121_v51 = vld [vmem:[%s11023_s5 + $0xf0] sm:$0xff]  }
 0x1bf   : > { %9420 = vmatprep.mubr.msk.bf16.mxu1 %vm815_vm0, %v1742_v24  ;;  %v10719_v24 = vld [vmem:[%s11023_s5 + $0x14] sm:$0xff]  }
 0x1c0   : > { %9781 = vmatmul.mubr.msk.bf16.gmra.mrb[24].mxu0 %vm815_vm0, %v5919_v54  ;;  %v5974_v54 = vrot.slane %v5972_v9, 1  ;;  %v5967_v17 = vsel %vm498_vm1, %v5962_v38, %v5966_v19 }
 0x1c1   : > { %9784 = vmatprep.mubr.msk.bf16.mxu0 %vm815_vm0, %v5927_v61  ;;  %v10722_v61 = vld [vmem:[%s11023_s5 + $0x1c] sm:$0xff]  }
 0x1c2   : > { %v5975_v7 = vsel %vm498_vm1, %v5970_v41, %v5974_v54  ;;  %v5978_v63 = vor.u32 %v5976_v4, %v5974_v54  ;;  %v6020_v41 = vshll.u32 %v12121_v51, 16  ;;  %v6014_v54 = vrot.slane %v6012_v16, 1  ;;  %v12170_v16 = vld [vmem:[%s11023_s5 + $0x118] sm:$0xff]  }
 0x1c4   : > { %v5983_v56 = vsel %vm498_vm1, %v5978_v63, %v5982_v43  ;;  %v6024_v63 = vshrl.u32 %v12121_v51, 16 }
 0x1c6   : > { %9421 = vmatmul.mubr.msk.bf16.gmra.mrb[64].mxu1 %vm815_vm0, %v1744_v55  ;;  %v10724_v55 = vld [vmem:[%s11023_s5 + $0x24] sm:$0xff]  }
 0x1c7   : > { %9424 = vmatprep.mubr.msk.bf16.mxu1 %vm815_vm0, %v1746_v28  ;;  %v5986_v28 = vor.u32 %v5984_v13, %v5982_v43  ;;  %v12139_v13 = vld [vmem:[%s11023_s5 + $0x100] sm:$0xff]  }
 0x1c8   : > { %9785 = vmatmul.mubr.msk.bf16.gmra.mrb[28].mxu0 %vm815_vm0, %v5935_v36  ;;  %v12097_v36 = vld [vmem:[%s11023_s5 + $0xe0] sm:$0xff]  }
 0x1c9   : > { %9788 = vmatprep.mubr.msk.bf16.mxu0 %vm815_vm0, %v5943_v25  ;;  %v10813_v25 = vld [vmem:[%s12765_s1 + $0x90] sm:$0xff]   ;;  %v5991_v34 = vsel %vm498_vm1, %v5986_v28, %v5990_v32  ;;  %v6004_v29 = vshll.u32 %v12097_v36, 16  ;;  %v6008_v19 = vshrl.u32 %v12097_v36, 16 }
 0x1ce   : > { %9425 = vmatmul.mubr.msk.bf16.gmra.mrb[68].mxu1 %vm815_vm0, %v1748_v53  ;;  %v5994_v53 = vor.u32 %v5992_v48, %v5990_v32  ;;  %v6036_v32 = vshll.u32 %v12139_v13, 16 }
 0x1cf   : > { %9436 = vmatprep.mubr.msk.bf16.mxu1 %vm815_vm0, %v10717_v57  ;;  %v10728_v57 = vld [vmem:[%s11023_s5 + $0x34] sm:$0xff]  }
 0x1d0   : > { %9789 = vmatmul.mubr.msk.bf16.gmra.mrb[32].mxu0 %vm815_vm0, %v5951_v1  ;;  %v6006_v1 = vrot.slane %v6004_v29, 1  ;;  %v5999_v9 = vsel %vm498_vm1, %v5994_v53, %v5998_v31  ;;  %v10739_v29 = vld [vmem:[%s11023_s5 + $0x5c] sm:$0xff]   ;;  %v6044_v31 = vshll.u32 %v12152_v26, 16  ;;  %v6040_v53 = vshrl.u32 %v12139_v13, 16 }
 0x1d1   : > { %9792 = vmatprep.mubr.msk.bf16.mxu0 %vm815_vm0, %v5959_v27  ;;  %v10730_v27 = vld [vmem:[%s11023_s5 + $0x3c] sm:$0xff]  }
 0x1d2   : > { %v6007_v38 = vsel %vm498_vm1, %v6002_v12, %v6006_v1  ;;  %v6010_v0 = vor.u32 %v6008_v19, %v6006_v1  ;;  %v6048_v12 = vshrl.u32 %v12152_v26, 16  ;;  %v6052_v1 = vshll.u32 %v12157_v3, 16  ;;  %v10741_v19 = vld [vmem:[%s11023_s5 + $0x64] sm:$0xff]  }
 0x1d6   : > { %9437 = vmatmul.mubr.msk.bf16.vlgmr.msra.gmra.mrb[0].mxu1 %vm815_vm0, %v10719_v24  ;;  %v6016_v24 = vshrl.u32 %v12113_v6, 16 }
 0x1d7   : > { %9912 = vmatpush3.bf16.msra.mxu1 %v11794_v2  ;;  %9440 = vmatprep.mubr.msk.bf16.mxu1 %vm815_vm0, %v10722_v61  ;;  %v10726_v2 = vld [vmem:[%s11023_s5 + $0x2c] sm:$0xff]   ;;  %v12134_v61 = vld [vmem:[%s11023_s5 + $0xf8] sm:$0xff]  }
 0x1d8   : > { %9793 = vmatmul.mubr.msk.bf16.gmra.mrb[36].mxu0 %vm815_vm0, %v5967_v17  ;;  %9909 = vmatprep.subr.bf16.mxu1 %v10812_v40  ;;  %v10732_v17 = vld [vmem:[%s11023_s5 + $0x44] sm:$0xff]   ;;  %v6018_v4 = vor.u32 %v6016_v24, %v6014_v54  ;;  %v6028_v43 = vshll.u32 %v12134_v61, 16  ;;  %v6032_v28 = vshrl.u32 %v12134_v61, 16  ;;  %v6054_v24 = vrot.slane %v6052_v1, 1 }
 0x1d9   : > { %9796 = vmatprep.mubr.msk.bf16.mxu0 %vm815_vm0, %v5975_v7  ;;  %v6022_v7 = vrot.slane %v6020_v41, 1  ;;  %v12175_v41 = vld [vmem:[%s11023_s5 + $0x120] sm:$0xff]   ;;  %v12207_v1 = vld [vmem:[%s11023_s5 + $0x138] ss:$0 sps:$4 sm:$0x11]  }
 0x1db   : > { %9913 = vmatpush3.bf16.msra.mxu1 %v10812_v40  ;;  %v6015_v40 = vsel %vm498_vm1, %v6010_v0, %v6014_v54  ;;  %v10743_v54 = vld [vmem:[%s11023_s5 + $0x6c] sm:$0xff]   ;;  %v6060_v0 = vshll.u32 %v12170_v16, 16 }
 0x1dc   : > { %9910 = vmatprep.subr.bf16.mxu1 %v10813_v25 }
 0x1de   : > { %9441 = vmatmul.mubr.msk.bf16.gmra.mrb[4].mxu1 %vm815_vm0, %v10724_v55  ;;  %v6023_v55 = vsel %vm498_vm1, %v6018_v4, %v6022_v7  ;;  %v6056_v4 = vshrl.u32 %v12157_v3, 16 }
 0x1df   : > { %9444 = vmatprep.mubr.msk.bf16.mxu1 %vm815_vm0, %v10726_v2  ;;  %9914 = vmatpush3.bf16.msra.mxu1 %v10813_v25  ;;  %v6030_v2 = vrot.slane %v6028_v43, 1  ;;  %v6026_v25 = vor.u32 %v6024_v63, %v6022_v7  ;;  %v6068_v43 = vshll.u32 %v12175_v41, 16  ;;  %v12188_v63 = vld [vmem:[%s11023_s5 + $0x128] sm:$0xff]  }
 0x1e0   : > { %9797 = vmatmul.mubr.msk.bf16.gmra.mrb[40].mxu0 %vm815_vm0, %v5983_v56  ;;  %9911 = vmatprep.subr.bf16.mxu1 %v10814_v22  ;;  %v10736_v56 = vld [vmem:[%s11023_s5 + $0x54] sm:$0xff]  }
 0x1e1   : > { %9800 = vmatprep.mubr.msk.bf16.mxu0 %vm815_vm0, %v5991_v34  ;;  %v6034_v48 = vor.u32 %v6032_v28, %v6030_v2  ;;  %v6038_v34 = vrot.slane %v6036_v32, 1  ;;  %v10745_v28 = vld [vmem:[%s11023_s5 + $0x74] sm:$0xff]  }
 0x1e3   : > { %9915 = vmatpush3.bf16.msra.mxu1 %v10814_v22  ;;  %v6031_v22 = vsel %vm498_vm1, %v6026_v25, %v6030_v2  ;;  %v6070_v2 = vrot.slane %v6068_v43, 1  ;;  %v12193_v25 = vld [vmem:[%s11023_s5 + $0x130] sm:$0xff]  }
 0x1e6   : > { %9445 = vmatmul.mubr.msk.bf16.gmra.mrb[8].mxu1 %vm815_vm0, %v10728_v57  ;;  %v6039_v57 = vsel %vm498_vm1, %v6034_v48, %v6038_v34  ;;  %v6076_v48 = vshll.u32 %v12188_v63, 16 }
 0x1e7   : > { %9448 = vmatprep.mubr.msk.bf16.mxu1 %vm815_vm0, %v10730_v27  ;;  %v6046_v27 = vrot.slane %v6044_v31, 1 }
 0x1e8   : > { %9801 = vmatmul.mubr.msk.bf16.gmra.mrb[44].mxu0 %vm815_vm0, %v5999_v9  ;;  %v6042_v9 = vor.u32 %v6040_v53, %v6038_v34  ;;  %v6084_v53 = vshll.u32 %v12193_v25, 16 }
 0x1e9   : > { %9804 = vmatprep.mubr.msk.bf16.mxu0 %vm815_vm0, %v6007_v38  ;;  %v6050_v38 = vor.u32 %v6048_v12, %v6046_v27 }
 0x1eb   : > { %v6055_v7 = vsel %vm498_vm1, %v6050_v38, %v6054_v24  ;;  %v10751_v38 = vld [vmem:[%s11023_s5 + $0x8c] sm:$0xff]  }
 0x1ee   : > { %9449 = vmatmul.mubr.msk.bf16.gmra.mrb[12].mxu1 %vm815_vm0, %v10732_v17  ;;  %v6047_v17 = vsel %vm498_vm1, %v6042_v9, %v6046_v27  ;;  %v10749_v27 = vld [vmem:[%s11023_s5 + $0x84] sm:$0xff]  }
 0x1ef   : > { %9452 = vmatprep.mubr.msk.bf16.mxu1 %vm815_vm0, %v10734_v52  ;;  %v6064_v52 = vshrl.u32 %v12170_v16, 16 }
 0x1f0   : > { %9805 = vmatmul.mubr.msk.bf16.gmra.mrb[48].mxu0 %vm815_vm0, %v6015_v40  ;;  %v6062_v40 = vrot.slane %v6060_v0, 1  ;;  %v6088_v0 = vshrl.u32 %v12193_v25, 16 }
 0x1f1   : > { %9808 = vmatprep.mubr.msk.bf16.mxu0 %vm815_vm0, %v6023_v55  ;;  %v6058_v55 = vor.u32 %v6056_v4, %v6054_v24  ;;  %v6621_v24 = vld [vmem:[%s11023_s5 + $0x18] sm:$0xe] }
 0x1f2   : > { %v6066_v32 = vor.u32 %v6064_v52, %v6062_v40 }
 0x1f3   : > { %v6063_v34 = vsel %vm498_vm1, %v6058_v55, %v6062_v40  ;;  %v10753_v40 = vld [vmem:[%s11023_s5 + $0x94] sm:$0xff]  }
 0x1f4   : > { %v6071_v31 = vsel %vm498_vm1, %v6066_v32, %v6070_v2  ;;  %v10755_v32 = vld [vmem:[%s11023_s5 + $0x9c] sm:$0xff]  }
 0x1f6   : > { %9453 = vmatmul.mubr.msk.bf16.gmra.mrb[16].mxu1 %vm815_vm0, %v10736_v56  ;;  %v10747_v56 = vld [vmem:[%s11023_s5 + $0x7c] sm:$0xff]  }
 0x1f7   : > { %9456 = vmatprep.mubr.msk.bf16.mxu1 %vm815_vm0, %v10739_v29  ;;  %v6072_v29 = vshrl.u32 %v12175_v41, 16 }
 0x1f8   : > { %9809 = vmatmul.mubr.msk.bf16.gmra.mrb[52].mxu0 %vm815_vm0, %v6031_v22  ;;  %v6080_v22 = vshrl.u32 %v12188_v63, 16 }
 0x1f9   : > { %9812 = vmatprep.mubr.msk.bf16.mxu0 %vm815_vm0, %v6039_v57  ;;  %v6078_v57 = vrot.slane %v6076_v48, 1  ;;  %v6074_v12 = vor.u32 %v6072_v29, %v6070_v2  ;;  %v10757_v48 = vld [vmem:[%s11023_s5 + $0xa4] sm:$0xff]  }
 0x1fb   : > { %v6082_v9 = vor.u32 %v6080_v22, %v6078_v57  ;;  %v10759_v22 = vld [vmem:[%s11023_s5 + $0xb4] sm:$0xff]  }
 0x1fe   : > { %9457 = vmatmul.mubr.msk.bf16.gmra.mrb[20].mxu1 %vm815_vm0, %v10741_v19  ;;  %v6086_v19 = vrot.slane %v6084_v53, 1  ;;  %v10760_v53 = vld [vmem:[%s11023_s5 + $0xbc] sm:$0xff]  }
 0x1ff   : > { %9460 = vmatprep.mubr.msk.bf16.mxu1 %vm815_vm0, %v10743_v54  ;;  %v6079_v54 = vsel %vm498_vm1, %v6074_v12, %v6078_v57 }
 0x200   : > { %9813 = vmatmul.mubr.msk.bf16.gmra.mrb[56].mxu0 %vm815_vm0, %v6047_v17  ;;  %v6092_v17 = vshll.u32 %v12207_v1, 16  ;;  %v6087_v4 = vsel %vm498_vm1, %v6082_v9, %v6086_v19  ;;  %v6090_v52 = vor.u32 %v6088_v0, %v6086_v19  ;;  %v10762_v9 = vld [vmem:[%s11023_s5 + $0xcc] sm:$0xff]  }
 0x201   : > { %9816 = vmatprep.mubr.msk.bf16.mxu0 %vm815_vm0, %v6055_v7  ;;  %v8423_v7 = vcombine.low %v6621_v24, %v11837_v45  ;;  %v10763_v24 = vld [vmem:[%s11023_s5 + $0xd4] sm:$0xff]  }
 0x202   : > { %v6094_v43 = vrot.slane %v6092_v17, 1 }
 0x203   : > { %v6634_v55 = vrot.slane %v8423_v7, 1  ;;  %v10766_v7 = vld [vmem:[%s11023_s5 + $0xec] sm:$0xff]  }
 0x204   : > { %v6095_v2 = vsel %vm498_vm1, %v6090_v52, %v6094_v43 }
 0x206   : > { %9461 = vmatmul.mubr.msk.bf16.gmra.mrb[24].mxu1 %vm815_vm0, %v10745_v28  ;;  %v6635_v28 = vrot.slane %v11850_v47, 1  ;;  %v6639_v47 = vrot.slane %v11867_v37, 1  ;;  %v6643_v37 = vrot.slane %v11887_v62, 1  ;;  %v6647_v62 = vrot.slane %v11911_v20, 1 }
 0x207   : > { %9464 = vmatprep.mubr.msk.bf16.mxu1 %vm815_vm0, %v10747_v56  ;;  %v6637_v56 = vrot.slane %v11863_v42, 1  ;;  %v6641_v42 = vrot.slane %v11883_v8, 1  ;;  %v6645_v8 = vrot.slane %v11906_v39, 1  ;;  %v6649_v39 = vrot.slane %v11933_v35, 1 }
 0x208   : > { %9817 = vmatmul.mubr.msk.bf16.gmra.mrb[60].mxu0 %vm815_vm0, %v6063_v34  ;;  %v6636_v45 = vsel %vm1675_vm2, %v6634_v55, %v6635_v28  ;;  %v10758_v34 = vld [vmem:[%s11023_s5 + $0xac] sm:$0xff]   ;;  %v6651_v20 = vrot.slane %v11937_v14, 1  ;;  %v6653_v35 = vrot.slane %v11953_v58, 1  ;;  %v6655_v14 = vrot.slane %v11957_v23, 1  ;;  %v10768_v55 = vld [vmem:[%s11023_s5 + $0xfc] sm:$0xff]  }
 0x209   : > { %9820 = vmatprep.mubr.msk.bf16.mxu0 %vm815_vm0, %v6071_v31  ;;  %v6638_v29 = vsel %vm1675_vm2, %v6635_v28, %v6637_v56  ;;  %v6640_v31 = vsel %vm1675_vm2, %v6637_v56, %v6639_v47  ;;  %v6642_v57 = vsel %vm1675_vm2, %v6639_v47, %v6641_v42  ;;  %v6644_v12 = vsel %vm1675_vm2, %v6641_v42, %v6643_v37  ;;  %v10816_v42 = vld [vmem:[%s11023_s5 + $0xa4] sm:$0xff]  }
 0x20a   : > { %v6646_v19 = vsel %vm1675_vm2, %v6643_v37, %v6645_v8  ;;  %v6650_v0 = vsel %vm1675_vm2, %v6647_v62, %v6649_v39  ;;  %v6652_v17 = vsel %vm1675_vm2, %v6649_v39, %v6651_v20  ;;  %v6654_v52 = vsel %vm1675_vm2, %v6651_v20, %v6653_v35  ;;  %v10818_v39 = vld [vmem:[%s11023_s5 + $0xb4] sm:$0xff]  }
 0x20b   : > { %v6656_v43 = vsel %vm1675_vm2, %v6653_v35, %v6655_v14  ;;  %v6657_v58 = vrot.slane %v11973_v33, 1  ;;  %v6659_v23 = vrot.slane %v11977_v18, 1  ;;  %v6661_v33 = vrot.slane %v11993_v5, 1  ;;  %v10769_v18 = vld [vmem:[%s11023_s5 + $0x104] sm:$0xff]   ;;  %v10771_v5 = vld [vmem:[%s11023_s5 + $0x114] sm:$0xff]  }
 0x20c   : > { %v6665_v47 = vrot.slane %v12013_v59, 1  ;;  %v6675_v35 = vrot.slane %v12056_v44, 1 }
 0x20d   : > { %v6658_v28 = vsel %vm1675_vm2, %v6655_v14, %v6657_v58  ;;  %v6662_v56 = vsel %vm1675_vm2, %v6659_v23, %v6661_v33 }
 0x20e   : > { %9465 = vmatmul.mubr.msk.bf16.gmra.mrb[28].mxu1 %vm815_vm0, %v10749_v27  ;;  %v10761_v27 = vld [vmem:[%s11023_s5 + $0xc4] sm:$0xff]  }
 0x20f   : > { %9468 = vmatprep.mubr.msk.bf16.mxu1 %vm815_vm0, %v10751_v38  ;;  %v6648_v38 = vsel %vm1675_vm2, %v6645_v8, %v6647_v62  ;;  %v6671_v8 = vrot.slane %v12037_v60, 1 }
 0x210   : > { %9821 = vmatmul.mubr.msk.bf16.gmra.mrb[64].mxu0 %vm815_vm0, %v6079_v54  ;;  %v10764_v54 = vld [vmem:[%s11023_s5 + $0xdc] sm:$0xff]  }
 0x211   : > { %9824 = vmatprep.mubr.msk.bf16.mxu0 %vm815_vm0, %v6087_v4  ;;  %v10765_v4 = vld [vmem:[%s11023_s5 + $0xe4] sm:$0xff]  }
 0x216   : > { %9469 = vmatmul.mubr.msk.bf16.gmra.mrb[32].mxu1 %vm815_vm0, %v10753_v40  ;;  %v10767_v40 = vld [vmem:[%s11023_s5 + $0xf4] sm:$0xff]  }
 0x217   : > { %9472 = vmatprep.mubr.msk.bf16.mxu1 %vm815_vm0, %v10755_v32  ;;  %v6660_v32 = vsel %vm1675_vm2, %v6657_v58, %v6659_v23 }
 0x218   : > { %9825 = vmatmul.mubr.msk.bf16.gmra.mrb[68].mxu0 %vm815_vm0, %v6095_v2  ;;  %v6663_v2 = vrot.slane %v11997_v11, 1  ;;  %v10772_v11 = vld [vmem:[%s11023_s5 + $0x11c] sm:$0xff]  }
 0x219   : > { %9836 = vmatprep.mubr.msk.bf16.mxu0 %vm815_vm0, %v6636_v45  ;;  %v10770_v45 = vld [vmem:[%s11023_s5 + $0x10c] sm:$0xff]  }
 0x21a   : > { %v6666_v37 = vsel %vm1675_vm2, %v6663_v2, %v6665_v47 }
 0x21e   : > { %9473 = vmatmul.mubr.msk.bf16.gmra.mrb[36].mxu1 %vm815_vm0, %v10757_v48  ;;  %v6664_v48 = vsel %vm1675_vm2, %v6661_v33, %v6663_v2  ;;  %v6679_v2 = vrot.slane %v12075_v30, 1 }
 0x21f   : > { %9476 = vmatprep.mubr.msk.bf16.mxu1 %vm815_vm0, %v10758_v34  ;;  %v6667_v34 = vrot.slane %v12017_v50, 1 }
 0x220   : > { %9837 = vmatmul.mubr.msk.bf16.vlgmr.msra.gmra.mrb[0].mxu0 %vm815_vm0, %v6638_v29  ;;  %v10815_v29 = vld [vmem:[%s11023_s5 + $0x9c] sm:$0xff]  }
 0x221   : > { %9840 = vmatprep.mubr.msk.bf16.mxu0 %vm815_vm0, %v6640_v31  ;;  %v3473_v31 = vshrl.u32 %v10815_v29, 16 }
 0x223   : > { %v3475_v59 = vor.u32 %v3473_v31, %v11278_v49 }
 0x226   : > { %9477 = vmatmul.mubr.msk.bf16.gmra.mrb[40].mxu1 %vm815_vm0, %v10759_v22  ;;  %v3477_v22 = vshll.u32 %v10816_v42, 16 }
 0x227   : > { %9480 = vmatprep.mubr.msk.bf16.mxu1 %vm815_vm0, %v10760_v53  ;;  %v6668_v53 = vsel %vm1675_vm2, %v6665_v47, %v6667_v34 }
 0x228   : > { %9841 = vmatmul.mubr.msk.bf16.gmra.mrb[4].mxu0 %vm815_vm0, %v6642_v57  ;;  %v3479_v50 = vrot.slane %v3477_v22, 1  ;;  %v6669_v57 = vrot.slane %v12033_v10, 1 }
 0x229   : > { %9844 = vmatprep.mubr.msk.bf16.mxu0 %vm815_vm0, %v6644_v12  ;;  %v10773_v12 = vld [vmem:[%s11023_s5 + $0x124] sm:$0xff]  }
 0x22a   : > { %v6670_v20 = vsel %vm1675_vm2, %v6667_v34, %v6669_v57  ;;  %v6672_v49 = vsel %vm1675_vm2, %v6669_v57, %v6671_v8 }
 0x22e   : > { %9481 = vmatmul.mubr.msk.bf16.gmra.mrb[44].mxu1 %vm815_vm0, %v10761_v27  ;;  %v10817_v27 = vld [vmem:[%s11023_s5 + $0xac] sm:$0xff]  }
 0x22f   : > { %9484 = vmatprep.mubr.msk.bf16.mxu1 %vm815_vm0, %v10762_v9  ;;  %v3485_v62 = vshll.u32 %v10817_v27, 16  ;;  %v3481_v9 = vshrl.u32 %v10816_v42, 16 }
 0x230   : > { %9845 = vmatmul.mubr.msk.bf16.gmra.mrb[8].mxu0 %vm815_vm0, %v6646_v19  ;;  %v3480_v19 = vsel %vm498_vm1, %v3475_v59, %v3479_v50  ;;  %v6683_v59 = vrot.slane %v12097_v36, 1 }
 0x231   : > { %9848 = vmatprep.mubr.msk.bf16.mxu0 %vm815_vm0, %v6648_v38  ;;  %v3489_v38 = vshrl.u32 %v10817_v27, 16  ;;  %v3487_v10 = vrot.slane %v3485_v62, 1 }
 0x233   : > { %v3491_v60 = vor.u32 %v3489_v38, %v3487_v10 }
 0x236   : > { %9485 = vmatmul.mubr.msk.bf16.gmra.mrb[48].mxu1 %vm815_vm0, %v10763_v24  ;;  %v3493_v24 = vshll.u32 %v10818_v39, 16 }
 0x237   : > { %9488 = vmatprep.mubr.msk.bf16.mxu1 %vm815_vm0, %v10764_v54  ;;  %v3483_v54 = vor.u32 %v3481_v9, %v3479_v50  ;;  %v10823_v50 = vld [vmem:[%s11023_s5 + $0xdc] sm:$0xff]   ;;  %v10824_v9 = vld [vmem:[%s11023_s5 + $0xe4] sm:$0xff]  }
 0x238   : > { %9849 = vmatmul.mubr.msk.bf16.gmra.mrb[12].mxu0 %vm815_vm0, %v6650_v0  ;;  %v3495_v0 = vrot.slane %v3493_v24, 1  ;;  %v3533_v57 = vshll.u32 %v10823_v50, 16  ;;  %v3537_v62 = vshrl.u32 %v10823_v50, 16 }
 0x239   : > { %9852 = vmatprep.mubr.msk.bf16.mxu0 %vm815_vm0, %v6652_v17  ;;  %v6673_v17 = vrot.slane %v12052_v21, 1 }
 0x23e   : > { %9489 = vmatmul.mubr.msk.bf16.gmra.mrb[52].mxu1 %vm815_vm0, %v10765_v4  ;;  %v10819_v4 = vld [vmem:[%s11023_s5 + $0xbc] sm:$0xff]  }
 0x23f   : > { %9492 = vmatprep.mubr.msk.bf16.mxu1 %vm815_vm0, %v10766_v7  ;;  %v3501_v14 = vshll.u32 %v10819_v4, 16  ;;  %v3488_v7 = vsel %vm498_vm1, %v3483_v54, %v3487_v10  ;;  %v3505_v58 = vshrl.u32 %v10819_v4, 16  ;;  %v6687_v10 = vrot.slane %v12121_v51, 1  ;;  %v10825_v54 = vld [vmem:[%s11023_s5 + $0xec] sm:$0xff]  }
 0x240   : > { %9853 = vmatmul.mubr.msk.bf16.gmra.mrb[16].mxu0 %vm815_vm0, %v6654_v52  ;;  %v3497_v52 = vshrl.u32 %v10818_v39, 16  ;;  %v3553_v4 = vshrl.u32 %v10825_v54, 16 }
 0x241   : > { %9856 = vmatprep.mubr.msk.bf16.mxu0 %vm815_vm0, %v6656_v43  ;;  %v3496_v43 = vsel %vm498_vm1, %v3491_v60, %v3495_v0  ;;  %v3503_v21 = vrot.slane %v3501_v14, 1  ;;  %v3549_v60 = vshll.u32 %v10825_v54, 16  ;;  %v10826_v14 = vld [vmem:[%s11023_s5 + $0xf4] sm:$0xff]  }
 0x242   : > { %v3499_v44 = vor.u32 %v3497_v52, %v3495_v0 }
 0x246   : > { %9493 = vmatmul.mubr.msk.bf16.gmra.mrb[56].mxu1 %vm815_vm0, %v10767_v40  ;;  %v10820_v40 = vld [vmem:[%s11023_s5 + $0xc4] sm:$0xff]  }
 0x247   : > { %9496 = vmatprep.mubr.msk.bf16.mxu1 %vm815_vm0, %v10768_v55  ;;  %v3509_v23 = vshll.u32 %v10820_v40, 16  ;;  %v6674_v55 = vsel %vm1675_vm2, %v6671_v8, %v6673_v17  ;;  %v3513_v47 = vshrl.u32 %v10820_v40, 16 }
 0x248   : > { %9857 = vmatmul.mubr.msk.bf16.gmra.mrb[20].mxu0 %vm815_vm0, %v6658_v28  ;;  %v6676_v28 = vsel %vm1675_vm2, %v6673_v17, %v6675_v35  ;;  %v3545_v17 = vshrl.u32 %v10824_v9, 16 }
 0x249   : > { %9860 = vmatprep.mubr.msk.bf16.mxu0 %vm815_vm0, %v6660_v32  ;;  %v3507_v32 = vor.u32 %v3505_v58, %v3503_v21  ;;  %v3511_v33 = vrot.slane %v3509_v23, 1  ;;  %v6689_v23 = vrot.slane %v12134_v61, 1 }
 0x24b   : > { %v3515_v30 = vor.u32 %v3513_v47, %v3511_v33 }
 0x24e   : > { %9497 = vmatmul.mubr.msk.bf16.gmra.mrb[60].mxu1 %vm815_vm0, %v10769_v18  ;;  %v6677_v18 = vrot.slane %v12070_v15, 1 }
 0x24f   : > { %9500 = vmatprep.mubr.msk.bf16.mxu1 %vm815_vm0, %v10770_v45  ;;  %v10821_v45 = vld [vmem:[%s11023_s5 + $0xcc] sm:$0xff]  }
 0x250   : > { %9861 = vmatmul.mubr.msk.bf16.gmra.mrb[24].mxu0 %vm815_vm0, %v6662_v56  ;;  %v3517_v56 = vshll.u32 %v10821_v45, 16  ;;  %v3521_v34 = vshrl.u32 %v10821_v45, 16  ;;  %v6678_v31 = vsel %vm1675_vm2, %v6675_v35, %v6677_v18  ;;  %v6680_v42 = vsel %vm1675_vm2, %v6677_v18, %v6679_v2 }
 0x251   : > { %9864 = vmatprep.mubr.msk.bf16.mxu0 %vm815_vm0, %v6664_v48  ;;  %v3504_v48 = vsel %vm498_vm1, %v3499_v44, %v3503_v21 }
 0x252   : > { %v3519_v15 = vrot.slane %v3517_v56, 1  ;;  %v6690_v56 = vsel %vm1675_vm2, %v6687_v10, %v6689_v23 }
 0x254   : > { %v3523_v22 = vor.u32 %v3521_v34, %v3519_v15  ;;  %v6693_v34 = vrot.slane %v12152_v26, 1 }
 0x256   : > { %9501 = vmatmul.mubr.msk.bf16.gmra.mrb[64].mxu1 %vm815_vm0, %v10771_v5  ;;  %v3512_v5 = vsel %vm498_vm1, %v3507_v32, %v3511_v33  ;;  %v3561_v32 = vshrl.u32 %v10826_v14, 16 }
 0x257   : > { %9504 = vmatprep.mubr.msk.bf16.mxu1 %vm815_vm0, %v10772_v11  ;;  %v10822_v11 = vld [vmem:[%s11023_s5 + $0xd4] sm:$0xff]  }
 0x258   : > { %9865 = vmatmul.mubr.msk.bf16.gmra.mrb[28].mxu0 %vm815_vm0, %v6666_v37  ;;  %v3525_v29 = vshll.u32 %v10822_v11, 16  ;;  %v3529_v8 = vshrl.u32 %v10822_v11, 16  ;;  %v6695_v11 = vrot.slane %v12157_v3, 1 }
 0x259   : > { %9868 = vmatprep.mubr.msk.bf16.mxu0 %vm815_vm0, %v6668_v53  ;;  %v6681_v53 = vrot.slane %v12089_v46, 1  ;;  %v3535_v46 = vrot.slane %v3533_v57, 1 }
 0x25a   : > { %v3527_v37 = vrot.slane %v3525_v29, 1  ;;  %v10829_v29 = vld [vmem:[%s11023_s5 + $0x10c] sm:$0xff]   ;;  %v6696_v50 = vsel %vm1675_vm2, %v6693_v34, %v6695_v11 }
 0x25b   : > { %v6682_v38 = vsel %vm1675_vm2, %v6679_v2, %v6681_v53  ;;  %v6684_v39 = vsel %vm1675_vm2, %v6681_v53, %v6683_v59  ;;  %v3539_v24 = vor.u32 %v3537_v62, %v3535_v46  ;;  %v10828_v2 = vld [vmem:[%s11023_s5 + $0x104] sm:$0xff]   ;;  %v10831_v62 = vld [vmem:[%s11023_s5 + $0x11c] sm:$0xff]  }
 0x25c   : > { %v3528_v27 = vsel %vm498_vm1, %v3523_v22, %v3527_v37  ;;  %v3531_v36 = vor.u32 %v3529_v8, %v3527_v37  ;;  %v3573_v45 = vshll.u32 %v10828_v2, 16  ;;  %v3585_v22 = vshrl.u32 %v10829_v29, 16  ;;  %v10830_v37 = vld [vmem:[%s11023_s5 + $0x114] sm:$0xff]  }
 0x25d   : > { %v3589_v53 = vshll.u32 %v10830_v37, 16  ;;  %v6697_v8 = vrot.slane %v12170_v16, 1 }
 0x25e   : > { %9505 = vmatmul.mubr.msk.bf16.gmra.mrb[68].mxu1 %vm815_vm0, %v10773_v12  ;;  %v3520_v12 = vsel %vm498_vm1, %v3515_v30, %v3519_v15  ;;  %v3536_v0 = vsel %vm498_vm1, %v3531_v36, %v3535_v46  ;;  %v3577_v15 = vshrl.u32 %v10828_v2, 16  ;;  %v3601_v46 = vshrl.u32 %v10831_v62, 16  ;;  %v10832_v36 = vld [vmem:[%s11023_s5 + $0x124] sm:$0xff]  }
 0x25f   : > { %9552 = vmatprep.mubr.msk.bf16.mxu1 %vm815_vm0, %v3480_v19  ;;  %v3541_v19 = vshll.u32 %v10824_v9, 16  ;;  %v3597_v9 = vshll.u32 %v10831_v62, 16 }
 0x260   : > { %9869 = vmatmul.mubr.msk.bf16.gmra.mrb[32].mxu0 %vm815_vm0, %v6670_v20 }
 0x261   : > { %9872 = vmatprep.mubr.msk.bf16.mxu0 %vm815_vm0, %v6672_v49  ;;  %v3543_v20 = vrot.slane %v3541_v19, 1  ;;  %v6685_v49 = vrot.slane %v12113_v6, 1  ;;  %v3551_v6 = vrot.slane %v3549_v60, 1  ;;  %v3599_v16 = vrot.slane %v3597_v9, 1  ;;  %v12486_v9 = vld [vmem:[%s12766_s2] ss:$0 sm:$0xff] }
 0x262   : > { %v6701_v60 = vrot.slane %v12188_v63, 1  ;;  %v6705_v63 = vrot.slane %v12207_v1, 1 }
 0x263   : > { %v3544_v35 = vsel %vm498_vm1, %v3539_v24, %v3543_v20  ;;  %v6686_v52 = vsel %vm1675_vm2, %v6683_v59, %v6685_v49  ;;  %v3547_v51 = vor.u32 %v3545_v17, %v3543_v20  ;;  %v3555_v58 = vor.u32 %v3553_v4, %v3551_v6  ;;  %v10833_v4 = vld [vmem:[%s11023_s5 + $0x12c] ss:$0 sps:$4 sm:$0x11]  }
 0x264   : > { %v3605_v24 = vshll.u32 %v10832_v36, 16  ;;  %v6698_v20 = vsel %vm1675_vm2, %v6695_v11, %v6697_v8 }
 0x265   : > { %v3552_v44 = vsel %vm498_vm1, %v3547_v51, %v3551_v6 }
 0x266   : > { %9553 = vmatmul.mubr.msk.bf16.vlgmr.msra.gmra.mrb[36].mxu1 %vm815_vm0, %v3488_v7  ;;  %v3557_v7 = vshll.u32 %v10826_v14, 16  ;;  %v3607_v54 = vrot.slane %v3605_v24, 1  ;;  %v3613_v14 = vshll.u32 %v10833_v4, 16 }
 0x267   : > { %9556 = vmatprep.mubr.msk.bf16.mxu1 %vm815_vm0, %v3496_v43  ;;  %v6688_v43 = vsel %vm1675_vm2, %v6685_v49, %v6687_v10  ;;  %v3603_v10 = vor.u32 %v3601_v46, %v3599_v16 }
 0x268   : > { %9873 = vmatmul.mubr.msk.bf16.gmra.mrb[36].mxu0 %vm815_vm0, %v6674_v55  ;;  %v3559_v40 = vrot.slane %v3557_v7, 1  ;;  %v6691_v55 = vrot.slane %v12139_v13, 1  ;;  %v3615_v51 = vrot.slane %v3613_v14, 1 }
 0x269   : > { %9876 = vmatprep.mubr.msk.bf16.mxu0 %vm815_vm0, %v6676_v28  ;;  %v10827_v28 = vld [vmem:[%s11023_s5 + $0xfc] sm:$0xff]   ;;  %v3608_v7 = vsel %vm498_vm1, %v3603_v10, %v3607_v54 }
 0x26a   : > { %v3565_v21 = vshll.u32 %v10827_v28, 16  ;;  %v3560_v33 = vsel %vm498_vm1, %v3555_v58, %v3559_v40  ;;  %v3569_v18 = vshrl.u32 %v10827_v28, 16  ;;  %v3563_v13 = vor.u32 %v3561_v32, %v3559_v40 }
 0x26b   : > { %v6694_v59 = vsel %vm1675_vm2, %v6691_v55, %v6693_v34 }
 0x26c   : > { %v3567_v61 = vrot.slane %v3565_v21, 1 }
 0x26e   : > { %9557 = vmatmul.mubr.msk.bf16.gmra.mrb[40].mxu1 %vm815_vm0, %v3504_v48  ;;  %v6692_v48 = vsel %vm1675_vm2, %v6689_v23, %v6691_v55  ;;  %v3571_v47 = vor.u32 %v3569_v18, %v3567_v61 }
 0x26f   : > { %9560 = vmatprep.mubr.msk.bf16.mxu1 %vm815_vm0, %v3512_v5  ;;  %v3575_v5 = vrot.slane %v3573_v45, 1 }
 0x270   : > { %9877 = vmatmul.mubr.msk.bf16.gmra.mrb[40].mxu0 %vm815_vm0, %v6678_v31  ;;  %v3581_v31 = vshll.u32 %v10829_v29, 16 }
 0x271   : > { %9880 = vmatprep.mubr.msk.bf16.mxu0 %vm815_vm0, %v6680_v42  ;;  %v3568_v42 = vsel %vm498_vm1, %v3563_v13, %v3567_v61  ;;  %v3576_v30 = vsel %vm498_vm1, %v3571_v47, %v3575_v5  ;;  %v3579_v3 = vor.u32 %v3577_v15, %v3575_v5 }
 0x272   : > { %v3583_v26 = vrot.slane %v3581_v31, 1 }
 0x274   : > { %v3587_v57 = vor.u32 %v3585_v22, %v3583_v26  ;;  %v3584_v19 = vsel %vm498_vm1, %v3579_v3, %v3583_v26 }
 0x276   : > { %9561 = vmatmul.mubr.msk.bf16.gmra.mrb[44].mxu1 %vm815_vm0, %v3520_v12  ;;  %v3591_v12 = vrot.slane %v3589_v53, 1 }
 0x277   : > { %9564 = vmatprep.mubr.msk.bf16.mxu1 %vm815_vm0, %v3528_v27  ;;  %v6699_v27 = vrot.slane %v12175_v41, 1 }
 0x278   : > { %9881 = vmatmul.mubr.msk.bf16.gmra.mrb[44].mxu0 %vm815_vm0, %v6682_v38  ;;  %v3593_v38 = vshrl.u32 %v10830_v37, 16 }
 0x279   : > { %9884 = vmatprep.mubr.msk.bf16.mxu0 %vm815_vm0, %v6684_v39  ;;  %v3592_v39 = vsel %vm498_vm1, %v3587_v57, %v3591_v12  ;;  %v6700_v49 = vsel %vm1675_vm2, %v6697_v8, %v6699_v27 }
 0x27a   : > { %v3595_v41 = vor.u32 %v3593_v38, %v3591_v12 }
 0x27c   : > { %v3600_v17 = vsel %vm498_vm1, %v3595_v41, %v3599_v16 }
 0x27e   : > { %9565 = vmatmul.mubr.msk.bf16.gmra.mrb[48].mxu1 %vm815_vm0, %v3536_v0  ;;  %v6703_v0 = vrot.slane %v12193_v25, 1 }
 0x27f   : > { %9568 = vmatprep.mubr.msk.bf16.mxu1 %vm815_vm0, %v3544_v35  ;;  %v3609_v35 = vshrl.u32 %v10832_v36, 16 }
 0x280   : > { %9885 = vmatmul.mubr.msk.bf16.gmra.mrb[48].mxu0 %vm815_vm0, %v6686_v52  ;;  %v6702_v52 = vsel %vm1675_vm2, %v6699_v27, %v6701_v60  ;;  %v6706_v58 = vsel %vm1675_vm2, %v6703_v0, %v6705_v63 }
 0x281   : > { %9888 = vmatprep.mubr.msk.bf16.mxu0 %vm815_vm0, %v6688_v43  ;;  %v6704_v43 = vsel %vm1675_vm2, %v6701_v60, %v6703_v0  ;;  %v3611_v6 = vor.u32 %v3609_v35, %v3607_v54 }
 0x283   : > { %v3616_v25 = vsel %vm498_vm1, %v3611_v6, %v3615_v51 }
 0x286   : > { %9569 = vmatmul.mubr.msk.bf16.gmra.mrb[52].mxu1 %vm815_vm0, %v3552_v44 }
 0x287   : > { %9572 = vmatprep.mubr.msk.bf16.mxu1 %vm815_vm0, %v3560_v33 }
 0x288   : > { %9889 = vmatmul.mubr.msk.bf16.gmra.mrb[52].mxu0 %vm815_vm0, %v6690_v56 }
 0x289   : > { %9892 = vmatprep.mubr.msk.bf16.mxu0 %vm815_vm0, %v6692_v48 }
 0x28e   : > { %9573 = vmatmul.mubr.msk.bf16.gmra.mrb[56].mxu1 %vm815_vm0, %v3568_v42 }
 0x28f   : > { %9576 = vmatprep.mubr.msk.bf16.mxu1 %vm815_vm0, %v3576_v30 }
 0x290   : > { %9893 = vmatmul.mubr.msk.bf16.gmra.mrb[56].mxu0 %vm815_vm0, %v6694_v59 }
 0x291   : > { %9896 = vmatprep.mubr.msk.bf16.mxu0 %vm815_vm0, %v6696_v50 }
 0x296   : > { %9577 = vmatmul.mubr.msk.bf16.gmra.mrb[60].mxu1 %vm815_vm0, %v3584_v19 }
 0x297   : > { %9580 = vmatprep.mubr.msk.bf16.mxu1 %vm815_vm0, %v3592_v39 }
 0x298   : > { %9897 = vmatmul.mubr.msk.bf16.gmra.mrb[60].mxu0 %vm815_vm0, %v6698_v20 }
 0x299   : > { %9900 = vmatprep.mubr.msk.bf16.mxu0 %vm815_vm0, %v6700_v49  ;;  %v12493_v49 = vld [vmem:[%s12767_s3] ss:$0 sm:$0xff] }
 0x29e   : > { %9581 = vmatmul.mubr.msk.bf16.gmra.mrb[64].mxu1 %vm815_vm0, %v3600_v17 }
 0x29f   : > { %9584 = vmatprep.mubr.msk.bf16.mxu1 %vm815_vm0, %v3608_v7 }
 0x2a0   : > { %9901 = vmatmul.mubr.msk.bf16.gmra.mrb[64].mxu0 %vm815_vm0, %v6702_v52 }
 0x2a1   : > { %9904 = vmatprep.mubr.msk.bf16.mxu0 %vm815_vm0, %v6704_v43 }
 0x2a6   : > { %9585 = vmatmul.mubr.msk.bf16.gmra.mrb[68].mxu1 %vm815_vm0, %v3616_v25 }
 0x2a8   : > { %9905 = vmatmul.mubr.msk.bf16.gmra.mrb[68].mxu0 %vm815_vm0, %v6706_v58 }
 0x2a9   : > { %v9438_v40 = vpop.f32.mrb[0].mxu1 }
 0x2aa   : > { %v2701_v23 = vpop.f32.mrb[1].mxu1 }
 0x2ab   : > { %v9439_v55 = vpop.f32.mrb[2].mxu1 }
 0x2ac   : > { %v2704_v28 = vpop.f32.mrb[3].mxu1 }
 0x2b1   : > { %v9442_v21 = vpop.f32.mrb[4].mxu1 }
 0x2b2   : > { %v2717_v44 = vpop.f32.mrb[5].mxu1 }
 0x2b3   : > { %v9443_v32 = vpop.f32.mrb[6].mxu1 }
 0x2b4   : > { %v12425_v33 = vpop.f32.mrb[7].mxu1 }
 0x2b9   : > { %v12427_v18 = vpop.f32.mrb[8].mxu1 }
 0x2ba   : > { %v12429_v1 = vpop.f32.mrb[9].mxu1 }
 0x2bb   : > { %v12431_v2 = vpop.f32.mrb[10].mxu1 }
 0x2bc   : > { %v12433_v45 = vpop.f32.mrb[11].mxu1 }
 0x2c1   : > { %v12435_v56 = vpop.f32.mrb[12].mxu1 }
 0x2c2   : > { %v12437_v48 = vpop.f32.mrb[13].mxu1 }
 0x2c3   : > { %v12439_v61 = vpop.f32.mrb[14].mxu1 }
 0x2c4   : > { %v12441_v13 = vpop.f32.mrb[15].mxu1 }
 0x2c9   : > { %v12443_v47 = vpop.f32.mrb[16].mxu1 }
 0x2ca   : > { %v12445_v5 = vpop.f32.mrb[17].mxu1 }
 0x2cb   : > { %v12447_v34 = vpop.f32.mrb[18].mxu1 }
 0x2cc   : > { %v12449_v11 = vpop.f32.mrb[19].mxu1 }
 0x2d1   : > { %v12451_v29 = vpop.f32.mrb[20].mxu1 }
 0x2d2   : > { %v12453_v31 = vpop.f32.mrb[21].mxu1 }
 0x2d3   : > { %v12455_v42 = vpop.f32.mrb[22].mxu1 }
 0x2d4   : > { %v12457_v15 = vpop.f32.mrb[23].mxu1 }
 0x2d9   : > { %v12459_v30 = vpop.f32.mrb[24].mxu1 }
 0x2da   : > { %v12461_v22 = vpop.f32.mrb[25].mxu1 }
 0x2db   : > { %v12463_v37 = vpop.f32.mrb[26].mxu1 }
 0x2dc   : > { %v12465_v53 = vpop.f32.mrb[27].mxu1 }
 0x2e1   : > { %v12467_v59 = vpop.f32.mrb[28].mxu1 }
 0x2e2   : > { %v12469_v50 = vpop.f32.mrb[29].mxu1 }
 0x2e3   : > { %v12471_v26 = vpop.f32.mrb[30].mxu1 }
 0x2e4   : > { %v12473_v3 = vpop.f32.mrb[31].mxu1 }
 0x2e9   : > { %v12475_v57 = vpop.f32.mrb[32].mxu1 }
 0x2ea   : > { %v12477_v12 = vpop.f32.mrb[33].mxu1 }
 0x2eb   : > { %v12479_v8 = vpop.f32.mrb[34].mxu1 }
 0x2ec   : > { %v12481_v27 = vpop.f32.mrb[35].mxu1 }
 0x2f3   : > { %v9838_v62 = vpop.f32.mrb[0].mxu0 }
 0x2f4   : > { %v9916_v19 = vadd.f32 %v9838_v62, %v9438_v40  ;;  %v6873_v38 = vpop.f32.mrb[1].mxu0 }
 0x2f5   : > { %v9917_v39 = vadd.f32 %v6873_v38, %v2701_v23  ;;  %v9839_v46 = vpop.f32.mrb[2].mxu0 }
 0x2f6   : > { %v7241_v36 = vmul.f32 %v9916_v19, %v12486_v9  ;;  %v9918_v24 = vadd.f32 %v9839_v46, %v9439_v55  ;;  %v6876_v20 = vpop.f32.mrb[3].mxu0 }
 0x2f7   : > { %v7239_v16 = vmul.f32 %v9917_v39, %v12486_v9  ;;  %v9919_v41 = vadd.f32 %v6876_v20, %v2704_v28 }
 0x2f8   : > { %v7242_v10 = vmul.f32 %v9918_v24, %v12486_v9  ;;  %v7320_v60 = vadd.f32 %v12493_v49, %v7241_v36 }
 0x2f9   : > { %v7240_v54 = vmul.f32 %v9919_v41, %v12486_v9  ;;  %v7318_v17 = vadd.f32 %v12493_v49, %v7239_v16 }
 0x2fa   : > { %v7321_v0 = vadd.f32 %v12493_v49, %v7242_v10 }
 0x2fb   : > { %v7319_v35 = vadd.f32 %v12493_v49, %v7240_v54  ;;  %v9842_v4 = vpop.f32.mrb[4].mxu0 }
 0x2fc   : > { %v8621_v14 = vpack.c.bf16 %v7321_v0, %v7320_v60  ;;  %v9920_v7 = vadd.f32 %v9842_v4, %v9442_v21  ;;  %v6889_v52 = vpop.f32.mrb[5].mxu0 }
 0x2fd   : > { %v8616_v43 = vpack.c.bf16 %v7319_v35, %v7318_v17  ;;  %v9921_v6 = vadd.f32 %v6889_v52, %v2717_v44  ;;  %v9843_v51 = vpop.f32.mrb[6].mxu0 }
 0x2fe   : > { %8793 = vst [vmem:[%s12504_s24 + $0x8] sm:$0xff] %v8621_v14   ;;  %v7245_v63 = vmul.f32 %v9920_v7, %v12486_v9  ;;  %v9922_v25 = vadd.f32 %v9843_v51, %v9443_v32  ;;  %v6892_v58 = vpop.f32.mrb[7].mxu0 }
 0x2ff   : > { %8617 = vst [vmem:[%s12504_s24] sm:$0xff] %v8616_v43   ;;  %v7243_v40 = vmul.f32 %v9921_v6, %v12486_v9  ;;  %v9923_v23 = vadd.f32 %v6892_v58, %v12425_v33 }
 0x300   : > { %v7246_v55 = vmul.f32 %v9922_v25, %v12486_v9  ;;  %v7324_v21 = vadd.f32 %v12493_v49, %v7245_v63 }
 0x301   : > { %v7244_v28 = vmul.f32 %v9923_v23, %v12486_v9  ;;  %v7322_v62 = vadd.f32 %v12493_v49, %v7243_v40 }
 0x302   : > { %v7325_v44 = vadd.f32 %v12493_v49, %v7246_v55 }
 0x303   : > { %v7323_v32 = vadd.f32 %v12493_v49, %v7244_v28  ;;  %v9846_v19 = vpop.f32.mrb[8].mxu0 }
 0x304   : > { %v8631_v38 = vpack.c.bf16 %v7325_v44, %v7324_v21  ;;  %v9924_v39 = vadd.f32 %v9846_v19, %v12427_v18  ;;  %v6905_v46 = vpop.f32.mrb[9].mxu0 }
 0x305   : > { %v8626_v36 = vpack.c.bf16 %v7323_v32, %v7322_v62  ;;  %v9925_v33 = vadd.f32 %v6905_v46, %v12429_v1  ;;  %v9847_v24 = vpop.f32.mrb[10].mxu0 }
 0x306   : > { %8795 = vst [vmem:[%s12504_s24 + $0x18] sm:$0xff] %v8631_v38   ;;  %v7249_v20 = vmul.f32 %v9924_v39, %v12486_v9  ;;  %v9926_v16 = vadd.f32 %v9847_v24, %v12431_v2  ;;  %v6908_v41 = vpop.f32.mrb[11].mxu0 }
 0x307   : > { %8794 = vst [vmem:[%s12504_s24 + $0x10] sm:$0xff] %v8626_v36   ;;  %v7247_v10 = vmul.f32 %v9925_v33, %v12486_v9  ;;  %v9927_v54 = vadd.f32 %v6908_v41, %v12433_v45 }
 0x308   : > { %v7250_v60 = vmul.f32 %v9926_v16, %v12486_v9  ;;  %v7328_v1 = vadd.f32 %v12493_v49, %v7249_v20 }
 0x309   : > { %v7248_v18 = vmul.f32 %v9927_v54, %v12486_v9  ;;  %v7326_v17 = vadd.f32 %v12493_v49, %v7247_v10 }
 0x30a   : > { %v7329_v0 = vadd.f32 %v12493_v49, %v7250_v60 }
 0x30b   : > { %v7327_v2 = vadd.f32 %v12493_v49, %v7248_v18  ;;  %v9850_v35 = vpop.f32.mrb[12].mxu0 }
 0x30c   : > { %v8641_v4 = vpack.c.bf16 %v7329_v0, %v7328_v1  ;;  %v9928_v14 = vadd.f32 %v9850_v35, %v12435_v56  ;;  %v6921_v7 = vpop.f32.mrb[13].mxu0 }
 0x30d   : > { %v8636_v52 = vpack.c.bf16 %v7327_v2, %v7326_v17  ;;  %v9929_v45 = vadd.f32 %v6921_v7, %v12437_v48  ;;  %v9851_v43 = vpop.f32.mrb[14].mxu0 }
 0x30e   : > { %8797 = vst [vmem:[%s12504_s24 + $0x28] sm:$0xff] %v8641_v4   ;;  %v7253_v6 = vmul.f32 %v9928_v14, %v12486_v9  ;;  %v9930_v51 = vadd.f32 %v9851_v43, %v12439_v61  ;;  %v6924_v63 = vpop.f32.mrb[15].mxu0 }
 0x30f   : > { %8796 = vst [vmem:[%s12504_s24 + $0x20] sm:$0xff] %v8636_v52   ;;  %v7251_v25 = vmul.f32 %v9929_v45, %v12486_v9  ;;  %v9931_v58 = vadd.f32 %v6924_v63, %v12441_v13 }
 0x310   : > { %v7254_v40 = vmul.f32 %v9930_v51, %v12486_v9  ;;  %v7332_v48 = vadd.f32 %v12493_v49, %v7253_v6 }
 0x311   : > { %v7252_v56 = vmul.f32 %v9931_v58, %v12486_v9  ;;  %v7330_v55 = vadd.f32 %v12493_v49, %v7251_v25 }
 0x312   : > { %v7333_v23 = vadd.f32 %v12493_v49, %v7254_v40 }
 0x313   : > { %v7331_v61 = vadd.f32 %v12493_v49, %v7252_v56  ;;  %v9854_v28 = vpop.f32.mrb[16].mxu0 }
 0x314   : > { %v8651_v21 = vpack.c.bf16 %v7333_v23, %v7332_v48  ;;  %v9932_v44 = vadd.f32 %v9854_v28, %v12443_v47  ;;  %v6937_v62 = vpop.f32.mrb[17].mxu0 }
 0x315   : > { %v8646_v32 = vpack.c.bf16 %v7331_v61, %v7330_v55  ;;  %v9933_v13 = vadd.f32 %v6937_v62, %v12445_v5  ;;  %v9855_v19 = vpop.f32.mrb[18].mxu0 }
 0x316   : > { %8799 = vst [vmem:[%s12504_s24 + $0x38] sm:$0xff] %v8651_v21   ;;  %v7257_v38 = vmul.f32 %v9932_v44, %v12486_v9  ;;  %v9934_v39 = vadd.f32 %v9855_v19, %v12447_v34  ;;  %v6940_v46 = vpop.f32.mrb[19].mxu0 }
 0x317   : > { %8798 = vst [vmem:[%s12504_s24 + $0x30] sm:$0xff] %v8646_v32   ;;  %v7255_v36 = vmul.f32 %v9933_v13, %v12486_v9  ;;  %v9935_v33 = vadd.f32 %v6940_v46, %v12449_v11 }
 0x318   : > { %v7258_v24 = vmul.f32 %v9934_v39, %v12486_v9  ;;  %v7336_v5 = vadd.f32 %v12493_v49, %v7257_v38 }
 0x319   : > { %v7256_v47 = vmul.f32 %v9935_v33, %v12486_v9  ;;  %v7334_v16 = vadd.f32 %v12493_v49, %v7255_v36 }
 0x31a   : > { %v7337_v20 = vadd.f32 %v12493_v49, %v7258_v24 }
 0x31b   : > { %v7335_v34 = vadd.f32 %v12493_v49, %v7256_v47  ;;  %v9858_v41 = vpop.f32.mrb[20].mxu0 }
 0x31c   : > { %v8661_v10 = vpack.c.bf16 %v7337_v20, %v7336_v5  ;;  %v9936_v54 = vadd.f32 %v9858_v41, %v12451_v29  ;;  %v6953_v60 = vpop.f32.mrb[21].mxu0 }
 0x31d   : > { %v8656_v18 = vpack.c.bf16 %v7335_v34, %v7334_v16  ;;  %v9937_v11 = vadd.f32 %v6953_v60, %v12453_v31  ;;  %v9859_v1 = vpop.f32.mrb[22].mxu0 }
 0x31e   : > { %8801 = vst [vmem:[%s12504_s24 + $0x48] sm:$0xff] %v8661_v10   ;;  %v7261_v0 = vmul.f32 %v9936_v54, %v12486_v9  ;;  %v9938_v17 = vadd.f32 %v9859_v1, %v12455_v42  ;;  %v6956_v2 = vpop.f32.mrb[23].mxu0 }
 0x31f   : > { %8800 = vst [vmem:[%s12504_s24 + $0x40] sm:$0xff] %v8656_v18   ;;  %v7259_v35 = vmul.f32 %v9937_v11, %v12486_v9  ;;  %v9939_v4 = vadd.f32 %v6956_v2, %v12457_v15 }
 0x320   : > { %v7262_v14 = vmul.f32 %v9938_v17, %v12486_v9  ;;  %v7340_v31 = vadd.f32 %v12493_v49, %v7261_v0 }
 0x321   : > { %v7260_v29 = vmul.f32 %v9939_v4, %v12486_v9  ;;  %v7338_v52 = vadd.f32 %v12493_v49, %v7259_v35 }
 0x322   : > { %v7341_v7 = vadd.f32 %v12493_v49, %v7262_v14 }
 0x323   : > { %v7339_v42 = vadd.f32 %v12493_v49, %v7260_v29  ;;  %v9862_v45 = vpop.f32.mrb[24].mxu0 }
 0x324   : > { %v8671_v43 = vpack.c.bf16 %v7341_v7, %v7340_v31  ;;  %v9940_v6 = vadd.f32 %v9862_v45, %v12459_v30  ;;  %v6969_v51 = vpop.f32.mrb[25].mxu0 }
 0x325   : > { %v8666_v63 = vpack.c.bf16 %v7339_v42, %v7338_v52  ;;  %v9941_v15 = vadd.f32 %v6969_v51, %v12461_v22  ;;  %v9863_v25 = vpop.f32.mrb[26].mxu0 }
 0x326   : > { %8803 = vst [vmem:[%s12504_s24 + $0x58] sm:$0xff] %v8671_v43   ;;  %v7265_v58 = vmul.f32 %v9940_v6, %v12486_v9  ;;  %v9942_v40 = vadd.f32 %v9863_v25, %v12463_v37  ;;  %v6972_v56 = vpop.f32.mrb[27].mxu0 }
 0x327   : > { %8802 = vst [vmem:[%s12504_s24 + $0x50] sm:$0xff] %v8666_v63   ;;  %v7263_v48 = vmul.f32 %v9941_v15, %v12486_v9  ;;  %v9943_v23 = vadd.f32 %v6972_v56, %v12465_v53 }
 0x328   : > { %v7266_v55 = vmul.f32 %v9942_v40, %v12486_v9  ;;  %v7344_v22 = vadd.f32 %v12493_v49, %v7265_v58 }
 0x329   : > { %v7264_v30 = vmul.f32 %v9943_v23, %v12486_v9  ;;  %v7342_v28 = vadd.f32 %v12493_v49, %v7263_v48 }
 0x32a   : > { %v7345_v61 = vadd.f32 %v12493_v49, %v7266_v55 }
 0x32b   : > { %v7343_v37 = vadd.f32 %v12493_v49, %v7264_v30  ;;  %v9866_v21 = vpop.f32.mrb[28].mxu0 }
 0x32c   : > { %v8681_v44 = vpack.c.bf16 %v7345_v61, %v7344_v22  ;;  %v9944_v62 = vadd.f32 %v9866_v21, %v12467_v59  ;;  %v6985_v32 = vpop.f32.mrb[29].mxu0 }
 0x32d   : > { %v8676_v13 = vpack.c.bf16 %v7343_v37, %v7342_v28  ;;  %v9945_v53 = vadd.f32 %v6985_v32, %v12469_v50  ;;  %v9867_v19 = vpop.f32.mrb[30].mxu0 }
 0x32e   : > { %8805 = vst [vmem:[%s12504_s24 + $0x68] sm:$0xff] %v8681_v44   ;;  %v7269_v38 = vmul.f32 %v9944_v62, %v12486_v9  ;;  %v9946_v39 = vadd.f32 %v9867_v19, %v12471_v26  ;;  %v6988_v46 = vpop.f32.mrb[31].mxu0 }
 0x32f   : > { %8804 = vst [vmem:[%s12504_s24 + $0x60] sm:$0xff] %v8676_v13   ;;  %v7267_v36 = vmul.f32 %v9945_v53, %v12486_v9  ;;  %v9947_v33 = vadd.f32 %v6988_v46, %v12473_v3 }
 0x330   : > { %v7270_v24 = vmul.f32 %v9946_v39, %v12486_v9  ;;  %v7348_v50 = vadd.f32 %v12493_v49, %v7269_v38 }
 0x331   : > { %v7268_v59 = vmul.f32 %v9947_v33, %v12486_v9  ;;  %v7346_v5 = vadd.f32 %v12493_v49, %v7267_v36 }
 0x332   : > { %v7349_v47 = vadd.f32 %v12493_v49, %v7270_v24 }
 0x333   : > { %v7347_v26 = vadd.f32 %v12493_v49, %v7268_v59  ;;  %v9870_v20 = vpop.f32.mrb[32].mxu0 }
 0x334   : > { %v8691_v16 = vpack.c.bf16 %v7349_v47, %v7348_v50  ;;  %v9948_v34 = vadd.f32 %v9870_v20, %v12475_v57  ;;  %v7001_v41 = vpop.f32.mrb[33].mxu0 }
 0x335   : > { %v8686_v10 = vpack.c.bf16 %v7347_v26, %v7346_v5  ;;  %v9949_v3 = vadd.f32 %v7001_v41, %v12477_v12  ;;  %v9871_v54 = vpop.f32.mrb[34].mxu0 }
 0x336   : > { %8807 = vst [vmem:[%s12504_s24 + $0x78] sm:$0xff] %v8691_v16   ;;  %v7273_v60 = vmul.f32 %v9948_v34, %v12486_v9  ;;  %v9950_v18 = vadd.f32 %v9871_v54, %v12479_v8  ;;  %v7004_v11 = vpop.f32.mrb[35].mxu0 }
 0x337   : > { %8806 = vst [vmem:[%s12504_s24 + $0x70] sm:$0xff] %v8686_v10   ;;  %v7271_v1 = vmul.f32 %v9949_v3, %v12486_v9  ;;  %v9951_v0 = vadd.f32 %v7004_v11, %v12481_v27 }
 0x338   : > { %v7274_v17 = vmul.f32 %v9950_v18, %v12486_v9  ;;  %v7352_v12 = vadd.f32 %v12493_v49, %v7273_v60 }
 0x339   : > { %v7272_v57 = vmul.f32 %v9951_v0, %v12486_v9  ;;  %v9554_v2 = vpop.f32.mrb[36].mxu1  ;;  %v7350_v8 = vadd.f32 %v12493_v49, %v7271_v1 }
 0x33a   : > { %v7353_v35 = vadd.f32 %v12493_v49, %v7274_v17  ;;  %v3927_v4 = vpop.f32.mrb[37].mxu1 }
 0x33b   : > { %v7351_v14 = vadd.f32 %v12493_v49, %v7272_v57  ;;  %v9874_v29 = vpop.f32.mrb[36].mxu0  ;;  %v9555_v31 = vpop.f32.mrb[38].mxu1 }
 0x33c   : > { %v8701_v7 = vpack.c.bf16 %v7353_v35, %v7352_v12  ;;  %v9952_v27 = vadd.f32 %v9874_v29, %v9554_v2  ;;  %v7017_v52 = vpop.f32.mrb[37].mxu0  ;;  %v3930_v42 = vpop.f32.mrb[39].mxu1 }
 0x33d   : > { %v8696_v45 = vpack.c.bf16 %v7351_v14, %v7350_v8  ;;  %v9953_v43 = vadd.f32 %v7017_v52, %v3927_v4  ;;  %v9875_v6 = vpop.f32.mrb[38].mxu0 }
 0x33e   : > { %8809 = vst [vmem:[%s12504_s24 + $0x88] sm:$0xff] %v8701_v7   ;;  %v7277_v51 = vmul.f32 %v9952_v27, %v12486_v9  ;;  %v9954_v63 = vadd.f32 %v9875_v6, %v9555_v31  ;;  %v7020_v15 = vpop.f32.mrb[39].mxu0 }
 0x33f   : > { %8808 = vst [vmem:[%s12504_s24 + $0x80] sm:$0xff] %v8696_v45   ;;  %v7275_v25 = vmul.f32 %v9953_v43, %v12486_v9  ;;  %v9955_v58 = vadd.f32 %v7020_v15, %v3930_v42 }
 0x340   : > { %v7278_v40 = vmul.f32 %v9954_v63, %v12486_v9  ;;  %v7356_v23 = vadd.f32 %v12493_v49, %v7277_v51 }
 0x341   : > { %v7276_v56 = vmul.f32 %v9955_v58, %v12486_v9  ;;  %v9558_v48 = vpop.f32.mrb[40].mxu1  ;;  %v7354_v22 = vadd.f32 %v12493_v49, %v7275_v25 }
 0x342   : > { %v7357_v55 = vadd.f32 %v12493_v49, %v7278_v40  ;;  %v3943_v30 = vpop.f32.mrb[41].mxu1 }
 0x343   : > { %v7355_v61 = vadd.f32 %v12493_v49, %v7276_v56  ;;  %v9878_v28 = vpop.f32.mrb[40].mxu0  ;;  %v9559_v37 = vpop.f32.mrb[42].mxu1 }
 0x344   : > { %v8711_v21 = vpack.c.bf16 %v7357_v55, %v7356_v23  ;;  %v9956_v44 = vadd.f32 %v9878_v28, %v9558_v48  ;;  %v7033_v62 = vpop.f32.mrb[41].mxu0  ;;  %v3946_v32 = vpop.f32.mrb[43].mxu1 }
 0x345   : > { %v8706_v13 = vpack.c.bf16 %v7355_v61, %v7354_v22  ;;  %v9957_v53 = vadd.f32 %v7033_v62, %v3943_v30  ;;  %v9879_v19 = vpop.f32.mrb[42].mxu0 }
 0x346   : > { %8811 = vst [vmem:[%s12504_s24 + $0x98] sm:$0xff] %v8711_v21   ;;  %v7281_v38 = vmul.f32 %v9956_v44, %v12486_v9  ;;  %v9958_v39 = vadd.f32 %v9879_v19, %v9559_v37  ;;  %v7036_v46 = vpop.f32.mrb[43].mxu0 }
 0x347   : > { %8810 = vst [vmem:[%s12504_s24 + $0x90] sm:$0xff] %v8706_v13   ;;  %v7279_v36 = vmul.f32 %v9957_v53, %v12486_v9  ;;  %v9959_v33 = vadd.f32 %v7036_v46, %v3946_v32 }
 0x348   : > { %v7282_v24 = vmul.f32 %v9958_v39, %v12486_v9  ;;  %v7360_v47 = vadd.f32 %v12493_v49, %v7281_v38 }
 0x349   : > { %v7280_v59 = vmul.f32 %v9959_v33, %v12486_v9  ;;  %v9562_v50 = vpop.f32.mrb[44].mxu1  ;;  %v7358_v20 = vadd.f32 %v12493_v49, %v7279_v36 }
 0x34a   : > { %v7361_v5 = vadd.f32 %v12493_v49, %v7282_v24  ;;  %v3959_v26 = vpop.f32.mrb[45].mxu1 }
 0x34b   : > { %v7359_v16 = vadd.f32 %v12493_v49, %v7280_v59  ;;  %v9882_v34 = vpop.f32.mrb[44].mxu0  ;;  %v9563_v41 = vpop.f32.mrb[46].mxu1 }
 0x34c   : > { %v8721_v10 = vpack.c.bf16 %v7361_v5, %v7360_v47  ;;  %v9960_v3 = vadd.f32 %v9882_v34, %v9562_v50  ;;  %v7049_v54 = vpop.f32.mrb[45].mxu0  ;;  %v3962_v60 = vpop.f32.mrb[47].mxu1 }
 0x34d   : > { %v8716_v18 = vpack.c.bf16 %v7359_v16, %v7358_v20  ;;  %v9961_v11 = vadd.f32 %v7049_v54, %v3959_v26  ;;  %v9883_v1 = vpop.f32.mrb[46].mxu0 }
 0x34e   : > { %8813 = vst [vmem:[%s12504_s24 + $0xa8] sm:$0xff] %v8721_v10   ;;  %v7285_v0 = vmul.f32 %v9960_v3, %v12486_v9  ;;  %v9962_v17 = vadd.f32 %v9883_v1, %v9563_v41  ;;  %v7052_v57 = vpop.f32.mrb[47].mxu0 }
 0x34f   : > { %8812 = vst [vmem:[%s12504_s24 + $0xa0] sm:$0xff] %v8716_v18   ;;  %v7283_v2 = vmul.f32 %v9961_v11, %v12486_v9  ;;  %v9963_v12 = vadd.f32 %v7052_v57, %v3962_v60 }
 0x350   : > { %v7286_v35 = vmul.f32 %v9962_v17, %v12486_v9  ;;  %v7364_v14 = vadd.f32 %v12493_v49, %v7285_v0 }
 0x351   : > { %v7284_v4 = vmul.f32 %v9963_v12, %v12486_v9  ;;  %v9566_v8 = vpop.f32.mrb[48].mxu1  ;;  %v7362_v7 = vadd.f32 %v12493_v49, %v7283_v2 }
 0x352   : > { %v7365_v29 = vadd.f32 %v12493_v49, %v7286_v35  ;;  %v3975_v31 = vpop.f32.mrb[49].mxu1 }
 0x353   : > { %v7363_v27 = vadd.f32 %v12493_v49, %v7284_v4  ;;  %v9886_v52 = vpop.f32.mrb[48].mxu0  ;;  %v9567_v42 = vpop.f32.mrb[50].mxu1 }
 0x354   : > { %v8731_v45 = vpack.c.bf16 %v7365_v29, %v7364_v14  ;;  %v9964_v43 = vadd.f32 %v9886_v52, %v9566_v8  ;;  %v7065_v6 = vpop.f32.mrb[49].mxu0  ;;  %v3978_v51 = vpop.f32.mrb[51].mxu1 }
 0x355   : > { %v8726_v63 = vpack.c.bf16 %v7363_v27, %v7362_v7  ;;  %v9965_v15 = vadd.f32 %v7065_v6, %v3975_v31  ;;  %v9887_v25 = vpop.f32.mrb[50].mxu0 }
 0x356   : > { %8815 = vst [vmem:[%s12504_s24 + $0xb8] sm:$0xff] %v8731_v45   ;;  %v7289_v58 = vmul.f32 %v9964_v43, %v12486_v9  ;;  %v9966_v40 = vadd.f32 %v9887_v25, %v9567_v42  ;;  %v7068_v56 = vpop.f32.mrb[51].mxu0 }
 0x357   : > { %8814 = vst [vmem:[%s12504_s24 + $0xb0] sm:$0xff] %v8726_v63   ;;  %v7287_v48 = vmul.f32 %v9965_v15, %v12486_v9  ;;  %v9967_v23 = vadd.f32 %v7068_v56, %v3978_v51 }
 0x358   : > { %v7290_v55 = vmul.f32 %v9966_v40, %v12486_v9  ;;  %v7368_v61 = vadd.f32 %v12493_v49, %v7289_v58 }
 0x359   : > { %v7288_v30 = vmul.f32 %v9967_v23, %v12486_v9  ;;  %v9570_v22 = vpop.f32.mrb[52].mxu1  ;;  %v7366_v21 = vadd.f32 %v12493_v49, %v7287_v48 }
 0x35a   : > { %v7369_v28 = vadd.f32 %v12493_v49, %v7290_v55  ;;  %v3991_v37 = vpop.f32.mrb[53].mxu1 }
 0x35b   : > { %v7367_v44 = vadd.f32 %v12493_v49, %v7288_v30  ;;  %v9890_v62 = vpop.f32.mrb[52].mxu0  ;;  %v9571_v32 = vpop.f32.mrb[54].mxu1 }
 0x35c   : > { %v8741_v13 = vpack.c.bf16 %v7369_v28, %v7368_v61  ;;  %v9968_v53 = vadd.f32 %v9890_v62, %v9570_v22  ;;  %v7081_v19 = vpop.f32.mrb[53].mxu0  ;;  %v3994_v38 = vpop.f32.mrb[55].mxu1 }
 0x35d   : > { %v8736_v39 = vpack.c.bf16 %v7367_v44, %v7366_v21  ;;  %v9969_v46 = vadd.f32 %v7081_v19, %v3991_v37  ;;  %v9891_v36 = vpop.f32.mrb[54].mxu0 }
 0x35e   : > { %8817 = vst [vmem:[%s12504_s24 + $0xc8] sm:$0xff] %v8741_v13   ;;  %v7293_v33 = vmul.f32 %v9968_v53, %v12486_v9  ;;  %v9970_v24 = vadd.f32 %v9891_v36, %v9571_v32  ;;  %v7084_v59 = vpop.f32.mrb[55].mxu0 }
 0x35f   : > { %8816 = vst [vmem:[%s12504_s24 + $0xc0] sm:$0xff] %v8736_v39   ;;  %v7291_v50 = vmul.f32 %v9969_v46, %v12486_v9  ;;  %v9971_v47 = vadd.f32 %v7084_v59, %v3994_v38 }
 0x360   : > { %v7294_v5 = vmul.f32 %v9970_v24, %v12486_v9  ;;  %v7372_v16 = vadd.f32 %v12493_v49, %v7293_v33 }
 0x361   : > { %v7292_v26 = vmul.f32 %v9971_v47, %v12486_v9  ;;  %v9574_v20 = vpop.f32.mrb[56].mxu1  ;;  %v7370_v10 = vadd.f32 %v12493_v49, %v7291_v50 }
 0x362   : > { %v7373_v34 = vadd.f32 %v12493_v49, %v7294_v5  ;;  %v4007_v41 = vpop.f32.mrb[57].mxu1 }
 0x363   : > { %v7371_v3 = vadd.f32 %v12493_v49, %v7292_v26  ;;  %v9894_v54 = vpop.f32.mrb[56].mxu0  ;;  %v9575_v60 = vpop.f32.mrb[58].mxu1 }
 0x364   : > { %v8751_v18 = vpack.c.bf16 %v7373_v34, %v7372_v16  ;;  %v9972_v11 = vadd.f32 %v9894_v54, %v9574_v20  ;;  %v7097_v1 = vpop.f32.mrb[57].mxu0  ;;  %v4010_v0 = vpop.f32.mrb[59].mxu1 }
 0x365   : > { %v8746_v17 = vpack.c.bf16 %v7371_v3, %v7370_v10  ;;  %v9973_v57 = vadd.f32 %v7097_v1, %v4007_v41  ;;  %v9895_v2 = vpop.f32.mrb[58].mxu0 }
 0x366   : > { %8819 = vst [vmem:[%s12504_s24 + $0xd8] sm:$0xff] %v8751_v18   ;;  %v7297_v12 = vmul.f32 %v9972_v11, %v12486_v9  ;;  %v9974_v35 = vadd.f32 %v9895_v2, %v9575_v60  ;;  %v7100_v4 = vpop.f32.mrb[59].mxu0 }
 0x367   : > { %8818 = vst [vmem:[%s12504_s24 + $0xd0] sm:$0xff] %v8746_v17   ;;  %v7295_v8 = vmul.f32 %v9973_v57, %v12486_v9  ;;  %v9975_v14 = vadd.f32 %v7100_v4, %v4010_v0 }
 0x368   : > { %v7298_v29 = vmul.f32 %v9974_v35, %v12486_v9  ;;  %v7376_v27 = vadd.f32 %v12493_v49, %v7297_v12 }
 0x369   : > { %v7296_v31 = vmul.f32 %v9975_v14, %v12486_v9  ;;  %v9578_v7 = vpop.f32.mrb[60].mxu1  ;;  %v7374_v45 = vadd.f32 %v12493_v49, %v7295_v8 }
 0x36a   : > { %v7377_v52 = vadd.f32 %v12493_v49, %v7298_v29  ;;  %v4023_v42 = vpop.f32.mrb[61].mxu1 }
 0x36b   : > { %v7375_v43 = vadd.f32 %v12493_v49, %v7296_v31  ;;  %v9898_v6 = vpop.f32.mrb[60].mxu0  ;;  %v9579_v51 = vpop.f32.mrb[62].mxu1 }
 0x36c   : > { %v8761_v63 = vpack.c.bf16 %v7377_v52, %v7376_v27  ;;  %v9976_v15 = vadd.f32 %v9898_v6, %v9578_v7  ;;  %v7113_v25 = vpop.f32.mrb[61].mxu0  ;;  %v4026_v58 = vpop.f32.mrb[63].mxu1 }
 0x36d   : > { %v8756_v40 = vpack.c.bf16 %v7375_v43, %v7374_v45  ;;  %v9977_v56 = vadd.f32 %v7113_v25, %v4023_v42  ;;  %v9899_v48 = vpop.f32.mrb[62].mxu0 }
 0x36e   : > { %8821 = vst [vmem:[%s12504_s24 + $0xe8] sm:$0xff] %v8761_v63   ;;  %v7301_v23 = vmul.f32 %v9976_v15, %v12486_v9  ;;  %v9978_v55 = vadd.f32 %v9899_v48, %v9579_v51  ;;  %v7116_v30 = vpop.f32.mrb[63].mxu0 }
 0x36f   : > { %8820 = vst [vmem:[%s12504_s24 + $0xe0] sm:$0xff] %v8756_v40   ;;  %v7299_v22 = vmul.f32 %v9977_v56, %v12486_v9  ;;  %v9979_v61 = vadd.f32 %v7116_v30, %v4026_v58 }
 0x370   : > { %v7302_v28 = vmul.f32 %v9978_v55, %v12486_v9  ;;  %v7380_v44 = vadd.f32 %v12493_v49, %v7301_v23 }
 0x371   : > { %v7300_v37 = vmul.f32 %v9979_v61, %v12486_v9  ;;  %v9582_v21 = vpop.f32.mrb[64].mxu1  ;;  %v7378_v13 = vadd.f32 %v12493_v49, %v7299_v22 }
 0x372   : > { %v7381_v62 = vadd.f32 %v12493_v49, %v7302_v28  ;;  %v4039_v32 = vpop.f32.mrb[65].mxu1 }
 0x373   : > { %v7379_v53 = vadd.f32 %v12493_v49, %v7300_v37  ;;  %v9902_v19 = vpop.f32.mrb[64].mxu0  ;;  %v9583_v38 = vpop.f32.mrb[66].mxu1 }
 0x374   : > { %v8771_v39 = vpack.c.bf16 %v7381_v62, %v7380_v44  ;;  %v9980_v46 = vadd.f32 %v9902_v19, %v9582_v21  ;;  %v7129_v36 = vpop.f32.mrb[65].mxu0  ;;  %v4042_v33 = vpop.f32.mrb[67].mxu1 }
 0x375   : > { %v8766_v24 = vpack.c.bf16 %v7379_v53, %v7378_v13  ;;  %v9981_v59 = vadd.f32 %v7129_v36, %v4039_v32  ;;  %v9903_v50 = vpop.f32.mrb[66].mxu0 }
 0x376   : > { %8823 = vst [vmem:[%s12504_s24 + $0xf8] sm:$0xff] %v8771_v39   ;;  %v7305_v47 = vmul.f32 %v9980_v46, %v12486_v9  ;;  %v9982_v5 = vadd.f32 %v9903_v50, %v9583_v38  ;;  %v7132_v26 = vpop.f32.mrb[67].mxu0 }
 0x377   : > { %8822 = vst [vmem:[%s12504_s24 + $0xf0] sm:$0xff] %v8766_v24   ;;  %v7303_v20 = vmul.f32 %v9981_v59, %v12486_v9  ;;  %v9983_v16 = vadd.f32 %v7132_v26, %v4042_v33 }
 0x378   : > { %v7306_v34 = vmul.f32 %v9982_v5, %v12486_v9  ;;  %v7384_v3 = vadd.f32 %v12493_v49, %v7305_v47 }
 0x379   : > { %v7304_v41 = vmul.f32 %v9983_v16, %v12486_v9  ;;  %v9586_v10 = vpop.f32.mrb[68].mxu1  ;;  %v7382_v18 = vadd.f32 %v12493_v49, %v7303_v20 }
 0x37a   : > { %v7385_v54 = vadd.f32 %v12493_v49, %v7306_v34  ;;  %v4055_v60 = vpop.f32.mrb[69].mxu1 }
 0x37b   : > { %v7383_v11 = vadd.f32 %v12493_v49, %v7304_v41  ;;  %v9906_v1 = vpop.f32.mrb[68].mxu0  ;;  %v9587_v0 = vpop.f32.mrb[70].mxu1 }
 0x37c   : > { %v8781_v17 = vpack.c.bf16 %v7385_v54, %v7384_v3  ;;  %v9984_v57 = vadd.f32 %v9906_v1, %v9586_v10  ;;  %v7145_v2 = vpop.f32.mrb[69].mxu0  ;;  %v4058_v12 = vpop.f32.mrb[71].mxu1 }
 0x37d   : > { %v8776_v35 = vpack.c.bf16 %v7383_v11, %v7382_v18  ;;  %v9985_v4 = vadd.f32 %v7145_v2, %v4055_v60  ;;  %v9907_v8 = vpop.f32.mrb[70].mxu0 }
 0x37e   : > { %8825 = vst [vmem:[%s12504_s24 + $0x108] sm:$0xff] %v8781_v17   ;;  %v7309_v14 = vmul.f32 %v9984_v57, %v12486_v9  ;;  %v9986_v29 = vadd.f32 %v9907_v8, %v9587_v0  ;;  %v7148_v31 = vpop.f32.mrb[71].mxu0 }
 0x37f   : > { %8824 = vst [vmem:[%s12504_s24 + $0x100] sm:$0xff] %v8776_v35   ;;  %v7307_v7 = vmul.f32 %v9985_v4, %v12486_v9  ;;  %v9987_v27 = vadd.f32 %v7148_v31, %v4058_v12 }
 0x380   : > { %v7310_v52 = vmul.f32 %v9986_v29, %v12486_v9  ;;  %v7388_v45 = vadd.f32 %v12493_v49, %v7309_v14 }
 0x381   : > { %v7308_v42 = vmul.f32 %v9987_v27, %v12486_v9  ;;  %v7386_v6 = vadd.f32 %v12493_v49, %v7307_v7 }
 0x382   : > { %v7389_v43 = vadd.f32 %v12493_v49, %v7310_v52 }
 0x383   : > { %v7387_v51 = vadd.f32 %v12493_v49, %v7308_v42 }
 0x384   : > { %v8791_v63 = vpack.c.bf16 %v7389_v43, %v7388_v45 }
 0x385   : > { %v8786_v9 = vpack.c.bf16 %v7387_v51, %v7386_v6 }
 0x386   : > { %8827 = vst [vmem:[%s12504_s24 + $0x118] sm:$0xff] %v8791_v63  }
 0x387   : > { %8826 = vst [vmem:[%s12504_s24 + $0x110] sm:$0xff] %v8786_v9  }
 0x388   : > { %10847 = shalt.err (!%p10844_p5)
}
 0x389   : > { %s10848_s5 = scalar_lea.hbm %s12710_s7, 4608  ;;  %s10852_s14 = scalar_lea.hbm %s12768_s4, 9216 }
 0x38a   : > { %p10849_p6 = scmp.ne.s32.totalorder %s12710_s7, %s10848_s5  ;;  %p10853_p10 = scmp.lt.u32.totalorder %s12710_s7, %s12768_s4 }
 0x38b   : > { %p10854_p11 = scmp.lt.u32.totalorder %s10852_s14, %s10848_s5  ;;  %p10856_p13 = scmp.lt.u32.totalorder %s10848_s5, %s12710_s7 }
 0x38c   : > { %p10850_p7 = pnand %p10849_p6, %p10982_p4 }
 0x38d   : > { %p10855_p12 = por %p10854_p11, %p10853_p10 }
 0x38e   : > { %p10851_p9 = pneg %p10850_p7 }
 0x38f   : > { %p10857_p0 = por %p10856_p13, %p10855_p12 }
 0x391   : > { %p10858_p1 = pnand %p10857_p0, %p10851_p9 }
 0x393   : > { %10861 = shalt.err (!%p10858_p1)
}
 0x394   : > { %s10915_s24 = smov 64   ;;  %s10916_s26 = smov 4  }
 0x395   : > { %10495 = dma.vmem_to_hbm [thread:$0]  (%p10982_p4), %s12712_s29, 4608, %s12710_s7, %s12718_s18, %s10915_s24, %s10915_s24, %s10916_s26  }
 0x396 PF: > { %p10501_p2 = scmp.ge.s32.totalorder %s10912_s20, 2  ;;  %s7781_s30 = sand.u32 1, %s10892_s15  }
 0x397   : > { %s7782_s6 = scalar_lea.sflag [#allocation3], %s7781_s30 }
 0x398   : > { %p10498_p3 = pnand %p10501_p2, %p10989_p8 }
 0x39a   : > { %10887 = dma.done.wait (!%p10498_p3), %s7782_s6, 4608  }
 0x39b   : > { %10889 = vsyncadd (!%p10498_p3), %s7782_s6, 4294962688  ;;  %s17_s20 = sadd.s32 1, %s10912_s20   ;;  %s12771_s15 = smov %s10896_s16 }
 0x39c   : > { %p14_p5 = scmp.ge.s32.totalorder %s17_s20, 4   ;;  %s12772_s16 = smov %s10900_s17 }
 0x39d   : > { %s12773_s17 = smov %s10995_s28  ;;  %s12774_s18 = smov %s10908_s19 }
 0x39e   : > { %s12775_s19 = smov %s12777_s23  ;;  %16 = sbr.rel (!%p14_p5) target bundleno = 4 (0x4), region = 79 }
 0x3a5   :  { %7787 = vsyncpa [#allocation3], 1 }
 0x3a6   :  { %7789 = vsyncpa [#allocation3 + $0x1], 1 }

</bundles_post_ra>
